<compile_context>
chip_gen: v7x
topology: tpu7x:2x2x1
jax: 0.10.0
libtpu: 0.0.40
codegen_flags: <defaults>
</compile_context>

<pallas_src>
import functools
import math

import jax
import jax.numpy as jnp
from jax import lax
from jax.experimental import pallas as pl
from jax.experimental.pallas import tpu as pltpu

# ---------------- synthetic model config (small, lane-dense) ----------------
VOCAB = 100
HIDDEN = 128                    # = one full vreg lane width (real xlm-roberta-base: 768)
HEADS = 4
HEAD_DIM = HIDDEN // HEADS      # 32
FFN = 4 * HIDDEN                # 512 (roberta ratio)
LAYERS = 2
MAX_POS = 64
LN_EPS = 1e-5
ATTN_SCALE = 1.0 / math.sqrt(HEAD_DIM)


# ---------------- in-kernel helpers ----------------
def _layernorm(x, g, b):
    """Row-wise LayerNorm with fused affine (f32); residual add done by caller."""
    mean = jnp.mean(x, axis=-1, keepdims=True)
    xc = x - mean
    var = jnp.mean(xc * xc, axis=-1, keepdims=True)
    return xc * lax.rsqrt(var + LN_EPS) * g + b


# ---------------- fused per-layer kernel (grid axis = layers) ----------------
def _encoder_layer_kernel(
        # resident inputs (constant block index -> DMA'd once)
        x_ref, bias_ref, emb_g_ref, emb_b_ref,
        # per-layer streamed weights (block index = layer)
        wq_ref, wk_ref, wv_ref, bq_ref, bk_ref, bv_ref,
        wo_ref, bo_ref, ln1g_ref, ln1b_ref,
        w1_ref, b1_ref, w2_ref, b2_ref, ln2g_ref, ln2b_ref,
        # output
        o_ref,
        # scratch: hidden state carried across layer grid steps
        h_ref,
        *, batch, seq):
    layer = pl.program_id(0)
    tokens = batch * seq

    # Layer 0: embeddings -> LayerNorm seeds the carried hidden state.
    @pl.when(layer == 0)
    def _init():
        h_ref[...] = _layernorm(x_ref[...], emb_g_ref[...], emb_b_ref[...])

    h = h_ref[...]                               # (tokens, HIDDEN) f32
    h_bf = h.astype(jnp.bfloat16)                # cast once; reused by all projections
    bias = bias_ref[...]                         # (batch, seq, seq) f32 additive mask bias

    # ---- multi-head self-attention ------------------------------------------
    # Heads are statically unrolled; per-head weights are head-major so there is
    # no lane-axis slicing of activations and no concat (output projection is
    # accumulated per head).  Score / context matmuls are batched over `batch`.
    attn = jnp.zeros((tokens, HIDDEN), jnp.float32)
    for hd in range(HEADS):
        # projections: (tokens,128) @ (128,32), f32 accumulation on the MXU
        q = jnp.dot(h_bf, wq_ref[0, hd], preferred_element_type=jnp.float32) + bq_ref[0, hd]
        k = jnp.dot(h_bf, wk_ref[0, hd], preferred_element_type=jnp.float32) + bk_ref[0, hd]
        v = jnp.dot(h_bf, wv_ref[0, hd], preferred_element_type=jnp.float32) + bv_ref[0, hd]
        q3 = q.reshape(batch, seq, HEAD_DIM).astype(jnp.bfloat16)
        k3 = k.reshape(batch, seq, HEAD_DIM).astype(jnp.bfloat16)
        v3 = v.reshape(batch, seq, HEAD_DIM).astype(jnp.bfloat16)

        # ATTN_SCALE already folded into wq/bq at parameter-build time.
        s = jnp.einsum('bqd,bkd->bqk', q3, k3,
                       preferred_element_type=jnp.float32) + bias        # (B, S, S) f32
        m = jnp.max(s, axis=-1, keepdims=True)
        p = jnp.exp(s - m)
        denom = jnp.sum(p, axis=-1, keepdims=True)
        probs = (p * pl.reciprocal(denom, approx=True)).astype(jnp.bfloat16)
        ctx = jnp.einsum('bqk,bkd->bqd', probs, v3,
                         preferred_element_type=jnp.float32)              # (B, S, D)
        ctx2 = ctx.reshape(tokens, HEAD_DIM).astype(jnp.bfloat16)
        # accumulate output projection per head: (tokens,32) @ (32,128)
        attn = attn + jnp.dot(ctx2, wo_ref[0, hd], preferred_element_type=jnp.float32)
    attn = attn + bo_ref[0]

    # ---- residual + LN, FFN (gelu), residual + LN ----------------------------
    h = _layernorm(h + attn, ln1g_ref[0], ln1b_ref[0])

    ffn = jnp.dot(h.astype(jnp.bfloat16), w1_ref[0],
                  preferred_element_type=jnp.float32) + b1_ref[0]         # (tokens, FFN)
    # TODO(synk): HF xlm-roberta uses exact erf-GELU; tanh approximation used here.
    ffn = jax.nn.gelu(ffn, approximate=True)
    ffn_out = jnp.dot(ffn.astype(jnp.bfloat16), w2_ref[0],
                      preferred_element_type=jnp.float32) + b2_ref[0]
    h = _layernorm(h + ffn_out, ln2g_ref[0], ln2b_ref[0])

    h_ref[...] = h                               # carry hidden state to next layer step

    @pl.when(layer == LAYERS - 1)
    def _finalize():
        o_ref[...] = h.astype(o_ref.dtype)       # lane-dense (tokens, 128) store


# ---------------- parameters (stacked per layer, head-major attention weights) --------
def _init_params(key):
    def nrm(k, shape, scale=0.02):
        return scale * jax.random.normal(k, shape, dtype=jnp.float32)

    keys = jax.random.split(key, 2 + 6 * LAYERS)
    wq, wk, wv, wo, w1, w2 = [], [], [], [], [], []
    for li in range(LAYERS):
        lk = keys[2 + 6 * li: 2 + 6 * (li + 1)]
        # head-major projection weights: (HEADS, HIDDEN, HEAD_DIM); scale folded into Q
        wq.append(nrm(lk[0], (HEADS, HIDDEN, HEAD_DIM)) * ATTN_SCALE)
        wk.append(nrm(lk[1], (HEADS, HIDDEN, HEAD_DIM)))
        wv.append(nrm(lk[2], (HEADS, HIDDEN, HEAD_DIM)))
        wo.append(nrm(lk[3], (HEADS, HEAD_DIM, HIDDEN)))
        w1.append(nrm(lk[4], (HIDDEN, FFN)))
        w2.append(nrm(lk[5], (FFN, HIDDEN)))

    # MXU operands stored in bf16 (f32 accumulation in-kernel); biases / LN params f32.
    return {
        "word_emb": nrm(keys[0], (VOCAB, HIDDEN)),
        "pos_emb": nrm(keys[1], (MAX_POS, HIDDEN)),
        "emb_ln_g": jnp.ones((1, HIDDEN), jnp.float32),
        "emb_ln_b": jnp.zeros((1, HIDDEN), jnp.float32),
        "wq": jnp.stack(wq).astype(jnp.bfloat16),                 # (L, HEADS, H, D), scale folded
        "wk": jnp.stack(wk).astype(jnp.bfloat16),
        "wv": jnp.stack(wv).astype(jnp.bfloat16),
        "bq": jnp.zeros((LAYERS, HEADS, 1, HEAD_DIM), jnp.float32),  # (scale folded; zero anyway)
        "bk": jnp.zeros((LAYERS, HEADS, 1, HEAD_DIM), jnp.float32),
        "bv": jnp.zeros((LAYERS, HEADS, 1, HEAD_DIM), jnp.float32),
        "wo": jnp.stack(wo).astype(jnp.bfloat16),                 # (L, HEADS, D, H)
        "bo": jnp.zeros((LAYERS, 1, HIDDEN), jnp.float32),
        "ln1_g": jnp.ones((LAYERS, 1, HIDDEN), jnp.float32),
        "ln1_b": jnp.zeros((LAYERS, 1, HIDDEN), jnp.float32),
        "w1": jnp.stack(w1).astype(jnp.bfloat16),                 # (L, H, FFN)
        "b1": jnp.zeros((LAYERS, 1, FFN), jnp.float32),
        "w2": jnp.stack(w2).astype(jnp.bfloat16),                 # (L, FFN, H)
        "b2": jnp.zeros((LAYERS, 1, HIDDEN), jnp.float32),
        "ln2_g": jnp.ones((LAYERS, 1, HIDDEN), jnp.float32),
        "ln2_b": jnp.zeros((LAYERS, 1, HIDDEN), jnp.float32),
    }


# ---------------- forward (mirrors HFEncoder.forward) ----------------
def hf_encoder_forward(params, input_ids, attention_mask=None):
    """Returns (sentence_rep, last_hidden_state), like HFEncoder.forward."""
    B, S = input_ids.shape
    if attention_mask is None:
        attention_mask = jnp.ones((B, S), jnp.float32)
    attention_mask = attention_mask.astype(jnp.float32)

    # glue in plain JAX: embedding gather + position add, mask -> additive bias
    x = params["word_emb"][input_ids] + params["pos_emb"][:S][None, :, :]    # (B, S, H)
    x_tok = x.reshape(B * S, HIDDEN)                                         # lane-dense token slab
    # precompute query-dense additive bias once (no per-head broadcast in kernel)
    bias = jnp.broadcast_to(((1.0 - attention_mask) * -1e9)[:, None, :], (B, S, S))

    args = (x_tok, bias,
            params["emb_ln_g"], params["emb_ln_b"],
            params["wq"], params["wk"], params["wv"],
            params["bq"], params["bk"], params["bv"],
            params["wo"], params["bo"], params["ln1_g"], params["ln1_b"],
            params["w1"], params["b1"], params["w2"], params["b2"],
            params["ln2_g"], params["ln2_b"])

    def resident_spec(arr):
        zeros = (0,) * arr.ndim
        return pl.BlockSpec(arr.shape, lambda l, _z=zeros: _z)

    def layer_spec(arr):
        block = (1,) + arr.shape[1:]
        zeros = (0,) * (arr.ndim - 1)
        return pl.BlockSpec(block, lambda l, _z=zeros: (l,) + _z)

    in_specs = [resident_spec(a) for a in args[:4]] + [layer_spec(a) for a in args[4:]]
    out_specs = pl.BlockSpec((B * S, HIDDEN), lambda l: (0, 0))   # lane-dense, revisited

    # advisory cost estimate
    T = B * S
    flops = LAYERS * (8 * T * HIDDEN * HIDDEN          # qkv + output projections
                      + 4 * B * S * S * HIDDEN         # scores + context, all heads
                      + 4 * T * HIDDEN * FFN)          # ffn up + down
    transcendentals = LAYERS * (HEADS * B * S * S + T * FFN)
    bytes_accessed = sum(int(a.size) * a.dtype.itemsize for a in args) + T * HIDDEN * 4

    grid_spec = pltpu.PrefetchScalarGridSpec(
        num_scalar_prefetch=0,
        grid=(LAYERS,),
        in_specs=in_specs,
        out_specs=out_specs,
        scratch_shapes=[pltpu.VMEM((T, HIDDEN), jnp.float32)],   # carried hidden state
    )

    kernel = functools.partial(_encoder_layer_kernel, batch=B, seq=S)

    last_tok = pl.pallas_call(
        kernel,
        out_shape=jax.ShapeDtypeStruct((T, HIDDEN), jnp.float32),
        grid_spec=grid_spec,
        # layer axis carries state -> sequential ("arbitrary").  Explicit VMEM budget
        # so a scaled-up (12-layer) variant stays within v7x's 64 MiB core.
        compiler_params=pltpu.CompilerParams(
            dimension_semantics=("arbitrary",),
            vmem_limit_bytes=32 * 1024 * 1024),
        cost_estimate=pl.CostEstimate(flops=flops,
                                      transcendentals=transcendentals,
                                      bytes_accessed=bytes_accessed),
    )(*args)

    last_hidden_state = last_tok.reshape(B, S, HIDDEN)
    sentence_rep = last_hidden_state[:, 0, :]
    return sentence_rep, last_hidden_state


# ---------------- pure-JAX reference (mirrors the kernel math) ----------------
def _reference_forward(params, input_ids, attention_mask):
    B, S = input_ids.shape
    x = params["word_emb"][input_ids] + params["pos_emb"][:S][None, :, :]
    bias = ((1.0 - attention_mask.astype(jnp.float32)) * -1e9)[:, None, None, :]  # (B,1,1,S)

    def ln(v, g, b):
        mean = jnp.mean(v, axis=-1, keepdims=True)
        vc = v - mean
        var = jnp.mean(vc * vc, axis=-1, keepdims=True)
        return vc * lax.rsqrt(var + LN_EPS) * g + b

    h = ln(x, params["emb_ln_g"][0], params["emb_ln_b"][0])
    for l in range(LAYERS):
        hb = h.astype(jnp.bfloat16)
        q = jnp.einsum("bsh,ghd->bgsd", hb, params["wq"][l],
                       preferred_element_type=jnp.float32) + params["bq"][l][None]
        k = jnp.einsum("bsh,ghd->bgsd", hb, params["wk"][l],
                       preferred_element_type=jnp.float32) + params["bk"][l][None]
        v = jnp.einsum("bsh,ghd->bgsd", hb, params["wv"][l],
                       preferred_element_type=jnp.float32) + params["bv"][l][None]
        s = jnp.einsum("bgqd,bgkd->bgqk", q.astype(jnp.bfloat16), k.astype(jnp.bfloat16),
                       preferred_element_type=jnp.float32) + bias
        p = jax.nn.softmax(s, axis=-1)
        ctx = jnp.einsum("bgqk,bgkd->bgqd", p.astype(jnp.bfloat16), v.astype(jnp.bfloat16),
                         preferred_element_type=jnp.float32)
        attn = jnp.einsum("bgsd,gdh->bsh", ctx.astype(jnp.bfloat16), params["wo"][l],
                          preferred_element_type=jnp.float32) + params["bo"][l]
        h = ln(h + attn, params["ln1_g"][l], params["ln1_b"][l])
        ffn = jax.nn.gelu(jnp.einsum("bsh,hf->bsf", h.astype(jnp.bfloat16), params["w1"][l],
                                     preferred_element_type=jnp.float32) + params["b1"][l],
                          approximate=True)
        ffn_out = jnp.einsum("bsf,fh->bsh", ffn.astype(jnp.bfloat16), params["w2"][l],
                             preferred_element_type=jnp.float32) + params["b2"][l]
        h = ln(h + ffn_out, params["ln2_g"][l], params["ln2_b"][l])
    return h


if __name__ == "__main__":
    key = jax.random.PRNGKey(0)
    k_param, k_ids = jax.random.split(key)

    params = _init_params(k_param)

    B, S = 2, 8
    input_ids = jax.random.randint(k_ids, (B, S), 0, VOCAB, dtype=jnp.int32)
    # mask out the last two tokens of the second sequence
    attention_mask = jnp.ones((B, S), jnp.float32).at[1, -2:].set(0.0)

    fwd = jax.jit(functools.partial(hf_encoder_forward, params))
    sentence_rep, last_hidden_state = fwd(input_ids, attention_mask)
    jax.block_until_ready((sentence_rep, last_hidden_state))

    assert sentence_rep.shape == (B, HIDDEN)
    assert last_hidden_state.shape == (B, S, HIDDEN)
    assert bool(jnp.all(jnp.isfinite(last_hidden_state)))
    assert bool(jnp.allclose(sentence_rep, last_hidden_state[:, 0, :]))

    ref = _reference_forward(params, input_ids, attention_mask)
    assert bool(jnp.allclose(last_hidden_state, ref, atol=3e-2, rtol=3e-2))

    print("KERNEL_OK")
</pallas_src>

<mosaic_0001>
module attributes {stable_mosaic.version = 11 : i64} {
  func.func @_encoder_layer_kernel(%arg0: i32, %arg1: memref<16x128xf32, #tpu.memory_space<vmem>>, %arg2: memref<2x8x8xf32, #tpu.memory_space<vmem>>, %arg3: memref<1x128xf32, #tpu.memory_space<vmem>>, %arg4: memref<1x128xf32, #tpu.memory_space<vmem>>, %arg5: memref<1x4x128x32xbf16, #tpu.memory_space<vmem>>, %arg6: memref<1x4x128x32xbf16, #tpu.memory_space<vmem>>, %arg7: memref<1x4x128x32xbf16, #tpu.memory_space<vmem>>, %arg8: memref<1x4x1x32xf32, #tpu.memory_space<vmem>>, %arg9: memref<1x4x1x32xf32, #tpu.memory_space<vmem>>, %arg10: memref<1x4x1x32xf32, #tpu.memory_space<vmem>>, %arg11: memref<1x4x32x128xbf16, #tpu.memory_space<vmem>>, %arg12: memref<1x1x128xf32, #tpu.memory_space<vmem>>, %arg13: memref<1x1x128xf32, #tpu.memory_space<vmem>>, %arg14: memref<1x1x128xf32, #tpu.memory_space<vmem>>, %arg15: memref<1x128x512xbf16, #tpu.memory_space<vmem>>, %arg16: memref<1x1x512xf32, #tpu.memory_space<vmem>>, %arg17: memref<1x512x128xbf16, #tpu.memory_space<vmem>>, %arg18: memref<1x1x128xf32, #tpu.memory_space<vmem>>, %arg19: memref<1x1x128xf32, #tpu.memory_space<vmem>>, %arg20: memref<1x1x128xf32, #tpu.memory_space<vmem>>, %arg21: memref<16x128xf32, #tpu.memory_space<vmem>>, %arg22: memref<16x128xf32, #tpu.memory_space<vmem>>) attributes {dimension_semantics = [#tpu.dimension_semantics<arbitrary>], iteration_bounds = array<i64: 2>, scalar_prefetch = 0 : i64, scratch_operands = 1 : i64, tpu.core_type = #tpu.core_type<tc>, window_params = [{pipeline_mode = #tpu.pipeline_mode<synchronous>, transform_indices = @transform_0, window_bounds = array<i64: 16, 128>}, {pipeline_mode = #tpu.pipeline_mode<synchronous>, transform_indices = @transform_1, window_bounds = array<i64: 2, 8, 8>}, {pipeline_mode = #tpu.pipeline_mode<synchronous>, transform_indices = @transform_2, window_bounds = array<i64: 1, 128>}, {pipeline_mode = #tpu.pipeline_mode<synchronous>, transform_indices = @transform_3, window_bounds = array<i64: 1, 128>}, {transform_indices = @transform_4, window_bounds = array<i64: 1, 4, 128, 32>}, {transform_indices = @transform_5, window_bounds = array<i64: 1, 4, 128, 32>}, {transform_indices = @transform_6, window_bounds = array<i64: 1, 4, 128, 32>}, {transform_indices = @transform_7, window_bounds = array<i64: 1, 4, 1, 32>}, {transform_indices = @transform_8, window_bounds = array<i64: 1, 4, 1, 32>}, {transform_indices = @transform_9, window_bounds = array<i64: 1, 4, 1, 32>}, {transform_indices = @transform_10, window_bounds = array<i64: 1, 4, 32, 128>}, {transform_indices = @transform_11, window_bounds = array<i64: 1, 1, 128>}, {transform_indices = @transform_12, window_bounds = array<i64: 1, 1, 128>}, {transform_indices = @transform_13, window_bounds = array<i64: 1, 1, 128>}, {transform_indices = @transform_14, window_bounds = array<i64: 1, 128, 512>}, {transform_indices = @transform_15, window_bounds = array<i64: 1, 1, 512>}, {transform_indices = @transform_16, window_bounds = array<i64: 1, 512, 128>}, {transform_indices = @transform_17, window_bounds = array<i64: 1, 1, 128>}, {transform_indices = @transform_18, window_bounds = array<i64: 1, 1, 128>}, {transform_indices = @transform_19, window_bounds = array<i64: 1, 1, 128>}, {pipeline_mode = #tpu.pipeline_mode<synchronous>, transform_indices = @transform_20, window_bounds = array<i64: 16, 128>}]} {
    %c0_i32 = arith.constant 0 : i32
    %0 = arith.cmpi eq, %arg0, %c0_i32 : i32
    %1 = arith.extui %0 : i1 to i32
    %c0_i32_0 = arith.constant 0 : i32
    %2 = arith.cmpi ne, %1, %c0_i32_0 : i32
    scf.if %2 {
      %c0_192 = arith.constant 0 : index
      %c0_193 = arith.constant 0 : index
      %282 = vector.load %arg1[%c0_192, %c0_193] : memref<16x128xf32, #tpu.memory_space<vmem>>, vector<16x128xf32>
      %c0_194 = arith.constant 0 : index
      %c0_195 = arith.constant 0 : index
      %283 = vector.load %arg3[%c0_194, %c0_195] : memref<1x128xf32, #tpu.memory_space<vmem>>, vector<1x128xf32>
      %c0_196 = arith.constant 0 : index
      %c0_197 = arith.constant 0 : index
      %284 = vector.load %arg4[%c0_196, %c0_197] : memref<1x128xf32, #tpu.memory_space<vmem>>, vector<1x128xf32>
      %cst_198 = arith.constant dense<0.000000e+00> : vector<16xf32>
      %285 = vector.multi_reduction <add>, %282, %cst_198 [1] : vector<16x128xf32> to vector<16xf32>
      %286 = vector.shape_cast %285 : vector<16xf32> to vector<16x1xf32>
      %cst_199 = arith.constant 1.280000e+02 : f32
      %287 = vector.broadcast %cst_199 : f32 to vector<16x1xf32>
      %288 = arith.divf %286, %287 : vector<16x1xf32>
      %289 = vector.broadcast %288 : vector<16x1xf32> to vector<16x128xf32>
      %290 = arith.subf %282, %289 : vector<16x128xf32>
      %291 = arith.mulf %290, %290 : vector<16x128xf32>
      %cst_200 = arith.constant dense<0.000000e+00> : vector<16xf32>
      %292 = vector.multi_reduction <add>, %291, %cst_200 [1] : vector<16x128xf32> to vector<16xf32>
      %293 = vector.shape_cast %292 : vector<16xf32> to vector<16x1xf32>
      %cst_201 = arith.constant 1.280000e+02 : f32
      %294 = vector.broadcast %cst_201 : f32 to vector<16x1xf32>
      %295 = arith.divf %293, %294 : vector<16x1xf32>
      %cst_202 = arith.constant 9.99999974E-6 : f32
      %296 = vector.broadcast %cst_202 : f32 to vector<16x1xf32>
      %297 = arith.addf %295, %296 : vector<16x1xf32>
      %298 = math.rsqrt %297 : vector<16x1xf32>
      %299 = vector.broadcast %298 : vector<16x1xf32> to vector<16x128xf32>
      %300 = arith.mulf %290, %299 : vector<16x128xf32>
      %301 = vector.broadcast %283 : vector<1x128xf32> to vector<16x128xf32>
      %302 = arith.mulf %300, %301 : vector<16x128xf32>
      %303 = vector.broadcast %284 : vector<1x128xf32> to vector<16x128xf32>
      %304 = arith.addf %302, %303 : vector<16x128xf32>
      %c0_203 = arith.constant 0 : index
      %c0_204 = arith.constant 0 : index
      %305 = vector.load %arg22[%c0_203, %c0_204] : memref<16x128xf32, #tpu.memory_space<vmem>>, vector<16x128xf32>
      tpu.vector_store %arg22[%c0_203, %c0_204], %304 {strides = array<i32>} : memref<16x128xf32, #tpu.memory_space<vmem>>, vector<16x128xf32>,
    } else {
    }
    %c0 = arith.constant 0 : index
    %c0_1 = arith.constant 0 : index
    %3 = vector.load %arg22[%c0, %c0_1] : memref<16x128xf32, #tpu.memory_space<vmem>>, vector<16x128xf32>
    %4 = arith.truncf %3 : vector<16x128xf32> to vector<16x128xbf16>
    %c0_2 = arith.constant 0 : index
    %c0_3 = arith.constant 0 : index
    %c0_4 = arith.constant 0 : index
    %5 = vector.load %arg2[%c0_2, %c0_3, %c0_4] : memref<2x8x8xf32, #tpu.memory_space<vmem>>, vector<2x8x8xf32>
    %cst = arith.constant 0.000000e+00 : f32
    %6 = vector.broadcast %cst : f32 to vector<16x128xf32>
    %c0_5 = arith.constant 0 : index
    %c0_6 = arith.constant 0 : index
    %c0_7 = arith.constant 0 : index
    %c0_8 = arith.constant 0 : index
    %7 = vector.load %arg5[%c0_5, %c0_6, %c0_7, %c0_8] : memref<1x4x128x32xbf16, #tpu.memory_space<vmem>>, vector<1x1x128x32xbf16>
    %8 = vector.shape_cast %7 : vector<1x1x128x32xbf16> to vector<128x32xbf16>
    %cst_9 = arith.constant dense<0.000000e+00> : vector<16x32xf32>
    %9 = tpu.matmul %4, %8, %cst_9 {dimension_numbers = #tpu.dot_dimension_numbers<[1], [0], [0], [1], [0, 0, 1, 1], [], []>} : vector<16x128xbf16>, vector<128x32xbf16>, vector<16x32xf32> -> vector<16x32xf32>
    %c0_10 = arith.constant 0 : index
    %c0_11 = arith.constant 0 : index
    %c0_12 = arith.constant 0 : index
    %c0_13 = arith.constant 0 : index
    %10 = vector.load %arg8[%c0_10, %c0_11, %c0_12, %c0_13] : memref<1x4x1x32xf32, #tpu.memory_space<vmem>>, vector<1x1x1x32xf32>
    %11 = vector.shape_cast %10 : vector<1x1x1x32xf32> to vector<1x32xf32>
    %12 = vector.broadcast %11 : vector<1x32xf32> to vector<16x32xf32>
    %13 = arith.addf %9, %12 : vector<16x32xf32>
    %c0_14 = arith.constant 0 : index
    %c0_15 = arith.constant 0 : index
    %c0_16 = arith.constant 0 : index
    %c0_17 = arith.constant 0 : index
    %14 = vector.load %arg6[%c0_14, %c0_15, %c0_16, %c0_17] : memref<1x4x128x32xbf16, #tpu.memory_space<vmem>>, vector<1x1x128x32xbf16>
    %15 = vector.shape_cast %14 : vector<1x1x128x32xbf16> to vector<128x32xbf16>
    %cst_18 = arith.constant dense<0.000000e+00> : vector<16x32xf32>
    %16 = tpu.matmul %4, %15, %cst_18 {dimension_numbers = #tpu.dot_dimension_numbers<[1], [0], [0], [1], [0, 0, 1, 1], [], []>} : vector<16x128xbf16>, vector<128x32xbf16>, vector<16x32xf32> -> vector<16x32xf32>
    %c0_19 = arith.constant 0 : index
    %c0_20 = arith.constant 0 : index
    %c0_21 = arith.constant 0 : index
    %c0_22 = arith.constant 0 : index
    %17 = vector.load %arg9[%c0_19, %c0_20, %c0_21, %c0_22] : memref<1x4x1x32xf32, #tpu.memory_space<vmem>>, vector<1x1x1x32xf32>
    %18 = vector.shape_cast %17 : vector<1x1x1x32xf32> to vector<1x32xf32>
    %19 = vector.broadcast %18 : vector<1x32xf32> to vector<16x32xf32>
    %20 = arith.addf %16, %19 : vector<16x32xf32>
    %c0_23 = arith.constant 0 : index
    %c0_24 = arith.constant 0 : index
    %c0_25 = arith.constant 0 : index
    %c0_26 = arith.constant 0 : index
    %21 = vector.load %arg7[%c0_23, %c0_24, %c0_25, %c0_26] : memref<1x4x128x32xbf16, #tpu.memory_space<vmem>>, vector<1x1x128x32xbf16>
    %22 = vector.shape_cast %21 : vector<1x1x128x32xbf16> to vector<128x32xbf16>
    %cst_27 = arith.constant dense<0.000000e+00> : vector<16x32xf32>
    %23 = tpu.matmul %4, %22, %cst_27 {dimension_numbers = #tpu.dot_dimension_numbers<[1], [0], [0], [1], [0, 0, 1, 1], [], []>} : vector<16x128xbf16>, vector<128x32xbf16>, vector<16x32xf32> -> vector<16x32xf32>
    %c0_28 = arith.constant 0 : index
    %c0_29 = arith.constant 0 : index
    %c0_30 = arith.constant 0 : index
    %c0_31 = arith.constant 0 : index
    %24 = vector.load %arg10[%c0_28, %c0_29, %c0_30, %c0_31] : memref<1x4x1x32xf32, #tpu.memory_space<vmem>>, vector<1x1x1x32xf32>
    %25 = vector.shape_cast %24 : vector<1x1x1x32xf32> to vector<1x32xf32>
    %26 = vector.broadcast %25 : vector<1x32xf32> to vector<16x32xf32>
    %27 = arith.addf %23, %26 : vector<16x32xf32>
    %28 = vector.shape_cast %13 : vector<16x32xf32> to vector<2x8x32xf32>
    %29 = arith.truncf %28 : vector<2x8x32xf32> to vector<2x8x32xbf16>
    %30 = vector.shape_cast %20 : vector<16x32xf32> to vector<2x8x32xf32>
    %31 = arith.truncf %30 : vector<2x8x32xf32> to vector<2x8x32xbf16>
    %32 = vector.shape_cast %27 : vector<16x32xf32> to vector<2x8x32xf32>
    %33 = arith.truncf %32 : vector<2x8x32xf32> to vector<2x8x32xbf16>
    "tpu.trace_start"() <{level = 10 : i32, message = "bqd,bkd->bqk"}> : () -> ()
    %cst_32 = arith.constant dense<0.000000e+00> : vector<2x8x8xf32>
    %34 = tpu.matmul %29, %31, %cst_32 {dimension_numbers = #tpu.dot_dimension_numbers<[2], [2], [1], [1], [0, 0, 0, 1, 1, 1], [0], [0]>} : vector<2x8x32xbf16>, vector<2x8x32xbf16>, vector<2x8x8xf32> -> vector<2x8x8xf32>
    "tpu.trace_stop"() : () -> ()
    %35 = arith.addf %34, %5 : vector<2x8x8xf32>
    %cst_33 = arith.constant dense<0xFF800000> : vector<2x8xf32>
    %36 = vector.multi_reduction <maximumf>, %35, %cst_33 [2] : vector<2x8x8xf32> to vector<2x8xf32>
    %37 = vector.shape_cast %36 : vector<2x8xf32> to vector<2x8x1xf32>
    %38 = vector.broadcast %37 : vector<2x8x1xf32> to vector<2x8x8xf32>
    %39 = arith.subf %35, %38 : vector<2x8x8xf32>
    %40 = math.exp %39 : vector<2x8x8xf32>
    %cst_34 = arith.constant dense<0.000000e+00> : vector<2x8xf32>
    %41 = vector.multi_reduction <add>, %40, %cst_34 [2] : vector<2x8x8xf32> to vector<2x8xf32>
    %42 = vector.shape_cast %41 : vector<2x8xf32> to vector<2x8x1xf32>
    %43 = tpu.reciprocal %42 {approx = true} : vector<2x8x1xf32> -> vector<2x8x1xf32>
    %44 = vector.broadcast %43 : vector<2x8x1xf32> to vector<2x8x8xf32>
    %45 = arith.mulf %40, %44 : vector<2x8x8xf32>
    %46 = arith.truncf %45 : vector<2x8x8xf32> to vector<2x8x8xbf16>
    "tpu.trace_start"() <{level = 10 : i32, message = "bqk,bkd->bqd"}> : () -> ()
    %cst_35 = arith.constant dense<0.000000e+00> : vector<2x8x32xf32>
    %47 = tpu.matmul %46, %33, %cst_35 {dimension_numbers = #tpu.dot_dimension_numbers<[2], [1], [1], [2], [0, 0, 0, 1, 1, 2], [0], [0]>} : vector<2x8x8xbf16>, vector<2x8x32xbf16>, vector<2x8x32xf32> -> vector<2x8x32xf32>
    "tpu.trace_stop"() : () -> ()
    %48 = vector.shape_cast %47 : vector<2x8x32xf32> to vector<16x32xf32>
    %49 = arith.truncf %48 : vector<16x32xf32> to vector<16x32xbf16>
    %c0_36 = arith.constant 0 : index
    %c0_37 = arith.constant 0 : index
    %c0_38 = arith.constant 0 : index
    %c0_39 = arith.constant 0 : index
    %50 = vector.load %arg11[%c0_36, %c0_37, %c0_38, %c0_39] : memref<1x4x32x128xbf16, #tpu.memory_space<vmem>>, vector<1x1x32x128xbf16>
    %51 = vector.shape_cast %50 : vector<1x1x32x128xbf16> to vector<32x128xbf16>
    %cst_40 = arith.constant dense<0.000000e+00> : vector<16x128xf32>
    %52 = tpu.matmul %49, %51, %cst_40 {dimension_numbers = #tpu.dot_dimension_numbers<[1], [0], [0], [1], [0, 0, 1, 1], [], []>} : vector<16x32xbf16>, vector<32x128xbf16>, vector<16x128xf32> -> vector<16x128xf32>
    %53 = arith.addf %6, %52 : vector<16x128xf32>
    %c0_41 = arith.constant 0 : index
    %c1 = arith.constant 1 : index
    %c0_42 = arith.constant 0 : index
    %c0_43 = arith.constant 0 : index
    %54 = vector.load %arg5[%c0_41, %c1, %c0_42, %c0_43] : memref<1x4x128x32xbf16, #tpu.memory_space<vmem>>, vector<1x1x128x32xbf16>
    %55 = vector.shape_cast %54 : vector<1x1x128x32xbf16> to vector<128x32xbf16>
    %cst_44 = arith.constant dense<0.000000e+00> : vector<16x32xf32>
    %56 = tpu.matmul %4, %55, %cst_44 {dimension_numbers = #tpu.dot_dimension_numbers<[1], [0], [0], [1], [0, 0, 1, 1], [], []>} : vector<16x128xbf16>, vector<128x32xbf16>, vector<16x32xf32> -> vector<16x32xf32>
    %c0_45 = arith.constant 0 : index
    %c1_46 = arith.constant 1 : index
    %c0_47 = arith.constant 0 : index
    %c0_48 = arith.constant 0 : index
    %57 = vector.load %arg8[%c0_45, %c1_46, %c0_47, %c0_48] : memref<1x4x1x32xf32, #tpu.memory_space<vmem>>, vector<1x1x1x32xf32>
    %58 = vector.shape_cast %57 : vector<1x1x1x32xf32> to vector<1x32xf32>
    %59 = vector.broadcast %58 : vector<1x32xf32> to vector<16x32xf32>
    %60 = arith.addf %56, %59 : vector<16x32xf32>
    %c0_49 = arith.constant 0 : index
    %c1_50 = arith.constant 1 : index
    %c0_51 = arith.constant 0 : index
    %c0_52 = arith.constant 0 : index
    %61 = vector.load %arg6[%c0_49, %c1_50, %c0_51, %c0_52] : memref<1x4x128x32xbf16, #tpu.memory_space<vmem>>, vector<1x1x128x32xbf16>
    %62 = vector.shape_cast %61 : vector<1x1x128x32xbf16> to vector<128x32xbf16>
    %cst_53 = arith.constant dense<0.000000e+00> : vector<16x32xf32>
    %63 = tpu.matmul %4, %62, %cst_53 {dimension_numbers = #tpu.dot_dimension_numbers<[1], [0], [0], [1], [0, 0, 1, 1], [], []>} : vector<16x128xbf16>, vector<128x32xbf16>, vector<16x32xf32> -> vector<16x32xf32>
    %c0_54 = arith.constant 0 : index
    %c1_55 = arith.constant 1 : index
    %c0_56 = arith.constant 0 : index
    %c0_57 = arith.constant 0 : index
    %64 = vector.load %arg9[%c0_54, %c1_55, %c0_56, %c0_57] : memref<1x4x1x32xf32, #tpu.memory_space<vmem>>, vector<1x1x1x32xf32>
    %65 = vector.shape_cast %64 : vector<1x1x1x32xf32> to vector<1x32xf32>
    %66 = vector.broadcast %65 : vector<1x32xf32> to vector<16x32xf32>
    %67 = arith.addf %63, %66 : vector<16x32xf32>
    %c0_58 = arith.constant 0 : index
    %c1_59 = arith.constant 1 : index
    %c0_60 = arith.constant 0 : index
    %c0_61 = arith.constant 0 : index
    %68 = vector.load %arg7[%c0_58, %c1_59, %c0_60, %c0_61] : memref<1x4x128x32xbf16, #tpu.memory_space<vmem>>, vector<1x1x128x32xbf16>
    %69 = vector.shape_cast %68 : vector<1x1x128x32xbf16> to vector<128x32xbf16>
    %cst_62 = arith.constant dense<0.000000e+00> : vector<16x32xf32>
    %70 = tpu.matmul %4, %69, %cst_62 {dimension_numbers = #tpu.dot_dimension_numbers<[1], [0], [0], [1], [0, 0, 1, 1], [], []>} : vector<16x128xbf16>, vector<128x32xbf16>, vector<16x32xf32> -> vector<16x32xf32>
    %c0_63 = arith.constant 0 : index
    %c1_64 = arith.constant 1 : index
    %c0_65 = arith.constant 0 : index
    %c0_66 = arith.constant 0 : index
    %71 = vector.load %arg10[%c0_63, %c1_64, %c0_65, %c0_66] : memref<1x4x1x32xf32, #tpu.memory_space<vmem>>, vector<1x1x1x32xf32>
    %72 = vector.shape_cast %71 : vector<1x1x1x32xf32> to vector<1x32xf32>
    %73 = vector.broadcast %72 : vector<1x32xf32> to vector<16x32xf32>
    %74 = arith.addf %70, %73 : vector<16x32xf32>
    %75 = vector.shape_cast %60 : vector<16x32xf32> to vector<2x8x32xf32>
    %76 = arith.truncf %75 : vector<2x8x32xf32> to vector<2x8x32xbf16>
    %77 = vector.shape_cast %67 : vector<16x32xf32> to vector<2x8x32xf32>
    %78 = arith.truncf %77 : vector<2x8x32xf32> to vector<2x8x32xbf16>
    %79 = vector.shape_cast %74 : vector<16x32xf32> to vector<2x8x32xf32>
    %80 = arith.truncf %79 : vector<2x8x32xf32> to vector<2x8x32xbf16>
    "tpu.trace_start"() <{level = 10 : i32, message = "bqd,bkd->bqk"}> : () -> ()
    %cst_67 = arith.constant dense<0.000000e+00> : vector<2x8x8xf32>
    %81 = tpu.matmul %76, %78, %cst_67 {dimension_numbers = #tpu.dot_dimension_numbers<[2], [2], [1], [1], [0, 0, 0, 1, 1, 1], [0], [0]>} : vector<2x8x32xbf16>, vector<2x8x32xbf16>, vector<2x8x8xf32> -> vector<2x8x8xf32>
    "tpu.trace_stop"() : () -> ()
    %82 = arith.addf %81, %5 : vector<2x8x8xf32>
    %cst_68 = arith.constant dense<0xFF800000> : vector<2x8xf32>
    %83 = vector.multi_reduction <maximumf>, %82, %cst_68 [2] : vector<2x8x8xf32> to vector<2x8xf32>
    %84 = vector.shape_cast %83 : vector<2x8xf32> to vector<2x8x1xf32>
    %85 = vector.broadcast %84 : vector<2x8x1xf32> to vector<2x8x8xf32>
    %86 = arith.subf %82, %85 : vector<2x8x8xf32>
    %87 = math.exp %86 : vector<2x8x8xf32>
    %cst_69 = arith.constant dense<0.000000e+00> : vector<2x8xf32>
    %88 = vector.multi_reduction <add>, %87, %cst_69 [2] : vector<2x8x8xf32> to vector<2x8xf32>
    %89 = vector.shape_cast %88 : vector<2x8xf32> to vector<2x8x1xf32>
    %90 = tpu.reciprocal %89 {approx = true} : vector<2x8x1xf32> -> vector<2x8x1xf32>
    %91 = vector.broadcast %90 : vector<2x8x1xf32> to vector<2x8x8xf32>
    %92 = arith.mulf %87, %91 : vector<2x8x8xf32>
    %93 = arith.truncf %92 : vector<2x8x8xf32> to vector<2x8x8xbf16>
    "tpu.trace_start"() <{level = 10 : i32, message = "bqk,bkd->bqd"}> : () -> ()
    %cst_70 = arith.constant dense<0.000000e+00> : vector<2x8x32xf32>
    %94 = tpu.matmul %93, %80, %cst_70 {dimension_numbers = #tpu.dot_dimension_numbers<[2], [1], [1], [2], [0, 0, 0, 1, 1, 2], [0], [0]>} : vector<2x8x8xbf16>, vector<2x8x32xbf16>, vector<2x8x32xf32> -> vector<2x8x32xf32>
    "tpu.trace_stop"() : () -> ()
    %95 = vector.shape_cast %94 : vector<2x8x32xf32> to vector<16x32xf32>
    %96 = arith.truncf %95 : vector<16x32xf32> to vector<16x32xbf16>
    %c0_71 = arith.constant 0 : index
    %c1_72 = arith.constant 1 : index
    %c0_73 = arith.constant 0 : index
    %c0_74 = arith.constant 0 : index
    %97 = vector.load %arg11[%c0_71, %c1_72, %c0_73, %c0_74] : memref<1x4x32x128xbf16, #tpu.memory_space<vmem>>, vector<1x1x32x128xbf16>
    %98 = vector.shape_cast %97 : vector<1x1x32x128xbf16> to vector<32x128xbf16>
    %cst_75 = arith.constant dense<0.000000e+00> : vector<16x128xf32>
    %99 = tpu.matmul %96, %98, %cst_75 {dimension_numbers = #tpu.dot_dimension_numbers<[1], [0], [0], [1], [0, 0, 1, 1], [], []>} : vector<16x32xbf16>, vector<32x128xbf16>, vector<16x128xf32> -> vector<16x128xf32>
    %100 = arith.addf %53, %99 : vector<16x128xf32>
    %c0_76 = arith.constant 0 : index
    %c2 = arith.constant 2 : index
    %c0_77 = arith.constant 0 : index
    %c0_78 = arith.constant 0 : index
    %101 = vector.load %arg5[%c0_76, %c2, %c0_77, %c0_78] : memref<1x4x128x32xbf16, #tpu.memory_space<vmem>>, vector<1x1x128x32xbf16>
    %102 = vector.shape_cast %101 : vector<1x1x128x32xbf16> to vector<128x32xbf16>
    %cst_79 = arith.constant dense<0.000000e+00> : vector<16x32xf32>
    %103 = tpu.matmul %4, %102, %cst_79 {dimension_numbers = #tpu.dot_dimension_numbers<[1], [0], [0], [1], [0, 0, 1, 1], [], []>} : vector<16x128xbf16>, vector<128x32xbf16>, vector<16x32xf32> -> vector<16x32xf32>
    %c0_80 = arith.constant 0 : index
    %c2_81 = arith.constant 2 : index
    %c0_82 = arith.constant 0 : index
    %c0_83 = arith.constant 0 : index
    %104 = vector.load %arg8[%c0_80, %c2_81, %c0_82, %c0_83] : memref<1x4x1x32xf32, #tpu.memory_space<vmem>>, vector<1x1x1x32xf32>
    %105 = vector.shape_cast %104 : vector<1x1x1x32xf32> to vector<1x32xf32>
    %106 = vector.broadcast %105 : vector<1x32xf32> to vector<16x32xf32>
    %107 = arith.addf %103, %106 : vector<16x32xf32>
    %c0_84 = arith.constant 0 : index
    %c2_85 = arith.constant 2 : index
    %c0_86 = arith.constant 0 : index
    %c0_87 = arith.constant 0 : index
    %108 = vector.load %arg6[%c0_84, %c2_85, %c0_86, %c0_87] : memref<1x4x128x32xbf16, #tpu.memory_space<vmem>>, vector<1x1x128x32xbf16>
    %109 = vector.shape_cast %108 : vector<1x1x128x32xbf16> to vector<128x32xbf16>
    %cst_88 = arith.constant dense<0.000000e+00> : vector<16x32xf32>
    %110 = tpu.matmul %4, %109, %cst_88 {dimension_numbers = #tpu.dot_dimension_numbers<[1], [0], [0], [1], [0, 0, 1, 1], [], []>} : vector<16x128xbf16>, vector<128x32xbf16>, vector<16x32xf32> -> vector<16x32xf32>
    %c0_89 = arith.constant 0 : index
    %c2_90 = arith.constant 2 : index
    %c0_91 = arith.constant 0 : index
    %c0_92 = arith.constant 0 : index
    %111 = vector.load %arg9[%c0_89, %c2_90, %c0_91, %c0_92] : memref<1x4x1x32xf32, #tpu.memory_space<vmem>>, vector<1x1x1x32xf32>
    %112 = vector.shape_cast %111 : vector<1x1x1x32xf32> to vector<1x32xf32>
    %113 = vector.broadcast %112 : vector<1x32xf32> to vector<16x32xf32>
    %114 = arith.addf %110, %113 : vector<16x32xf32>
    %c0_93 = arith.constant 0 : index
    %c2_94 = arith.constant 2 : index
    %c0_95 = arith.constant 0 : index
    %c0_96 = arith.constant 0 : index
    %115 = vector.load %arg7[%c0_93, %c2_94, %c0_95, %c0_96] : memref<1x4x128x32xbf16, #tpu.memory_space<vmem>>, vector<1x1x128x32xbf16>
    %116 = vector.shape_cast %115 : vector<1x1x128x32xbf16> to vector<128x32xbf16>
    %cst_97 = arith.constant dense<0.000000e+00> : vector<16x32xf32>
    %117 = tpu.matmul %4, %116, %cst_97 {dimension_numbers = #tpu.dot_dimension_numbers<[1], [0], [0], [1], [0, 0, 1, 1], [], []>} : vector<16x128xbf16>, vector<128x32xbf16>, vector<16x32xf32> -> vector<16x32xf32>
    %c0_98 = arith.constant 0 : index
    %c2_99 = arith.constant 2 : index
    %c0_100 = arith.constant 0 : index
    %c0_101 = arith.constant 0 : index
    %118 = vector.load %arg10[%c0_98, %c2_99, %c0_100, %c0_101] : memref<1x4x1x32xf32, #tpu.memory_space<vmem>>, vector<1x1x1x32xf32>
    %119 = vector.shape_cast %118 : vector<1x1x1x32xf32> to vector<1x32xf32>
    %120 = vector.broadcast %119 : vector<1x32xf32> to vector<16x32xf32>
    %121 = arith.addf %117, %120 : vector<16x32xf32>
    %122 = vector.shape_cast %107 : vector<16x32xf32> to vector<2x8x32xf32>
    %123 = arith.truncf %122 : vector<2x8x32xf32> to vector<2x8x32xbf16>
    %124 = vector.shape_cast %114 : vector<16x32xf32> to vector<2x8x32xf32>
    %125 = arith.truncf %124 : vector<2x8x32xf32> to vector<2x8x32xbf16>
    %126 = vector.shape_cast %121 : vector<16x32xf32> to vector<2x8x32xf32>
    %127 = arith.truncf %126 : vector<2x8x32xf32> to vector<2x8x32xbf16>
    "tpu.trace_start"() <{level = 10 : i32, message = "bqd,bkd->bqk"}> : () -> ()
    %cst_102 = arith.constant dense<0.000000e+00> : vector<2x8x8xf32>
    %128 = tpu.matmul %123, %125, %cst_102 {dimension_numbers = #tpu.dot_dimension_numbers<[2], [2], [1], [1], [0, 0, 0, 1, 1, 1], [0], [0]>} : vector<2x8x32xbf16>, vector<2x8x32xbf16>, vector<2x8x8xf32> -> vector<2x8x8xf32>
    "tpu.trace_stop"() : () -> ()
    %129 = arith.addf %128, %5 : vector<2x8x8xf32>
    %cst_103 = arith.constant dense<0xFF800000> : vector<2x8xf32>
    %130 = vector.multi_reduction <maximumf>, %129, %cst_103 [2] : vector<2x8x8xf32> to vector<2x8xf32>
    %131 = vector.shape_cast %130 : vector<2x8xf32> to vector<2x8x1xf32>
    %132 = vector.broadcast %131 : vector<2x8x1xf32> to vector<2x8x8xf32>
    %133 = arith.subf %129, %132 : vector<2x8x8xf32>
    %134 = math.exp %133 : vector<2x8x8xf32>
    %cst_104 = arith.constant dense<0.000000e+00> : vector<2x8xf32>
    %135 = vector.multi_reduction <add>, %134, %cst_104 [2] : vector<2x8x8xf32> to vector<2x8xf32>
    %136 = vector.shape_cast %135 : vector<2x8xf32> to vector<2x8x1xf32>
    %137 = tpu.reciprocal %136 {approx = true} : vector<2x8x1xf32> -> vector<2x8x1xf32>
    %138 = vector.broadcast %137 : vector<2x8x1xf32> to vector<2x8x8xf32>
    %139 = arith.mulf %134, %138 : vector<2x8x8xf32>
    %140 = arith.truncf %139 : vector<2x8x8xf32> to vector<2x8x8xbf16>
    "tpu.trace_start"() <{level = 10 : i32, message = "bqk,bkd->bqd"}> : () -> ()
    %cst_105 = arith.constant dense<0.000000e+00> : vector<2x8x32xf32>
    %141 = tpu.matmul %140, %127, %cst_105 {dimension_numbers = #tpu.dot_dimension_numbers<[2], [1], [1], [2], [0, 0, 0, 1, 1, 2], [0], [0]>} : vector<2x8x8xbf16>, vector<2x8x32xbf16>, vector<2x8x32xf32> -> vector<2x8x32xf32>
    "tpu.trace_stop"() : () -> ()
    %142 = vector.shape_cast %141 : vector<2x8x32xf32> to vector<16x32xf32>
    %143 = arith.truncf %142 : vector<16x32xf32> to vector<16x32xbf16>
    %c0_106 = arith.constant 0 : index
    %c2_107 = arith.constant 2 : index
    %c0_108 = arith.constant 0 : index
    %c0_109 = arith.constant 0 : index
    %144 = vector.load %arg11[%c0_106, %c2_107, %c0_108, %c0_109] : memref<1x4x32x128xbf16, #tpu.memory_space<vmem>>, vector<1x1x32x128xbf16>
    %145 = vector.shape_cast %144 : vector<1x1x32x128xbf16> to vector<32x128xbf16>
    %cst_110 = arith.constant dense<0.000000e+00> : vector<16x128xf32>
    %146 = tpu.matmul %143, %145, %cst_110 {dimension_numbers = #tpu.dot_dimension_numbers<[1], [0], [0], [1], [0, 0, 1, 1], [], []>} : vector<16x32xbf16>, vector<32x128xbf16>, vector<16x128xf32> -> vector<16x128xf32>
    %147 = arith.addf %100, %146 : vector<16x128xf32>
    %c0_111 = arith.constant 0 : index
    %c3 = arith.constant 3 : index
    %c0_112 = arith.constant 0 : index
    %c0_113 = arith.constant 0 : index
    %148 = vector.load %arg5[%c0_111, %c3, %c0_112, %c0_113] : memref<1x4x128x32xbf16, #tpu.memory_space<vmem>>, vector<1x1x128x32xbf16>
    %149 = vector.shape_cast %148 : vector<1x1x128x32xbf16> to vector<128x32xbf16>
    %cst_114 = arith.constant dense<0.000000e+00> : vector<16x32xf32>
    %150 = tpu.matmul %4, %149, %cst_114 {dimension_numbers = #tpu.dot_dimension_numbers<[1], [0], [0], [1], [0, 0, 1, 1], [], []>} : vector<16x128xbf16>, vector<128x32xbf16>, vector<16x32xf32> -> vector<16x32xf32>
    %c0_115 = arith.constant 0 : index
    %c3_116 = arith.constant 3 : index
    %c0_117 = arith.constant 0 : index
    %c0_118 = arith.constant 0 : index
    %151 = vector.load %arg8[%c0_115, %c3_116, %c0_117, %c0_118] : memref<1x4x1x32xf32, #tpu.memory_space<vmem>>, vector<1x1x1x32xf32>
    %152 = vector.shape_cast %151 : vector<1x1x1x32xf32> to vector<1x32xf32>
    %153 = vector.broadcast %152 : vector<1x32xf32> to vector<16x32xf32>
    %154 = arith.addf %150, %153 : vector<16x32xf32>
    %c0_119 = arith.constant 0 : index
    %c3_120 = arith.constant 3 : index
    %c0_121 = arith.constant 0 : index
    %c0_122 = arith.constant 0 : index
    %155 = vector.load %arg6[%c0_119, %c3_120, %c0_121, %c0_122] : memref<1x4x128x32xbf16, #tpu.memory_space<vmem>>, vector<1x1x128x32xbf16>
    %156 = vector.shape_cast %155 : vector<1x1x128x32xbf16> to vector<128x32xbf16>
    %cst_123 = arith.constant dense<0.000000e+00> : vector<16x32xf32>
    %157 = tpu.matmul %4, %156, %cst_123 {dimension_numbers = #tpu.dot_dimension_numbers<[1], [0], [0], [1], [0, 0, 1, 1], [], []>} : vector<16x128xbf16>, vector<128x32xbf16>, vector<16x32xf32> -> vector<16x32xf32>
    %c0_124 = arith.constant 0 : index
    %c3_125 = arith.constant 3 : index
    %c0_126 = arith.constant 0 : index
    %c0_127 = arith.constant 0 : index
    %158 = vector.load %arg9[%c0_124, %c3_125, %c0_126, %c0_127] : memref<1x4x1x32xf32, #tpu.memory_space<vmem>>, vector<1x1x1x32xf32>
    %159 = vector.shape_cast %158 : vector<1x1x1x32xf32> to vector<1x32xf32>
    %160 = vector.broadcast %159 : vector<1x32xf32> to vector<16x32xf32>
    %161 = arith.addf %157, %160 : vector<16x32xf32>
    %c0_128 = arith.constant 0 : index
    %c3_129 = arith.constant 3 : index
    %c0_130 = arith.constant 0 : index
    %c0_131 = arith.constant 0 : index
    %162 = vector.load %arg7[%c0_128, %c3_129, %c0_130, %c0_131] : memref<1x4x128x32xbf16, #tpu.memory_space<vmem>>, vector<1x1x128x32xbf16>
    %163 = vector.shape_cast %162 : vector<1x1x128x32xbf16> to vector<128x32xbf16>
    %cst_132 = arith.constant dense<0.000000e+00> : vector<16x32xf32>
    %164 = tpu.matmul %4, %163, %cst_132 {dimension_numbers = #tpu.dot_dimension_numbers<[1], [0], [0], [1], [0, 0, 1, 1], [], []>} : vector<16x128xbf16>, vector<128x32xbf16>, vector<16x32xf32> -> vector<16x32xf32>
    %c0_133 = arith.constant 0 : index
    %c3_134 = arith.constant 3 : index
    %c0_135 = arith.constant 0 : index
    %c0_136 = arith.constant 0 : index
    %165 = vector.load %arg10[%c0_133, %c3_134, %c0_135, %c0_136] : memref<1x4x1x32xf32, #tpu.memory_space<vmem>>, vector<1x1x1x32xf32>
    %166 = vector.shape_cast %165 : vector<1x1x1x32xf32> to vector<1x32xf32>
    %167 = vector.broadcast %166 : vector<1x32xf32> to vector<16x32xf32>
    %168 = arith.addf %164, %167 : vector<16x32xf32>
    %169 = vector.shape_cast %154 : vector<16x32xf32> to vector<2x8x32xf32>
    %170 = arith.truncf %169 : vector<2x8x32xf32> to vector<2x8x32xbf16>
    %171 = vector.shape_cast %161 : vector<16x32xf32> to vector<2x8x32xf32>
    %172 = arith.truncf %171 : vector<2x8x32xf32> to vector<2x8x32xbf16>
    %173 = vector.shape_cast %168 : vector<16x32xf32> to vector<2x8x32xf32>
    %174 = arith.truncf %173 : vector<2x8x32xf32> to vector<2x8x32xbf16>
    "tpu.trace_start"() <{level = 10 : i32, message = "bqd,bkd->bqk"}> : () -> ()
    %cst_137 = arith.constant dense<0.000000e+00> : vector<2x8x8xf32>
    %175 = tpu.matmul %170, %172, %cst_137 {dimension_numbers = #tpu.dot_dimension_numbers<[2], [2], [1], [1], [0, 0, 0, 1, 1, 1], [0], [0]>} : vector<2x8x32xbf16>, vector<2x8x32xbf16>, vector<2x8x8xf32> -> vector<2x8x8xf32>
    "tpu.trace_stop"() : () -> ()
    %176 = arith.addf %175, %5 : vector<2x8x8xf32>
    %cst_138 = arith.constant dense<0xFF800000> : vector<2x8xf32>
    %177 = vector.multi_reduction <maximumf>, %176, %cst_138 [2] : vector<2x8x8xf32> to vector<2x8xf32>
    %178 = vector.shape_cast %177 : vector<2x8xf32> to vector<2x8x1xf32>
    %179 = vector.broadcast %178 : vector<2x8x1xf32> to vector<2x8x8xf32>
    %180 = arith.subf %176, %179 : vector<2x8x8xf32>
    %181 = math.exp %180 : vector<2x8x8xf32>
    %cst_139 = arith.constant dense<0.000000e+00> : vector<2x8xf32>
    %182 = vector.multi_reduction <add>, %181, %cst_139 [2] : vector<2x8x8xf32> to vector<2x8xf32>
    %183 = vector.shape_cast %182 : vector<2x8xf32> to vector<2x8x1xf32>
    %184 = tpu.reciprocal %183 {approx = true} : vector<2x8x1xf32> -> vector<2x8x1xf32>
    %185 = vector.broadcast %184 : vector<2x8x1xf32> to vector<2x8x8xf32>
    %186 = arith.mulf %181, %185 : vector<2x8x8xf32>
    %187 = arith.truncf %186 : vector<2x8x8xf32> to vector<2x8x8xbf16>
    "tpu.trace_start"() <{level = 10 : i32, message = "bqk,bkd->bqd"}> : () -> ()
    %cst_140 = arith.constant dense<0.000000e+00> : vector<2x8x32xf32>
    %188 = tpu.matmul %187, %174, %cst_140 {dimension_numbers = #tpu.dot_dimension_numbers<[2], [1], [1], [2], [0, 0, 0, 1, 1, 2], [0], [0]>} : vector<2x8x8xbf16>, vector<2x8x32xbf16>, vector<2x8x32xf32> -> vector<2x8x32xf32>
    "tpu.trace_stop"() : () -> ()
    %189 = vector.shape_cast %188 : vector<2x8x32xf32> to vector<16x32xf32>
    %190 = arith.truncf %189 : vector<16x32xf32> to vector<16x32xbf16>
    %c0_141 = arith.constant 0 : index
    %c3_142 = arith.constant 3 : index
    %c0_143 = arith.constant 0 : index
    %c0_144 = arith.constant 0 : index
    %191 = vector.load %arg11[%c0_141, %c3_142, %c0_143, %c0_144] : memref<1x4x32x128xbf16, #tpu.memory_space<vmem>>, vector<1x1x32x128xbf16>
    %192 = vector.shape_cast %191 : vector<1x1x32x128xbf16> to vector<32x128xbf16>
    %cst_145 = arith.constant dense<0.000000e+00> : vector<16x128xf32>
    %193 = tpu.matmul %190, %192, %cst_145 {dimension_numbers = #tpu.dot_dimension_numbers<[1], [0], [0], [1], [0, 0, 1, 1], [], []>} : vector<16x32xbf16>, vector<32x128xbf16>, vector<16x128xf32> -> vector<16x128xf32>
    %194 = arith.addf %147, %193 : vector<16x128xf32>
    %c0_146 = arith.constant 0 : index
    %c0_147 = arith.constant 0 : index
    %c0_148 = arith.constant 0 : index
    %195 = vector.load %arg12[%c0_146, %c0_147, %c0_148] : memref<1x1x128xf32, #tpu.memory_space<vmem>>, vector<1x1x128xf32>
    %196 = vector.shape_cast %195 : vector<1x1x128xf32> to vector<1x128xf32>
    %197 = vector.broadcast %196 : vector<1x128xf32> to vector<16x128xf32>
    %198 = arith.addf %194, %197 : vector<16x128xf32>
    %199 = arith.addf %3, %198 : vector<16x128xf32>
    %c0_149 = arith.constant 0 : index
    %c0_150 = arith.constant 0 : index
    %c0_151 = arith.constant 0 : index
    %200 = vector.load %arg13[%c0_149, %c0_150, %c0_151] : memref<1x1x128xf32, #tpu.memory_space<vmem>>, vector<1x1x128xf32>
    %201 = vector.shape_cast %200 : vector<1x1x128xf32> to vector<1x128xf32>
    %c0_152 = arith.constant 0 : index
    %c0_153 = arith.constant 0 : index
    %c0_154 = arith.constant 0 : index
    %202 = vector.load %arg14[%c0_152, %c0_153, %c0_154] : memref<1x1x128xf32, #tpu.memory_space<vmem>>, vector<1x1x128xf32>
    %203 = vector.shape_cast %202 : vector<1x1x128xf32> to vector<1x128xf32>
    %cst_155 = arith.constant dense<0.000000e+00> : vector<16xf32>
    %204 = vector.multi_reduction <add>, %199, %cst_155 [1] : vector<16x128xf32> to vector<16xf32>
    %205 = vector.shape_cast %204 : vector<16xf32> to vector<16x1xf32>
    %cst_156 = arith.constant 1.280000e+02 : f32
    %206 = vector.broadcast %cst_156 : f32 to vector<16x1xf32>
    %207 = arith.divf %205, %206 : vector<16x1xf32>
    %208 = vector.broadcast %207 : vector<16x1xf32> to vector<16x128xf32>
    %209 = arith.subf %199, %208 : vector<16x128xf32>
    %210 = arith.mulf %209, %209 : vector<16x128xf32>
    %cst_157 = arith.constant dense<0.000000e+00> : vector<16xf32>
    %211 = vector.multi_reduction <add>, %210, %cst_157 [1] : vector<16x128xf32> to vector<16xf32>
    %212 = vector.shape_cast %211 : vector<16xf32> to vector<16x1xf32>
    %cst_158 = arith.constant 1.280000e+02 : f32
    %213 = vector.broadcast %cst_158 : f32 to vector<16x1xf32>
    %214 = arith.divf %212, %213 : vector<16x1xf32>
    %cst_159 = arith.constant 9.99999974E-6 : f32
    %215 = vector.broadcast %cst_159 : f32 to vector<16x1xf32>
    %216 = arith.addf %214, %215 : vector<16x1xf32>
    %217 = math.rsqrt %216 : vector<16x1xf32>
    %218 = vector.broadcast %217 : vector<16x1xf32> to vector<16x128xf32>
    %219 = arith.mulf %209, %218 : vector<16x128xf32>
    %220 = vector.broadcast %201 : vector<1x128xf32> to vector<16x128xf32>
    %221 = arith.mulf %219, %220 : vector<16x128xf32>
    %222 = vector.broadcast %203 : vector<1x128xf32> to vector<16x128xf32>
    %223 = arith.addf %221, %222 : vector<16x128xf32>
    %224 = arith.truncf %223 : vector<16x128xf32> to vector<16x128xbf16>
    %c0_160 = arith.constant 0 : index
    %c0_161 = arith.constant 0 : index
    %c0_162 = arith.constant 0 : index
    %225 = vector.load %arg15[%c0_160, %c0_161, %c0_162] : memref<1x128x512xbf16, #tpu.memory_space<vmem>>, vector<1x128x512xbf16>
    %226 = vector.shape_cast %225 : vector<1x128x512xbf16> to vector<128x512xbf16>
    %cst_163 = arith.constant dense<0.000000e+00> : vector<16x512xf32>
    %227 = tpu.matmul %224, %226, %cst_163 {dimension_numbers = #tpu.dot_dimension_numbers<[1], [0], [0], [1], [0, 0, 1, 1], [], []>} : vector<16x128xbf16>, vector<128x512xbf16>, vector<16x512xf32> -> vector<16x512xf32>
    %c0_164 = arith.constant 0 : index
    %c0_165 = arith.constant 0 : index
    %c0_166 = arith.constant 0 : index
    %228 = vector.load %arg16[%c0_164, %c0_165, %c0_166] : memref<1x1x512xf32, #tpu.memory_space<vmem>>, vector<1x1x512xf32>
    %229 = vector.shape_cast %228 : vector<1x1x512xf32> to vector<1x512xf32>
    %230 = vector.broadcast %229 : vector<1x512xf32> to vector<16x512xf32>
    %231 = arith.addf %227, %230 : vector<16x512xf32>
    %232 = arith.mulf %231, %231 : vector<16x512xf32>
    %233 = arith.mulf %231, %232 : vector<16x512xf32>
    %cst_167 = arith.constant 4.471500e-02 : f32
    %234 = vector.broadcast %cst_167 : f32 to vector<16x512xf32>
    %235 = arith.mulf %234, %233 : vector<16x512xf32>
    %236 = arith.addf %231, %235 : vector<16x512xf32>
    %cst_168 = arith.constant 0.797884583 : f32
    %237 = vector.broadcast %cst_168 : f32 to vector<16x512xf32>
    %238 = arith.mulf %237, %236 : vector<16x512xf32>
    %239 = math.tanh %238 : vector<16x512xf32>
    %cst_169 = arith.constant 1.000000e+00 : f32
    %240 = vector.broadcast %cst_169 : f32 to vector<16x512xf32>
    %241 = arith.addf %240, %239 : vector<16x512xf32>
    %cst_170 = arith.constant 5.000000e-01 : f32
    %242 = vector.broadcast %cst_170 : f32 to vector<16x512xf32>
    %243 = arith.mulf %242, %241 : vector<16x512xf32>
    %244 = arith.mulf %231, %243 : vector<16x512xf32>
    %245 = arith.truncf %244 : vector<16x512xf32> to vector<16x512xbf16>
    %c0_171 = arith.constant 0 : index
    %c0_172 = arith.constant 0 : index
    %c0_173 = arith.constant 0 : index
    %246 = vector.load %arg17[%c0_171, %c0_172, %c0_173] : memref<1x512x128xbf16, #tpu.memory_space<vmem>>, vector<1x512x128xbf16>
    %247 = vector.shape_cast %246 : vector<1x512x128xbf16> to vector<512x128xbf16>
    %cst_174 = arith.constant dense<0.000000e+00> : vector<16x128xf32>
    %248 = tpu.matmul %245, %247, %cst_174 {dimension_numbers = #tpu.dot_dimension_numbers<[1], [0], [0], [1], [0, 0, 1, 1], [], []>} : vector<16x512xbf16>, vector<512x128xbf16>, vector<16x128xf32> -> vector<16x128xf32>
    %c0_175 = arith.constant 0 : index
    %c0_176 = arith.constant 0 : index
    %c0_177 = arith.constant 0 : index
    %249 = vector.load %arg18[%c0_175, %c0_176, %c0_177] : memref<1x1x128xf32, #tpu.memory_space<vmem>>, vector<1x1x128xf32>
    %250 = vector.shape_cast %249 : vector<1x1x128xf32> to vector<1x128xf32>
    %251 = vector.broadcast %250 : vector<1x128xf32> to vector<16x128xf32>
    %252 = arith.addf %248, %251 : vector<16x128xf32>
    %253 = arith.addf %223, %252 : vector<16x128xf32>
    %c0_178 = arith.constant 0 : index
    %c0_179 = arith.constant 0 : index
    %c0_180 = arith.constant 0 : index
    %254 = vector.load %arg19[%c0_178, %c0_179, %c0_180] : memref<1x1x128xf32, #tpu.memory_space<vmem>>, vector<1x1x128xf32>
    %255 = vector.shape_cast %254 : vector<1x1x128xf32> to vector<1x128xf32>
    %c0_181 = arith.constant 0 : index
    %c0_182 = arith.constant 0 : index
    %c0_183 = arith.constant 0 : index
    %256 = vector.load %arg20[%c0_181, %c0_182, %c0_183] : memref<1x1x128xf32, #tpu.memory_space<vmem>>, vector<1x1x128xf32>
    %257 = vector.shape_cast %256 : vector<1x1x128xf32> to vector<1x128xf32>
    %cst_184 = arith.constant dense<0.000000e+00> : vector<16xf32>
    %258 = vector.multi_reduction <add>, %253, %cst_184 [1] : vector<16x128xf32> to vector<16xf32>
    %259 = vector.shape_cast %258 : vector<16xf32> to vector<16x1xf32>
    %cst_185 = arith.constant 1.280000e+02 : f32
    %260 = vector.broadcast %cst_185 : f32 to vector<16x1xf32>
    %261 = arith.divf %259, %260 : vector<16x1xf32>
    %262 = vector.broadcast %261 : vector<16x1xf32> to vector<16x128xf32>
    %263 = arith.subf %253, %262 : vector<16x128xf32>
    %264 = arith.mulf %263, %263 : vector<16x128xf32>
    %cst_186 = arith.constant dense<0.000000e+00> : vector<16xf32>
    %265 = vector.multi_reduction <add>, %264, %cst_186 [1] : vector<16x128xf32> to vector<16xf32>
    %266 = vector.shape_cast %265 : vector<16xf32> to vector<16x1xf32>
    %cst_187 = arith.constant 1.280000e+02 : f32
    %267 = vector.broadcast %cst_187 : f32 to vector<16x1xf32>
    %268 = arith.divf %266, %267 : vector<16x1xf32>
    %cst_188 = arith.constant 9.99999974E-6 : f32
    %269 = vector.broadcast %cst_188 : f32 to vector<16x1xf32>
    %270 = arith.addf %268, %269 : vector<16x1xf32>
    %271 = math.rsqrt %270 : vector<16x1xf32>
    %272 = vector.broadcast %271 : vector<16x1xf32> to vector<16x128xf32>
    %273 = arith.mulf %263, %272 : vector<16x128xf32>
    %274 = vector.broadcast %255 : vector<1x128xf32> to vector<16x128xf32>
    %275 = arith.mulf %273, %274 : vector<16x128xf32>
    %276 = vector.broadcast %257 : vector<1x128xf32> to vector<16x128xf32>
    %277 = arith.addf %275, %276 : vector<16x128xf32>
    %c0_189 = arith.constant 0 : index
    %c0_190 = arith.constant 0 : index
    %278 = vector.load %arg22[%c0_189, %c0_190] : memref<16x128xf32, #tpu.memory_space<vmem>>, vector<16x128xf32>
    tpu.vector_store %arg22[%c0_189, %c0_190], %277 {strides = array<i32>} : memref<16x128xf32, #tpu.memory_space<vmem>>, vector<16x128xf32>,
    %c1_i32 = arith.constant 1 : i32
    %279 = arith.cmpi eq, %arg0, %c1_i32 : i32
    %280 = arith.extui %279 : i1 to i32
    %c0_i32_191 = arith.constant 0 : i32
    %281 = arith.cmpi ne, %280, %c0_i32_191 : i32
    scf.if %281 {
      %c0_192 = arith.constant 0 : index
      %c0_193 = arith.constant 0 : index
      %282 = vector.load %arg21[%c0_192, %c0_193] : memref<16x128xf32, #tpu.memory_space<vmem>>, vector<16x128xf32>
      tpu.vector_store %arg21[%c0_192, %c0_193], %277 {strides = array<i32>} : memref<16x128xf32, #tpu.memory_space<vmem>>, vector<16x128xf32>,
    } else {
    }
    return
  }
  func.func @transform_0(%arg0: i32) -> (i32, i32) {
    %c0_i32 = arith.constant 0 : i32
    %c0_i32_0 = arith.constant 0 : i32
    %c0_i32_1 = arith.constant 0 : i32
    return %c0_i32, %c0_i32_0 : i32, i32
  }
  func.func @transform_1(%arg0: i32) -> (i32, i32, i32) {
    %c0_i32 = arith.constant 0 : i32
    %c0_i32_0 = arith.constant 0 : i32
    %c0_i32_1 = arith.constant 0 : i32
    %c0_i32_2 = arith.constant 0 : i32
    return %c0_i32, %c0_i32_0, %c0_i32_1 : i32, i32, i32
  }
  func.func @transform_2(%arg0: i32) -> (i32, i32) {
    %c0_i32 = arith.constant 0 : i32
    %c0_i32_0 = arith.constant 0 : i32
    %c0_i32_1 = arith.constant 0 : i32
    return %c0_i32, %c0_i32_0 : i32, i32
  }
  func.func @transform_3(%arg0: i32) -> (i32, i32) {
    %c0_i32 = arith.constant 0 : i32
    %c0_i32_0 = arith.constant 0 : i32
    %c0_i32_1 = arith.constant 0 : i32
    return %c0_i32, %c0_i32_0 : i32, i32
  }
  func.func @transform_4(%arg0: i32) -> (i32, i32, i32, i32) {
    %c0_i32 = arith.constant 0 : i32
    %c0_i32_0 = arith.constant 0 : i32
    %c0_i32_1 = arith.constant 0 : i32
    %c0_i32_2 = arith.constant 0 : i32
    return %arg0, %c0_i32, %c0_i32_0, %c0_i32_1 : i32, i32, i32, i32
  }
  func.func @transform_5(%arg0: i32) -> (i32, i32, i32, i32) {
    %c0_i32 = arith.constant 0 : i32
    %c0_i32_0 = arith.constant 0 : i32
    %c0_i32_1 = arith.constant 0 : i32
    %c0_i32_2 = arith.constant 0 : i32
    return %arg0, %c0_i32, %c0_i32_0, %c0_i32_1 : i32, i32, i32, i32
  }
  func.func @transform_6(%arg0: i32) -> (i32, i32, i32, i32) {
    %c0_i32 = arith.constant 0 : i32
    %c0_i32_0 = arith.constant 0 : i32
    %c0_i32_1 = arith.constant 0 : i32
    %c0_i32_2 = arith.constant 0 : i32
    return %arg0, %c0_i32, %c0_i32_0, %c0_i32_1 : i32, i32, i32, i32
  }
  func.func @transform_7(%arg0: i32) -> (i32, i32, i32, i32) {
    %c0_i32 = arith.constant 0 : i32
    %c0_i32_0 = arith.constant 0 : i32
    %c0_i32_1 = arith.constant 0 : i32
    %c0_i32_2 = arith.constant 0 : i32
    return %arg0, %c0_i32, %c0_i32_0, %c0_i32_1 : i32, i32, i32, i32
  }
  func.func @transform_8(%arg0: i32) -> (i32, i32, i32, i32) {
    %c0_i32 = arith.constant 0 : i32
    %c0_i32_0 = arith.constant 0 : i32
    %c0_i32_1 = arith.constant 0 : i32
    %c0_i32_2 = arith.constant 0 : i32
    return %arg0, %c0_i32, %c0_i32_0, %c0_i32_1 : i32, i32, i32, i32
  }
  func.func @transform_9(%arg0: i32) -> (i32, i32, i32, i32) {
    %c0_i32 = arith.constant 0 : i32
    %c0_i32_0 = arith.constant 0 : i32
    %c0_i32_1 = arith.constant 0 : i32
    %c0_i32_2 = arith.constant 0 : i32
    return %arg0, %c0_i32, %c0_i32_0, %c0_i32_1 : i32, i32, i32, i32
  }
  func.func @transform_10(%arg0: i32) -> (i32, i32, i32, i32) {
    %c0_i32 = arith.constant 0 : i32
    %c0_i32_0 = arith.constant 0 : i32
    %c0_i32_1 = arith.constant 0 : i32
    %c0_i32_2 = arith.constant 0 : i32
    return %arg0, %c0_i32, %c0_i32_0, %c0_i32_1 : i32, i32, i32, i32
  }
  func.func @transform_11(%arg0: i32) -> (i32, i32, i32) {
    %c0_i32 = arith.constant 0 : i32
    %c0_i32_0 = arith.constant 0 : i32
    %c0_i32_1 = arith.constant 0 : i32
    return %arg0, %c0_i32, %c0_i32_0 : i32, i32, i32
  }
  func.func @transform_12(%arg0: i32) -> (i32, i32, i32) {
    %c0_i32 = arith.constant 0 : i32
    %c0_i32_0 = arith.constant 0 : i32
    %c0_i32_1 = arith.constant 0 : i32
    return %arg0, %c0_i32, %c0_i32_0 : i32, i32, i32
  }
  func.func @transform_13(%arg0: i32) -> (i32, i32, i32) {
    %c0_i32 = arith.constant 0 : i32
    %c0_i32_0 = arith.constant 0 : i32
    %c0_i32_1 = arith.constant 0 : i32
    return %arg0, %c0_i32, %c0_i32_0 : i32, i32, i32
  }
  func.func @transform_14(%arg0: i32) -> (i32, i32, i32) {
    %c0_i32 = arith.constant 0 : i32
    %c0_i32_0 = arith.constant 0 : i32
    %c0_i32_1 = arith.constant 0 : i32
    return %arg0, %c0_i32, %c0_i32_0 : i32, i32, i32
  }
  func.func @transform_15(%arg0: i32) -> (i32, i32, i32) {
    %c0_i32 = arith.constant 0 : i32
    %c0_i32_0 = arith.constant 0 : i32
    %c0_i32_1 = arith.constant 0 : i32
    return %arg0, %c0_i32, %c0_i32_0 : i32, i32, i32
  }
  func.func @transform_16(%arg0: i32) -> (i32, i32, i32) {
    %c0_i32 = arith.constant 0 : i32
    %c0_i32_0 = arith.constant 0 : i32
    %c0_i32_1 = arith.constant 0 : i32
    return %arg0, %c0_i32, %c0_i32_0 : i32, i32, i32
  }
  func.func @transform_17(%arg0: i32) -> (i32, i32, i32) {
    %c0_i32 = arith.constant 0 : i32
    %c0_i32_0 = arith.constant 0 : i32
    %c0_i32_1 = arith.constant 0 : i32
    return %arg0, %c0_i32, %c0_i32_0 : i32, i32, i32
  }
  func.func @transform_18(%arg0: i32) -> (i32, i32, i32) {
    %c0_i32 = arith.constant 0 : i32
    %c0_i32_0 = arith.constant 0 : i32
    %c0_i32_1 = arith.constant 0 : i32
    return %arg0, %c0_i32, %c0_i32_0 : i32, i32, i32
  }
  func.func @transform_19(%arg0: i32) -> (i32, i32, i32) {
    %c0_i32 = arith.constant 0 : i32
    %c0_i32_0 = arith.constant 0 : i32
    %c0_i32_1 = arith.constant 0 : i32
    return %arg0, %c0_i32, %c0_i32_0 : i32, i32, i32
  }
  func.func @transform_20(%arg0: i32) -> (i32, i32) {
    %c0_i32 = arith.constant 0 : i32
    %c0_i32_0 = arith.constant 0 : i32
    %c0_i32_1 = arith.constant 0 : i32
    return %c0_i32, %c0_i32_0 : i32, i32
  }
}

</mosaic_0001>

<bundles_post_ra>
// kernel: hf_encoder_forward.1
= control target key start
LH: loop header
LB: loop body
LE: loop exit
PB: predicated region body
PF: predicated region fallthrough
CT: control target
= control target key end

     0   :  { %s6794_s0 = inlined_call_operand.vmem [shape: f32[16,128], index: 0, kind: input, shape index: {}]   ;;  %s6795_s1 = inlined_call_operand.vmem [shape: f32[2,8,8], index: 1, kind: input, shape index: {}]   ;;  %s6796_s2 = inlined_call_operand.vmem [shape: f32[1,128], index: 2, kind: input, shape index: {}]   ;;  %s6797_s3 = inlined_call_operand.vmem [shape: f32[1,128], index: 3, kind: input, shape index: {}]   ;;  %s6798_s4 = inlined_call_operand.hbm [shape: bf16[2,4,128,32], index: 4, kind: input, shape index: {}]   ;;  %s6799_s5 = inlined_call_operand.hbm [shape: bf16[2,4,128,32], index: 5, kind: input, shape index: {}]   ;;  %s6800_s6 = inlined_call_operand.vmem [shape: bf16[2,4,128,32], index: 6, kind: input, shape index: {}]   ;;  %s6801_s7 = inlined_call_operand.vmem [shape: f32[2,4,1,32], index: 7, kind: input, shape index: {}, may-alias: {7,8,9}]   ;;  %s6802_s8 = inlined_call_operand.vmem [shape: f32[2,4,1,32], index: 8, kind: input, shape index: {}, may-alias: {7,8,9}]   ;;  %s6803_s9 = inlined_call_operand.vmem [shape: f32[2,4,1,32], index: 9, kind: input, shape index: {}, may-alias: {7,8,9}]   ;;  %s6804_s10 = inlined_call_operand.vmem [shape: bf16[2,4,32,128], index: 10, kind: input, shape index: {}]   ;;  %s6805_s11 = inlined_call_operand.vmem [shape: f32[2,1,128], index: 11, kind: input, shape index: {}, may-alias: {11,13,17,19}]   ;;  %s6806_s12 = inlined_call_operand.vmem [shape: f32[2,1,128], index: 12, kind: input, shape index: {}, may-alias: {12,18}]   ;;  %s6807_s13 = inlined_call_operand.vmem [shape: f32[2,1,128], index: 13, kind: input, shape index: {}, may-alias: {11,13,17,19}]   ;;  %s6808_s14 = inlined_call_operand.vmem [shape: bf16[2,128,512], index: 14, kind: input, shape index: {}]   ;;  %s6809_s15 = inlined_call_operand.vmem [shape: f32[2,1,512], index: 15, kind: input, shape index: {}]   ;;  %s6810_s16 = inlined_call_operand.vmem [shape: bf16[2,512,128], index: 16, kind: input, shape index: {}]   ;;  %s6811_s17 = inlined_call_operand.vmem [shape: f32[2,1,128], index: 17, kind: input, shape index: {}, may-alias: {11,13,17,19}]   ;;  %s6812_s18 = inlined_call_operand.vmem [shape: f32[2,1,128], index: 18, kind: input, shape index: {}, may-alias: {12,18}]   ;;  %s6813_s19 = inlined_call_operand.vmem [shape: f32[2,1,128], index: 19, kind: input, shape index: {}, may-alias: {11,13,17,19}]   ;;  %s6814_s20 = inlined_call_operand.vmem [shape: f32[16,128], index: 20, kind: output, shape index: {}]  }
   0x1   :  { %6829 = sst [smem:[#allocation15_spill]] %s6794_s0 }
   0x2   :  { %6830 = sst [smem:[#allocation16_spill]] %s6795_s1 }
   0x3   :  { %6831 = sst [smem:[#allocation17_spill]] %s6796_s2 }
   0x4   :  { %6832 = sst [smem:[#allocation18_spill]] %s6797_s3 }
   0x5   :  { %6833 = sst [smem:[#allocation19_spill]] %s6798_s4 }
   0x6   :  { %6834 = sst [smem:[#allocation20_spill]] %s6799_s5 }
   0x7   :  { %6835 = sst [smem:[#allocation21_spill]] %s6800_s6 }
   0x8   :  { %6836 = sst [smem:[#allocation22_spill]] %s6801_s7 }
   0x9   :  { %6837 = sst [smem:[#allocation23_spill]] %s6802_s8 }
   0xa   :  { %6838 = sst [smem:[#allocation24_spill]] %s6803_s9 }
   0xb   :  { %6839 = sst [smem:[#allocation25_spill]] %s6804_s10 }
   0xc   :  { %6840 = sst [smem:[#allocation26_spill]] %s6806_s12 }
   0xd   :  { %6841 = sst [smem:[#allocation27_spill]] %s6807_s13 }
   0xe   :  { %6842 = sst [smem:[#allocation28_spill]] %s6808_s14 }
   0xf   :  { %6843 = sst [smem:[#allocation29_spill]] %s6811_s17 }
  0x10   :  { %6844 = sst [smem:[#allocation30_spill]] %s6812_s18 }
  0x11   :  { %6845 = sst [smem:[#allocation31_spill]] %s6813_s19 }
  0x12   :  { %6846 = sst [smem:[#allocation32_spill]] %s6814_s20 }
  0x13   :  { %25 = vsyncpa [#allocation4], 0 }
  0x14   :  { %27 = vsyncpa [#allocation4 + $0x1], 0 }
  0x15   :  { %28 = vsyncpa [#allocation6], 0 }
  0x16   :  { %30 = vsyncpa [#allocation6 + $0x1], 0  ;;  %s5950_s1 = smov 0   ;;  %s5952_s22 = smov 0  }
  0x17   :  { %s5954_s23 = smov 0   ;;  %s5956_s24 = smov 0  }
  0x18 LB: > { %6847 = sst [smem:[#allocation9_spill]] %s5828_s22  ;;  %s5969_s2 = sadd.s32 4294967295, %s5836_s24   ;;  %s5836_s24 = sphi %s5956_s24, %s6892_s24   ;;  %s5832_s23 = sphi %s5954_s23, %s6895_s23   ;;  %s5828_s22 = sphi %s5952_s22, %s6894_s22   ;;  %s5824_s1 = sphi %s5950_s1, %s6893_s1  }
  0x19   : > { %6848 = sst [smem:[#allocation10_spill]] %s5832_s23  ;;  %s5972_s25 = sadd.s32 1, %s5836_s24  }
  0x1a   : > { %6849 = sst [smem:[#allocation11_spill]] %s5972_s25  ;;  %s124_s3 = ssub.s32 %s5836_s24, %s5972_s25 }
  0x1b   : > { %s127_s26 = sadd.s32 1, %s5832_s23  ;;  %p125_p0 = scmp.eq.s32.totalorder %s124_s3, 0 }
  0x1c   : > { %p134_p1 = scmp.ne.s32.totalorder %s5832_s23, %s5828_s22  ;;  %p135_p2 = scmp.eq.s32.totalorder %s5836_s24, 0 }
  0x1d   : > { %p140_p3 = scmp.ne.s32.totalorder %s5828_s22, %s5824_s1  ;;  %p141_p5 = scmp.eq.s32.totalorder %s5969_s2, 0 }
  0x1e   : > { %s5982_s27 = scalar_select %p125_p0, %s5832_s23, %s127_s26  }
  0x1f   : > { %p136_p4 = por %p135_p2, %p134_p1  ;;  %p5452_p6 = scmp.lt.s32.totalorder %s5836_s24, 2 }
  0x20   : > { %6850 = sst [smem:[#allocation12_spill]] %s5982_s27  ;;  %p5986_p7 = por %p141_p5, %p140_p3 }
  0x21   : > { %s5991_s4 = sand.u32 1, %s5832_s23   ;;  %s6823_s30 = sshll.u32 %s5836_s24, 12 }
  0x22   : > { %s6851_s28 = scalar_select %p5986_p7, 1, 0 }
  0x23   : > { %s6822_s29 = sshll.u32 %s5991_s4, 8  ;;  %s6852_s1 = sld [smem:[#allocation19_spill]] }
  0x24   : > { %s591_s27 = scalar_lea.vmem [#allocation3], %s6822_s29  ;;  %p6006_p8 = pnand %p5452_p6, %p136_p4 }
  0x25   : > { %s598_s25 = sshll.u32 %s591_s27, 4  ;;  %s6004_s25 = int_to_ptr.vmem [resolvable:$true] %s598_s25 }
  0x26   : > { %p5740_p11 = pneg %p6006_p8 }
  0x29   : > { %s6853_s3 = smov %s6852_s1  ;;  %s6000_s26 = scalar_lea.hbm %s6852_s1, %s6823_s30 }
  0x2a   : > { %s5738_s0 = scalar_lea.hbm %s6000_s26, 4096  ;;  %s5743_s1 = scalar_lea.hbm %s6853_s3, 8192 }
  0x2b   : > { %p5739_p10 = scmp.ne.s32.totalorder %s6000_s26, %s5738_s0  ;;  %p5744_p0 = scmp.lt.u32.totalorder %s6000_s26, %s6853_s3 }
  0x2c   : > { %p5745_p1 = scmp.lt.u32.totalorder %s5743_s1, %s5738_s0  ;;  %p5747_p3 = scmp.lt.u32.totalorder %s5738_s0, %s6000_s26 }
  0x2d   : > { %p5741_p12 = pnand %p5740_p11, %p5739_p10 }
  0x2e   : > { %p5746_p2 = por %p5745_p1, %p5744_p0 }
  0x2f   : > { %p5742_p13 = pneg %p5741_p12 }
  0x30   : > { %p5748_p4 = por %p5747_p3, %p5746_p2 }
  0x32   : > { %p5749_p5 = pnand %p5748_p4, %p5742_p13 }
  0x34   : > { %5752 = shalt.err (!%p5749_p5)
}
  0x35   : > { %s5753_s20 = scalar_lea.vmem %s6004_s25, 4096  ;;  %s5838_s21 = smov [#allocation3]  }
  0x36   : > { %p5754_p6 = scmp.ne.s32.totalorder %s6004_s25, %s5753_s20  ;;  %s5758_s27 = sshll.u32 %s5838_s21, 4  ;;  %s5759_s27 = int_to_ptr.vmem [resolvable:$false] %s5758_s27 }
  0x37   : > { %s5760_s29 = scalar_lea.vmem %s5759_s27, 8192  ;;  %p5761_p9 = scmp.lt.s32.totalorder %s6004_s25, %s5759_s27 }
  0x38   : > { %p5756_p10 = pnand %p5754_p6, %p5740_p11  ;;  %p5762_p0 = scmp.lt.s32.totalorder %s5760_s29, %s5753_s20 }
  0x3a   : > { %p5757_p12 = pneg %p5756_p10  ;;  %p5763_p1 = por %p5762_p0, %p5761_p9 }
  0x3c   : > { %p5764_p2 = pnand %p5763_p1, %p5757_p12 }
  0x3e   : > { %5767 = shalt.err (!%p5764_p2)
}
  0x3f   : > { %s5839_s30 = smov 64   ;;  %s5840_s0 = smov 4  }
  0x40   : > { %s6855_s20 = scalar_lea.sflag [#allocation4], %s5991_s4  ;;  %p723_p9 = scmp.lt.s32.totalorder %s5836_s24, 3 }
  0x41   : > { %5448 = dma.hbm_to_vmem [thread:$0]  (!%p6006_p8), %s6000_s26, 4096, %s6004_s25, %s6855_s20, %s5839_s30, %s5839_s30, %s5840_s0  }
  0x42   : > { %s6856_s1 = sshll.u32 %s5836_s24, 12  ;;  %s6857_s5 = sld [smem:[#allocation20_spill]] }
  0x43   : > { %p6858_p13 = scmp.ge.s32.totalorder %s5836_s24, 1  ;;  %s6860_s19 = sshll.u32 %s5991_s4, 8 }
  0x44   : > { %s612_s18 = scalar_lea.vmem [#allocation5], %s6860_s19  ;;  %s609_s25 = scalar_lea.sflag [#allocation6], %s5991_s4 }
  0x45   : > { %p6052_p3 = pnand %p6858_p13, %p723_p9  ;;  %s619_s17 = sshll.u32 %s612_s18, 4  ;;  %s6058_s17 = int_to_ptr.vmem [resolvable:$true] %s619_s17 }
  0x48   : > { %s6048_s29 = scalar_lea.hbm %s6857_s5, %s6856_s1  ;;  %s5773_s1 = scalar_lea.hbm %s6857_s5, 8192 }
  0x49   : > { %s5768_s26 = scalar_lea.hbm %s6048_s29, 4096  ;;  %p5774_p10 = scmp.lt.u32.totalorder %s6048_s29, %s6857_s5 }
  0x4a   : > { %p5769_p4 = scmp.ne.s32.totalorder %s6048_s29, %s5768_s26  ;;  %p5775_p12 = scmp.lt.u32.totalorder %s5773_s1, %s5768_s26 }
  0x4b   : > { %p5777_p1 = scmp.lt.u32.totalorder %s5768_s26, %s6048_s29 }
  0x4c   : > { %p5771_p5 = pnand %p5769_p4, %p5740_p11  ;;  %p5776_p0 = por %p5775_p12, %p5774_p10 }
  0x4e   : > { %p5772_p6 = pneg %p5771_p5  ;;  %p5778_p2 = por %p5777_p1, %p5776_p0 }
  0x50   : > { %p5779_p9 = pnand %p5778_p2, %p5772_p6 }
  0x52   : > { %5782 = shalt.err (!%p5779_p9)
}
  0x53   : > { %s5783_s18 = scalar_lea.vmem %s6058_s17, 4096  ;;  %s5841_s19 = smov [#allocation5]  }
  0x54   : > { %p5784_p13 = scmp.ne.s32.totalorder %s6058_s17, %s5783_s18  ;;  %s5788_s24 = sshll.u32 %s5841_s19, 4  ;;  %s5789_s24 = int_to_ptr.vmem [resolvable:$false] %s5788_s24 }
  0x55   : > { %s5790_s20 = scalar_lea.vmem %s5789_s24, 8192  ;;  %p5791_p7 = scmp.lt.s32.totalorder %s6058_s17, %s5789_s24 }
  0x56   : > { %p5786_p4 = pnand %p5784_p13, %p5740_p11  ;;  %p5792_p10 = scmp.lt.s32.totalorder %s5790_s20, %s5783_s18 }
  0x58   : > { %p5787_p5 = pneg %p5786_p4  ;;  %p5793_p12 = por %p5792_p10, %p5791_p7 }
  0x5a   : > { %p5794_p0 = pnand %p5793_p12, %p5787_p5 }
  0x5c   : > { %5797 = shalt.err (!%p5794_p0)
}
  0x5d   : > { %5451 = dma.hbm_to_vmem [thread:$0]  (!%p6006_p8), %s6048_s29, 4096, %s6058_s17, %s609_s25, %s5839_s30, %s5839_s30, %s5840_s0  }
  0x5e   : > { %727 = sbr.rel (%p6052_p3) target bundleno = 5572 (0x15c4), region = 100 }
  0x65   : > { %s729_s26 = sand.u32 1, %s5828_s22   ;;  %p6861_p7 = scmp.ne.s32.totalorder %s6851_s28, 0 }
  0x66   : > { %s4480_s1 = sshll.u32 %s729_s26, 8  ;;  %s730_s21 = scalar_lea.sflag [#allocation4], %s729_s26 }
  0x67   : > { %s6092_s27 = scalar_lea.vmem [#allocation3], %s4480_s1 }
  0x68   : > { %5815 = dma.done.wait (%p6861_p7), %s730_s21, 4096  }
  0x69   : > { %5817 = vsyncadd (%p6861_p7), %s730_s21, 4294963200  ;;  %s739_s23 = scalar_lea.sflag [#allocation6], %s729_s26  ;;  %s6098_s4 = scalar_lea.vmem [#allocation5], %s4480_s1 }
  0x6a   : > { %5819 = dma.done.wait (%p6861_p7), %s739_s23, 4096  }
  0x6b   : > { %5821 = vsyncadd (%p6861_p7), %s739_s23, 4294963200  ;;  %p853_p8 = scmp.lt.s32.totalorder %s5969_s2, 1  ;;  %s6862_s6 = sld [smem:[#allocation21_spill]] }
  0x6c   : > { %s6864_s7 = sld [smem:[#allocation22_spill]]  ;;  %s6865_s8 = sld [smem:[#allocation23_spill]] }
  0x6d   : > { %s6106_s17 = scalar_select %p853_p8, %s5969_s2, 1 }
  0x6e   : > { %s6866_s9 = sld [smem:[#allocation24_spill]]  ;;  %s6868_s10 = sld [smem:[#allocation25_spill]] }
  0x6f   : > { %s4873_s3 = sshll.u32 %s6106_s17, 8  ;;  %s6110_s30 = sshll.u32 %s6106_s17, 2 }
  0x70   : > { %s4874_s0 = sshll.u32 %s6106_s17, 6  ;;  %s6871_s14 = sld [smem:[#allocation28_spill]] }
  0x71   : > { %s6115_s29 = scalar_lea.vmem %s6862_s6, %s4873_s3  ;;  %s6872_s24 = sld [smem:[#allocation29_spill]] }
  0x72   : > { %6863 = sst [smem:[#allocation13_spill]] %s6115_s29  ;;  %s6121_s19 = scalar_lea.vmem %s6864_s7, %s6110_s30 }
  0x73   : > { %s6127_s26 = scalar_lea.vmem %s6865_s8, %s6110_s30  ;;  %s6873_s1 = sld [smem:[#allocation30_spill]] }
  0x74   : > { %s6133_s23 = scalar_lea.vmem %s6866_s9, %s6110_s30  ;;  %s6143_s25 = scalar_lea.vmem %s6868_s10, %s4874_s0 }
  0x75   : > { %6867 = sst [smem:[#allocation14_spill]] %s6133_s23  ;;  %s6165_s0 = scalar_lea.vmem %s6810_s16, %s4873_s3 }
  0x76   : > { %s6156_s23 = scalar_lea.vmem %s6871_s14, %s4873_s3  ;;  %s6874_s14 = sld [smem:[#allocation31_spill]] }
  0x77   : > { %s900_s10 = scalar_lea.vmem %s6872_s24, %s6106_s17  ;;  %p4494_p11 = scmp.ne.s32.totalorder %s5969_s2, 0 }
  0x78   : > { %s6875_s22 = sld [smem:[#allocation15_spill]] (!%p4494_p11)  ;;  %s6877_s24 = sld [smem:[#allocation17_spill]] (!%p4494_p11) }
  0x79   : > { %s903_s13 = scalar_lea.vmem %s6873_s1, %s6106_s17  ;;  %911 = sbr.rel (%p4494_p11) target bundleno = 443 (0x1bb), region = 112 }
  0x7a   : > { %s6878_s18 = sld [smem:[#allocation18_spill]] (!%p4494_p11) }
  0x7c   : > { %s906_s12 = scalar_lea.vmem %s6874_s14, %s6106_s17 }
  0x7e   : > { %s6876_s29 = smov (!%p4494_p11), %s6875_s22  ;;  %v912_v0 = vld [vmem:[%s6875_s22] sm:$0xff] (!%p4494_p11) }
  0x7f   : > { %916 = vadd.xlane.f32.xlu0 (!%p4494_p11), %v912_v0  ;;  %v913_v1 = vld [vmem:[%s6876_s29 + $0x8] sm:$0xff] (!%p4494_p11)  ;;  %v4495_v17 = vld [vmem:[%s6877_s24] ss:$0 sm:$0xff] (!%p4494_p11) }
  0x80   : > { %v4496_v19 = vld [vmem:[%s6878_s18] ss:$0 sm:$0xff] }
  0x83   : > { %918 = vadd.xlane.f32.xlu0 %v913_v1 }
 0x10c   : > { %v917_v2 = vpop.xlane.xlu0 %916 }
 0x10d   : > { %v921_v3 = vmul.f32 0.0078125, %v917_v2 }
 0x10f   : > { %v923_v4 = vsub.f32 %v912_v0, %v921_v3 }
 0x110   : > { %v919_v5 = vpop.xlane.xlu0 %918 }
 0x111   : > { %v922_v6 = vmul.f32 0.0078125, %v919_v5  ;;  %v925_v7 = vmul.f32 %v923_v4, %v923_v4 }
 0x113   : > { %v924_v8 = vsub.f32 %v913_v1, %v922_v6  ;;  %927 = vadd.xlane.f32.xlu1 %v925_v7 }
 0x115   : > { %v926_v9 = vmul.f32 %v924_v8, %v924_v8 }
 0x117   : > { %929 = vadd.xlane.f32.xlu1 %v926_v9 }
 0x1a0   : > { %v928_v10 = vpop.xlane.xlu1 %927 }
 0x1a1   : > { %v931_v11 = vmul.f32 0.0078125, %v928_v10 }
 0x1a3   : > { %v933_v12 = vadd.f32 1e-05, %v931_v11 }
 0x1a4   : > { %v930_v13 = vpop.xlane.xlu1 %929 }
 0x1a5   : > { %5490 = vrsqrt.f32 %v933_v12  ;;  %v932_v14 = vmul.f32 0.0078125, %v930_v13 }
 0x1a7   : > { %v934_v15 = vadd.f32 1e-05, %v932_v14 }
 0x1a9   : > { %5492 = vrsqrt.f32 %v934_v15 }
 0x1af   : > { %v5491_v16 = vpop.eup %5490 }
 0x1b0   : > { %v937_v18 = vmul.f32 %v5491_v16, %v923_v4 }
 0x1b2   : > { %v945_v20 = vmul.f32 %v4495_v17, %v937_v18 }
 0x1b3   : > { %v5493_v21 = vpop.eup %5492 }
 0x1b4   : > { %v953_v22 = vadd.f32 %v4496_v19, %v945_v20  ;;  %v938_v23 = vmul.f32 %v5493_v21, %v924_v8 }
 0x1b6   : > { %955 = vst [vmem:[#allocation2] sm:$0xff] %v953_v22  ;;  %v946_v24 = vmul.f32 %v4495_v17, %v938_v23 }
 0x1b8   : > { %v954_v25 = vadd.f32 %v4496_v19, %v946_v24 }
 0x1ba   : > { %956 = vst [vmem:[#allocation2 + $0x8] sm:$0xff] %v954_v25 }
 0x1bb PF: > { %v5494_v26 = vld [vmem:[%s6098_s4] sm:$0xff]   ;;  %v5842_v27 = vmov 0.0   ;;  %v5495_v28 = vld [vmem:[%s6098_s4 + $0x8] sm:$0xff]   ;;  %vm5843_vm0 = vmmov 0   ;;  %v5497_v31 = vld [vmem:[%s6098_s4 + $0x10] sm:$0xff]   ;;  %vm1304_vm1 = vcmask 261120   ;;  %s6882_s14 = scalar_lea.vmem %s6805_s11, %s6106_s17  ;;  %s6887_s28 = scalar_lea.vmem %s6809_s15, %s6110_s30 }
 0x1bc   : > { %5093 = vmatprep.subr.bf16.mxu1 %v5842_v27  ;;  %5073 = vmatprep.subr.bf16.mxu0 %v5842_v27  ;;  %v5496_v29 = vld [vmem:[%s6092_s27] sm:$0xff]   ;;  %v5498_v30 = vld [vmem:[%s6092_s27 + $0x8] sm:$0xff]   ;;  %v5500_v32 = vld [vmem:[%s6092_s27 + $0x10] sm:$0xff]   ;;  %s6879_s8 = sld [smem:[#allocation13_spill]]  ;;  %s6880_s21 = sld [smem:[#allocation16_spill]]  ;;  %vm1397_vm2 = vcmask 64512  }
 0x1bd   : > { %5094 = vmatpush3.bf16.msra.mxu1 %v5494_v26  ;;  %5109 = vmatprep.mubr.msk.bf16.mxu1 %vm5843_vm0, %v5842_v27  ;;  %v5499_v33 = vld [vmem:[%s6098_s4 + $0x18] sm:$0xff]   ;;  %v5501_v35 = vld [vmem:[%s6098_s4 + $0x20] sm:$0xff]   ;;  %v5503_v36 = vld [vmem:[%s6098_s4 + $0x28] sm:$0xff]   ;;  %s6881_s22 = sld [smem:[#allocation14_spill]]  ;;  %vm1425_vm3 = vcmask 1043456   ;;  %s6883_s24 = sld [smem:[#allocation26_spill]] }
 0x1be   : > { %5095 = vmatprep.subr.bf16.mxu1 %v5842_v27  ;;  %5089 = vmatprep.mubr.msk.bf16.mxu0 %vm5843_vm0, %v5842_v27  ;;  %v5502_v34 = vld [vmem:[%s6092_s27 + $0x18] sm:$0xff]   ;;  %v5504_v37 = vld [vmem:[%s6092_s27 + $0x20] sm:$0xff]   ;;  %v5506_v38 = vld [vmem:[%s6092_s27 + $0x28] sm:$0xff]   ;;  %p4868_p3 = scmp.ne.s32.totalorder %s5969_s2, 1 }
 0x1bf   : > { %5074 = vmatpush3.bf16.msra.mxu0 %v5496_v29  ;;  %v5505_v39 = vld [vmem:[%s6098_s4 + $0x30] sm:$0xff]   ;;  %v5507_v41 = vld [vmem:[%s6098_s4 + $0x38] sm:$0xff]  }
 0x1c0   : > { %5075 = vmatprep.subr.bf16.mxu0 %v5842_v27  ;;  %v5508_v40 = vld [vmem:[%s6092_s27 + $0x30] sm:$0xff]   ;;  %v5509_v44 = vld [vmem:[%s6092_s27 + $0x38] sm:$0xff]  }
 0x1c1   : > { %5096 = vmatpush3.bf16.msra.mxu1 %v5495_v28  ;;  %v957_v42 = vld [vmem:[#allocation2] sm:$0xff]  ;;  %v958_v43 = vld [vmem:[#allocation2 + $0x8] sm:$0xff] }
 0x1c2   : > { %5097 = vmatprep.subr.bf16.mxu1 %v5842_v27  ;;  %v6227_v45 = vpack.c.bf16 %v958_v43, %v957_v42  ;;  %v4506_v46 = vld [vmem:[%s6127_s26] ss:$0 sm:$0xff]  ;;  %v5511_v3 = vld [vmem:[%s6879_s8 + $0x8] sm:$0xff]   ;;  %v5512_v4 = vld [vmem:[%s6879_s8 + $0x10] sm:$0xff]  }
 0x1c3   : > { %5076 = vmatpush3.bf16.msra.mxu0 %v5498_v30  ;;  %v4497_v51 = vld [vmem:[%s6121_s19] ss:$0 sm:$0xff]  ;;  %v5513_v5 = vld [vmem:[%s6879_s8 + $0x18] sm:$0xff]   ;;  %v5515_v7 = vld [vmem:[%s6879_s8 + $0x28] sm:$0xff]   ;;  %s6884_s1 = scalar_lea.vmem %s6883_s24, %s6106_s17 }
 0x1c4   : > { %5077 = vmatprep.subr.bf16.mxu0 %v5842_v27  ;;  %v5510_v2 = vld [vmem:[%s6879_s8] sm:$0xff]   ;;  %v5516_v8 = vld [vmem:[%s6879_s8 + $0x30] sm:$0xff]   ;;  %v5517_v9 = vld [vmem:[%s6879_s8 + $0x38] sm:$0xff]  }
 0x1c5   : > { %5098 = vmatpush3.bf16.msra.mxu1 %v5497_v31  ;;  %v5514_v6 = vld [vmem:[%s6879_s8 + $0x20] sm:$0xff]   ;;  %v6279_v17 = vld [vmem:[%s6880_s21 + $0x8] sm:$0xff] }
 0x1c6   : > { %5099 = vmatprep.subr.bf16.mxu1 %v5842_v27  ;;  %v6272_v10 = vld [vmem:[%s6880_s21] sm:$0xff] }
 0x1c7   : > { %5078 = vmatpush3.bf16.msra.mxu0 %v5500_v32 }
 0x1c8   : > { %5079 = vmatprep.subr.bf16.mxu0 %v5842_v27 }
 0x1c9   : > { %5100 = vmatpush3.bf16.msra.mxu1 %v5499_v33 }
 0x1ca   : > { %5101 = vmatprep.subr.bf16.mxu1 %v5842_v27 }
 0x1cb   : > { %5080 = vmatpush3.bf16.msra.mxu0 %v5502_v34 }
 0x1cc   : > { %5081 = vmatprep.subr.bf16.mxu0 %v5842_v27 }
 0x1cd   : > { %5102 = vmatpush3.bf16.msra.mxu1 %v5501_v35 }
 0x1ce   : > { %5103 = vmatprep.subr.bf16.mxu1 %v5842_v27 }
 0x1cf   : > { %5082 = vmatpush3.bf16.msra.mxu0 %v5504_v37  ;;  %v4515_v37 = vld [vmem:[%s6881_s22] ss:$0 sm:$0xff] }
 0x1d0   : > { %5083 = vmatprep.subr.bf16.mxu0 %v5842_v27 }
 0x1d1   : > { %5104 = vmatpush3.bf16.msra.mxu1 %v5503_v36 }
 0x1d2   : > { %5105 = vmatprep.subr.bf16.mxu1 %v5842_v27 }
 0x1d3   : > { %5084 = vmatpush3.bf16.msra.mxu0 %v5506_v38 }
 0x1d4   : > { %5085 = vmatprep.subr.bf16.mxu0 %v5842_v27 }
 0x1d5   : > { %5106 = vmatpush3.bf16.msra.mxu1 %v5505_v39 }
 0x1d6   : > { %5107 = vmatprep.subr.bf16.mxu1 %v5842_v27 }
 0x1d7   : > { %5086 = vmatpush3.bf16.msra.mxu0 %v5508_v40 }
 0x1d8   : > { %5087 = vmatprep.subr.bf16.mxu0 %v5842_v27 }
 0x1d9   : > { %5108 = vmatpush3.bf16.msra.mxu1 %v5507_v41 }
 0x1da   : > { %5133 = vmatprep.subr.bf16.mxu1 %v5842_v27 }
 0x1db   : > { %5088 = vmatpush3.bf16.msra.mxu0 %v5509_v44  ;;  %v5520_v44 = vld [vmem:[%s6092_s27 + $0x40] sm:$0xff]  }
 0x1dc   : > { %5110 = vmatmul.mubr.bf16.vlgmr.msra.gmra.mrb[0].mxu1 %v6227_v45  ;;  %5113 = vmatprep.subr.bf16.mxu0 %v5842_v27 }
 0x1dd   : > { %5135 = vmatprep.mubr.msk.bf16.mxu1 %vm5843_vm0, %v5842_v27 }
 0x1de   : > { %5090 = vmatmul.mubr.bf16.vlgmr.msra.gmra.mrb[0].mxu0 %v6227_v45 }
 0x1df   : > { %5129 = vmatprep.mubr.msk.bf16.mxu0 %vm5843_vm0, %v5842_v27  ;;  %5114 = vmatpush3.bf16.msra.mxu0 %v5510_v2  ;;  %v5523_v2 = vld [vmem:[%s6098_s4 + $0x58] sm:$0xff]  }
 0x1e0   : > { %5115 = vmatprep.subr.bf16.mxu0 %v5842_v27 }
 0x1e3   : > { %5116 = vmatpush3.bf16.msra.mxu0 %v5511_v3  ;;  %v5525_v3 = vld [vmem:[%s6098_s4 + $0x60] sm:$0xff]  }
 0x1e4   : > { %5117 = vmatprep.subr.bf16.mxu0 %v5842_v27 }
 0x1e7   : > { %5118 = vmatpush3.bf16.msra.mxu0 %v5512_v4  ;;  %v5527_v4 = vld [vmem:[%s6098_s4 + $0x68] sm:$0xff]  }
 0x1e8   : > { %5119 = vmatprep.subr.bf16.mxu0 %v5842_v27 }
 0x1eb   : > { %5120 = vmatpush3.bf16.msra.mxu0 %v5513_v5  ;;  %v5529_v5 = vld [vmem:[%s6098_s4 + $0x70] sm:$0xff]  }
 0x1ec   : > { %5121 = vmatprep.subr.bf16.mxu0 %v5842_v27 }
 0x1ef   : > { %5122 = vmatpush3.bf16.msra.mxu0 %v5514_v6  ;;  %v5531_v6 = vld [vmem:[%s6098_s4 + $0x78] sm:$0xff]  }
 0x1f0   : > { %5123 = vmatprep.subr.bf16.mxu0 %v5842_v27 }
 0x1f3   : > { %5124 = vmatpush3.bf16.msra.mxu0 %v5515_v7 }
 0x1f4   : > { %5125 = vmatprep.subr.bf16.mxu0 %v5842_v27 }
 0x1f7   : > { %5126 = vmatpush3.bf16.msra.mxu0 %v5516_v8 }
 0x1f8   : > { %5127 = vmatprep.subr.bf16.mxu0 %v5842_v27 }
 0x1fb   : > { %5128 = vmatpush3.bf16.msra.mxu0 %v5517_v9 }
 0x1fc   : > { %5157 = vmatprep.subr.bf16.mxu0 %v5842_v27 }
 0x1fe   : > { %5130 = vmatmul.mubr.bf16.vlgmr.msra.gmra.mrb[4].mxu0 %v6227_v45 }
 0x1ff   : > { %5173 = vmatprep.mubr.msk.bf16.mxu0 %vm5843_vm0, %v5842_v27  ;;  %5158 = vmatpush3.bf16.msra.mxu0 %v5520_v44  ;;  %v5539_v44 = vld [vmem:[%s6879_s8 + $0x68] sm:$0xff]  }
 0x200   : > { %5159 = vmatprep.subr.bf16.mxu0 %v5842_v27 }
 0x2af   : > { %v1179_v47 = vpop.f32.mrb[0].mxu1 }
 0x2b0   : > { %v1180_v48 = vadd.f32 %v4506_v46, %v1179_v47  ;;  %v5111_v49 = vpop.f32.mrb[1].mxu1  ;;  %v5524_v47 = vld [vmem:[%s6092_s27 + $0x50] sm:$0xff]  }
 0x2b1   : > { %v1182_v50 = vpop.f32.mrb[2].mxu1  ;;  %v1067_v52 = vpop.f32.mrb[0].mxu0  ;;  %v5528_v49 = vld [vmem:[%s6092_s27 + $0x60] sm:$0xff]  }
 0x2b2   : > { %v1300_v53 = vpack.c.bf16 %v1180_v48, %v1180_v48  ;;  %v5112_v54 = vpop.f32.mrb[3].mxu1  ;;  %v5091_v55 = vpop.f32.mrb[1].mxu0  ;;  %v1183_v58 = vadd.f32 %v4506_v46, %v1182_v50  ;;  %v1068_v59 = vadd.f32 %v4497_v51, %v1067_v52  ;;  %v5522_v46 = vld [vmem:[%s6092_s27 + $0x48] sm:$0xff]   ;;  %v5526_v48 = vld [vmem:[%s6092_s27 + $0x58] sm:$0xff]  }
 0x2b3   : > { %v1070_v56 = vpop.f32.mrb[2].mxu0  ;;  %5160 = vmatpush3.bf16.msra.mxu0 %v5522_v46  ;;  %v5530_v50 = vld [vmem:[%s6092_s27 + $0x68] sm:$0xff]   ;;  %v5533_v52 = vld [vmem:[%s6092_s27 + $0x78] sm:$0xff]   ;;  %v5540_v46 = vld [vmem:[%s6879_s8 + $0x70] sm:$0xff]  }
 0x2b4   : > { %v1309_v57 = vsel %vm1304_vm1, %v1300_v53, 0  ;;  %v5092_v60 = vpop.f32.mrb[3].mxu0  ;;  %v1301_v61 = vpack.c.bf16 %v1183_v58, %v1183_v58  ;;  %v1298_v62 = vpack.c.bf16 %v1068_v59, %v1068_v59  ;;  %v1071_v0 = vadd.f32 %v4497_v51, %v1070_v56  ;;  %5161 = vmatprep.subr.bf16.mxu0 %v5842_v27  ;;  %v5532_v51 = vld [vmem:[%s6092_s27 + $0x70] sm:$0xff]  }
 0x2b5   : > { %5134 = vmatpush3.bf16.xpose.msra.mxu1 %v1309_v57 }
 0x2b6   : > { %5139 = vmatprep.subr.bf16.mxu1 %v5842_v27  ;;  %v1355_v63 = vsel %vm1304_vm1, %v1301_v61, 0  ;;  %v1299_v1 = vpack.c.bf16 %v1071_v0, %v1071_v0  ;;  %v5519_v0 = vld [vmem:[%s6098_s4 + $0x48] sm:$0xff]  }
 0x2b7   : > { %5162 = vmatpush3.bf16.msra.mxu0 %v5524_v47  ;;  %v5541_v47 = vld [vmem:[%s6879_s8 + $0x78] sm:$0xff]  }
 0x2b8   : > { %5163 = vmatprep.subr.bf16.mxu0 %v5842_v27 }
 0x2bb   : > { %5164 = vmatpush3.bf16.msra.mxu0 %v5526_v48 }
 0x2bc   : > { %5136 = vmatmul.mubr.msk.bf16.vlgmr.msra.gmra.mrb[4].mxu1 %vm1304_vm1, %v1298_v62  ;;  %5165 = vmatprep.subr.bf16.mxu0 %v5842_v27  ;;  %v5518_v62 = vld [vmem:[%s6098_s4 + $0x40] sm:$0xff]  }
 0x2bd   : > { %5140 = vmatpush3.bf16.xpose.msra.mxu1 %v1355_v63  ;;  %5141 = vmatprep.mubr.msk.bf16.mxu1 %vm5843_vm0, %v5842_v27 }
 0x2be   : > { %5145 = vmatprep.subr.bf16.mxu1 %v5842_v27 }
 0x2bf   : > { %5166 = vmatpush3.bf16.msra.mxu0 %v5528_v49 }
 0x2c0   : > { %5167 = vmatprep.subr.bf16.mxu0 %v5842_v27 }
 0x2c3   : > { %5168 = vmatpush3.bf16.msra.mxu0 %v5530_v50 }
 0x2c4   : > { %5142 = vmatmul.mubr.msk.bf16.vlgmr.msra.gmra.mrb[8].mxu1 %vm1304_vm1, %v1299_v1  ;;  %5169 = vmatprep.subr.bf16.mxu0 %v5842_v27  ;;  %v5521_v1 = vld [vmem:[%s6098_s4 + $0x50] sm:$0xff]  }
 0x2c5   : > { %5147 = vmatprep.mubr.msk.bf16.mxu1 %vm5843_vm0, %v5842_v27 }
 0x2c7   : > { %5170 = vmatpush3.bf16.msra.mxu0 %v5532_v51 }
 0x2c8   : > { %5171 = vmatprep.subr.bf16.mxu0 %v5842_v27 }
 0x2cb   : > { %5172 = vmatpush3.bf16.msra.mxu0 %v5533_v52 }
 0x2cc   : > { %5197 = vmatprep.subr.bf16.mxu0 %v5842_v27 }
 0x2ce   : > { %5174 = vmatmul.mubr.bf16.vlgmr.msra.gmra.mrb[8].mxu0 %v6227_v45 }
 0x2cf   : > { %5213 = vmatprep.mubr.msk.bf16.mxu0 %vm5843_vm0, %v5842_v27 }
 0x2d1   : > { %v1291_v35 = vpop.f32.mrb[4].mxu0 }
 0x2d2   : > { %v5131_v36 = vpop.f32.mrb[5].mxu0  ;;  %v1292_v39 = vadd.f32 %v4515_v37, %v1291_v35 }
 0x2d3   : > { %v1294_v38 = vpop.f32.mrb[6].mxu0 }
 0x2d4   : > { %v5132_v40 = vpop.f32.mrb[7].mxu0  ;;  %v1295_v41 = vadd.f32 %v4515_v37, %v1294_v38  ;;  %v1302_v42 = vpack.c.bf16 %v1292_v39, %v1292_v39  ;;  %v5534_v39 = vld [vmem:[%s6879_s8 + $0x40] sm:$0xff]  }
 0x2d5   : > { %5198 = vmatpush3.bf16.msra.mxu0 %v5534_v39  ;;  %v5535_v40 = vld [vmem:[%s6879_s8 + $0x48] sm:$0xff]  }
 0x2d6   : > { %v1427_v43 = vsel %vm1425_vm3, %v1302_v42, 0  ;;  %v1303_v57 = vpack.c.bf16 %v1295_v41, %v1295_v41  ;;  %5199 = vmatprep.subr.bf16.mxu0 %v5842_v27  ;;  %v5536_v41 = vld [vmem:[%s6879_s8 + $0x50] sm:$0xff]   ;;  %v5537_v42 = vld [vmem:[%s6879_s8 + $0x58] sm:$0xff]   ;;  %v5558_v39 = vld [vmem:[%s6098_s4 + $0xb8] sm:$0xff]  }
 0x2d7   : > { %5146 = vmatpush3.bf16.msra.mxu1 %v1427_v43  ;;  %v5538_v43 = vld [vmem:[%s6879_s8 + $0x60] sm:$0xff]  }
 0x2d8   : > { %5151 = vmatprep.subr.bf16.mxu1 %v5842_v27  ;;  %v1473_v59 = vsel %vm1425_vm3, %v1303_v57, 0 }
 0x2d9   : > { %5200 = vmatpush3.bf16.msra.mxu0 %v5535_v40 }
 0x2da   : > { %5201 = vmatprep.subr.bf16.mxu0 %v5842_v27 }
 0x2dd   : > { %5202 = vmatpush3.bf16.msra.mxu0 %v5536_v41 }
 0x2de   : > { %5203 = vmatprep.subr.bf16.mxu0 %v5842_v27 }
 0x2e1   : > { %5204 = vmatpush3.bf16.msra.mxu0 %v5537_v42 }
 0x2e2   : > { %5205 = vmatprep.subr.bf16.mxu0 %v5842_v27 }
 0x2e5   : > { %5206 = vmatpush3.bf16.msra.mxu0 %v5538_v43 }
 0x2e6   : > { %5207 = vmatprep.subr.bf16.mxu0 %v5842_v27 }
 0x2e9   : > { %5208 = vmatpush3.bf16.msra.mxu0 %v5539_v44 }
 0x2ea   : > { %5209 = vmatprep.subr.bf16.mxu0 %v5842_v27 }
 0x2ed   : > { %5210 = vmatpush3.bf16.msra.mxu0 %v5540_v46  ;;  %v5549_v46 = vld [vmem:[%s6092_s27 + $0x80] sm:$0xff]  }
 0x2ee   : > { %5211 = vmatprep.subr.bf16.mxu0 %v5842_v27 }
 0x2f1   : > { %5212 = vmatpush3.bf16.msra.mxu0 %v5541_v47 }
 0x2f2   : > { %5241 = vmatprep.subr.bf16.mxu0 %v5842_v27 }
 0x2f4   : > { %5214 = vmatmul.mubr.bf16.vlgmr.msra.gmra.mrb[12].mxu0 %v6227_v45 }
 0x2f5   : > { %5245 = vmatprep.mubr.msk.bf16.mxu0 %vm5843_vm0, %v5842_v27 }
 0x38f   : > { %v1345_v11 = vpop.f32.mrb[4].mxu1 }
 0x390   : > { %v1346_v12 = vadd.f32 %v1345_v11, %v6272_v10  ;;  %v5137_v13 = vpop.f32.mrb[5].mxu1 }
 0x391   : > { %v1348_v14 = vpop.f32.mrb[6].mxu1 }
 0x392   : > { %v5138_v15 = vpop.f32.mrb[7].mxu1  ;;  %v1398_v16 = vsel %vm1397_vm2, %v1346_v12, -inf }
 0x393   : > { %1399 = vmax.xlane.f32.xlu0 %v1398_v16 }
 0x397   : > { %v1391_v18 = vpop.f32.mrb[8].mxu1 }
 0x398   : > { %v1392_v19 = vadd.f32 %v1391_v18, %v6279_v17  ;;  %v5143_v20 = vpop.f32.mrb[9].mxu1 }
 0x399   : > { %v1394_v21 = vpop.f32.mrb[10].mxu1 }
 0x39a   : > { %v5144_v22 = vpop.f32.mrb[11].mxu1  ;;  %v1401_v23 = vsel %vm1397_vm2, %v1392_v19, -inf }
 0x39b   : > { %1402 = vmax.xlane.f32.xlu0 %v1401_v23  ;;  %v4571_v22 = vld [vmem:[%s6127_s26 + $0x1] ss:$0 sm:$0xff] }
 0x3a1   : > { %v1627_v7 = vpop.f32.mrb[8].mxu0 }
 0x3a2   : > { %v5175_v8 = vpop.f32.mrb[9].mxu0 }
 0x3a3   : > { %v1630_v9 = vpop.f32.mrb[10].mxu0  ;;  %v4597_v8 = vld [vmem:[%s6881_s22 + $0x1] ss:$0 sm:$0xff] }
 0x3a4   : > { %v5176_v11 = vpop.f32.mrb[11].mxu0 }
 0x420   : > { %v1400_v24 = vpop.xlane.xlu0 %1399 }
 0x421   : > { %v1404_v25 = vsub.f32 %v1346_v12, %v1400_v24 }
 0x423   : > { %v1406_v26 = vmul.f32 1.442695, %v1404_v25 }
 0x425   : > { %5678 = vpow2.f32 %v1406_v26 }
 0x428   : > { %v1403_v28 = vpop.xlane.xlu0 %1402 }
 0x429   : > { %v1405_v29 = vsub.f32 %v1392_v19, %v1403_v28  ;;  %v4545_v28 = vld [vmem:[%s6121_s19 + $0x1] ss:$0 sm:$0xff] }
 0x42a   : > { %v1631_v37 = vadd.f32 %v4545_v28, %v1630_v9 }
 0x42b   : > { %v1408_v30 = vmul.f32 1.442695, %v1405_v29 }
 0x42c   : > { %v1863_v38 = vpack.c.bf16 %v1631_v37, %v1631_v37  ;;  %v5554_v37 = vld [vmem:[%s6098_s4 + $0xa8] sm:$0xff]  }
 0x42d   : > { %5680 = vpow2.f32 %v1408_v30 }
 0x42f   : > { %v5679_v31 = vpop.eup %5678 }
 0x430   : > { %v1410_v32 = vsel %vm1397_vm2, %v5679_v31, 0.0 }
 0x431   : > { %1411 = vadd.xlane.f32.xlu1 %v1410_v32 }
 0x437   : > { %v5681_v33 = vpop.eup %5680 }
 0x438   : > { %v1413_v34 = vsel %vm1397_vm2, %v5681_v33, 0.0 }
 0x439   : > { %1414 = vadd.xlane.f32.xlu1 %v1413_v34 }
 0x4be   : > { %v1412_v53 = vpop.xlane.xlu1 %1411 }
 0x4bf   : > { %5682 = vrcp.f32 %v1412_v53 }
 0x4c6   : > { %v1415_v54 = vpop.xlane.xlu1 %1414 }
 0x4c7   : > { %5684 = vrcp.f32 %v1415_v54 }
 0x4c9   : > { %v5683_v55 = vpop.eup %5682 }
 0x4ca   : > { %v1418_v56 = vmul.f32 %v5683_v55, %v5679_v31 }
 0x4cc   : > { %v1420_v58 = vpack.c.bf16 %v1418_v56, %v1418_v56 }
 0x4ce   : > { %5148 = vmatmul.mubr.msk.bf16.vlgmr.msra.gmra.mrb[12].mxu1 %vm1397_vm2, %v1420_v58 }
 0x4cf   : > { %5152 = vmatpush3.bf16.msra.mxu1 %v1473_v59  ;;  %5153 = vmatprep.mubr.msk.bf16.mxu1 %vm5843_vm0, %v5842_v27 }
 0x4d0   : > { %5177 = vmatprep.subr.bf16.mxu1 %v5842_v27 }
 0x4d1   : > { %v5685_v60 = vpop.eup %5684 }
 0x4d2   : > { %v1419_v61 = vmul.f32 %v5685_v60, %v5681_v33  ;;  %v1628_v33 = vadd.f32 %v4545_v28, %v1627_v7 }
 0x4d4   : > { %v1421_v63 = vpack.c.bf16 %v1419_v61, %v1419_v61  ;;  %v1862_v35 = vpack.c.bf16 %v1628_v33, %v1628_v33  ;;  %v5544_v33 = vld [vmem:[%s6098_s4 + $0x80] sm:$0xff]  }
 0x4d6   : > { %5154 = vmatmul.mubr.msk.bf16.vlgmr.msra.gmra.mrb[16].mxu1 %vm1397_vm2, %v1421_v63 }
 0x4d7   : > { %5178 = vmatpush3.bf16.msra.mxu1 %v5518_v62  ;;  %5193 = vmatprep.mubr.msk.bf16.mxu1 %vm5843_vm0, %v5842_v27 }
 0x4d8   : > { %5179 = vmatprep.subr.bf16.mxu1 %v5842_v27 }
 0x4db   : > { %5180 = vmatpush3.bf16.msra.mxu1 %v5519_v0 }
 0x4dc   : > { %5181 = vmatprep.subr.bf16.mxu1 %v5842_v27 }
 0x4df   : > { %5182 = vmatpush3.bf16.msra.mxu1 %v5521_v1 }
 0x4e0   : > { %5183 = vmatprep.subr.bf16.mxu1 %v5842_v27 }
 0x4e3   : > { %5184 = vmatpush3.bf16.msra.mxu1 %v5523_v2 }
 0x4e4   : > { %5185 = vmatprep.subr.bf16.mxu1 %v5842_v27 }
 0x4e7   : > { %5186 = vmatpush3.bf16.msra.mxu1 %v5525_v3 }
 0x4e8   : > { %5187 = vmatprep.subr.bf16.mxu1 %v5842_v27 }
 0x4eb   : > { %5188 = vmatpush3.bf16.msra.mxu1 %v5527_v4 }
 0x4ec   : > { %5189 = vmatprep.subr.bf16.mxu1 %v5842_v27 }
 0x4ef   : > { %5190 = vmatpush3.bf16.msra.mxu1 %v5529_v5 }
 0x4f0   : > { %5191 = vmatprep.subr.bf16.mxu1 %v5842_v27 }
 0x4f3   : > { %5192 = vmatpush3.bf16.msra.mxu1 %v5531_v6  ;;  %v1855_v6 = vpop.f32.mrb[12].mxu0 }
 0x4f4   : > { %5217 = vmatprep.subr.bf16.mxu1 %v5842_v27  ;;  %v5215_v7 = vpop.f32.mrb[13].mxu0  ;;  %v1856_v11 = vadd.f32 %v4597_v8, %v1855_v6 }
 0x4f5   : > { %v1858_v9 = vpop.f32.mrb[14].mxu0 }
 0x4f6   : > { %5194 = vmatmul.mubr.bf16.vlgmr.msra.gmra.mrb[20].mxu1 %v6227_v45 }
 0x4f7   : > { %5219 = vmatprep.mubr.msk.bf16.mxu1 %vm5843_vm0, %v5842_v27 }
 0x5a1   : > { %v6334_v12 = vpop.f32.mrb[12].mxu1 }
 0x5a2   : > { %v5149_v13 = vpop.f32.mrb[13].mxu1 }
 0x5a3   : > { %v1466_v14 = vpop.f32.mrb[14].mxu1  ;;  %v5216_v13 = vpop.f32.mrb[15].mxu0 }
 0x5a4   : > { %v5150_v15 = vpop.f32.mrb[15].mxu1  ;;  %v1859_v14 = vadd.f32 %v4597_v8, %v1858_v9 }
 0x5a5   : > { %v1866_v15 = vpack.c.bf16 %v1856_v11, %v1856_v11 }
 0x5a9   : > { %v6336_v16 = vpop.f32.mrb[16].mxu1 }
 0x5aa   : > { %v1515_v18 = vpack.c.bf16 %v6336_v16, %v6334_v12  ;;  %v5155_v19 = vpop.f32.mrb[17].mxu1  ;;  %v5548_v12 = vld [vmem:[%s6098_s4 + $0x90] sm:$0xff]   ;;  %v5550_v16 = vld [vmem:[%s6098_s4 + $0x98] sm:$0xff]  }
 0x5ab   : > { %v1512_v20 = vpop.f32.mrb[18].mxu1  ;;  %v1988_v19 = vsel %vm1425_vm3, %v1866_v15, 0  ;;  %v4637_v15 = vld [vmem:[%s6121_s19 + $0x2] ss:$0 sm:$0xff] }
 0x5ac   : > { %v5156_v21 = vpop.f32.mrb[19].mxu1 }
 0x5c9   : > { %v1741_v23 = vpop.f32.mrb[20].mxu1 }
 0x5ca   : > { %v1742_v24 = vadd.f32 %v4571_v22, %v1741_v23  ;;  %v5195_v25 = vpop.f32.mrb[21].mxu1 }
 0x5cb   : > { %v1744_v26 = vpop.f32.mrb[22].mxu1 }
 0x5cc   : > { %v1864_v29 = vpack.c.bf16 %v1742_v24, %v1742_v24  ;;  %v5196_v30 = vpop.f32.mrb[23].mxu1  ;;  %v1745_v32 = vadd.f32 %v4571_v22, %v1744_v26  ;;  %v1867_v24 = vpack.c.bf16 %v1859_v14, %v1859_v14 }
 0x5cd   : > { %v5542_v30 = vld [vmem:[%s6143_s25] sm:$0xff]  }
 0x5ce   : > { %v1872_v31 = vsel %vm1304_vm1, %v1864_v29, 0  ;;  %v1865_v34 = vpack.c.bf16 %v1745_v32, %v1745_v32  ;;  %v2034_v26 = vsel %vm1425_vm3, %v1867_v24, 0  ;;  %v5543_v32 = vld [vmem:[%s6143_s25 + $0x8] sm:$0xff]  }
 0x5cf   : > { %5218 = vmatpush3.bf16.xpose.msra.mxu1 %v1872_v31 }
 0x5d0   : > { %5223 = vmatprep.subr.bf16.mxu1 %v5842_v27  ;;  %v1918_v36 = vsel %vm1304_vm1, %v1865_v34, 0  ;;  %v5545_v34 = vld [vmem:[%s6143_s25 + $0x10] sm:$0xff]  }
 0x5d1   : > { %5242 = vmatpush3.bf16.msra.mxu0 %v5545_v34  ;;  %v5566_v34 = vld [vmem:[%s6879_s8 + $0xa0] sm:$0xff]  }
 0x5d2   : > { %5243 = vmatprep.subr.bf16.mxu0 %v5842_v27 }
 0x5d6   : > { %5220 = vmatmul.mubr.msk.bf16.vlgmr.msra.gmra.mrb[24].mxu1 %vm1304_vm1, %v1862_v35  ;;  %v5546_v35 = vld [vmem:[%s6098_s4 + $0x88] sm:$0xff]  }
 0x5d7   : > { %5224 = vmatpush3.bf16.xpose.msra.mxu1 %v1918_v36  ;;  %5225 = vmatprep.mubr.msk.bf16.mxu1 %vm5843_vm0, %v5842_v27  ;;  %v5547_v36 = vld [vmem:[%s6143_s25 + $0x18] sm:$0xff]  }
 0x5d8   : > { %5229 = vmatprep.subr.bf16.mxu1 %v5842_v27  ;;  %5244 = vmatpush3.bf16.msra.mxu0 %v5547_v36  ;;  %v5568_v36 = vld [vmem:[%s6879_s8 + $0xb0] sm:$0xff]  }
 0x5d9   : > { %5257 = vmatprep.subr.bf16.mxu0 %v5842_v27 }
 0x5de   : > { %5226 = vmatmul.mubr.msk.bf16.vlgmr.msra.gmra.mrb[28].mxu1 %vm1304_vm1, %v1863_v38  ;;  %v5556_v38 = vld [vmem:[%s6098_s4 + $0xb0] sm:$0xff]  }
 0x5df   : > { %5231 = vmatprep.mubr.msk.bf16.mxu1 %vm5843_vm0, %v5842_v27  ;;  %5230 = vmatpush3.bf16.msra.mxu1 %v1988_v19 }
 0x5e0   : > { %5235 = vmatprep.subr.bf16.mxu1 %v5842_v27 }
 0x6a9   : > { %v1908_v48 = vpop.f32.mrb[24].mxu1 }
 0x6aa   : > { %v1909_v49 = vadd.f32 %v1908_v48, %v6272_v10  ;;  %v5221_v50 = vpop.f32.mrb[25].mxu1 }
 0x6ab   : > { %v1911_v51 = vpop.f32.mrb[26].mxu1 }
 0x6ac   : > { %v5222_v52 = vpop.f32.mrb[27].mxu1  ;;  %v1960_v53 = vsel %vm1397_vm2, %v1909_v49, -inf  ;;  %v5551_v51 = vld [vmem:[%s6092_s27 + $0x88] sm:$0xff]  }
 0x6ad   : > { %1961 = vmax.xlane.f32.xlu0 %v1960_v53  ;;  %v5553_v53 = vld [vmem:[%s6092_s27 + $0x90] sm:$0xff]  }
 0x6b1   : > { %v1954_v54 = vpop.f32.mrb[28].mxu1 }
 0x6b2   : > { %v1955_v55 = vadd.f32 %v1954_v54, %v6279_v17  ;;  %v5227_v56 = vpop.f32.mrb[29].mxu1 }
 0x6b3   : > { %v1957_v57 = vpop.f32.mrb[30].mxu1 }
 0x6b4   : > { %v5228_v58 = vpop.f32.mrb[31].mxu1  ;;  %v1963_v59 = vsel %vm1397_vm2, %v1955_v55, -inf  ;;  %v5555_v57 = vld [vmem:[%s6092_s27 + $0x98] sm:$0xff]  }
 0x6b5   : > { %1964 = vmax.xlane.f32.xlu1 %v1963_v59  ;;  %v5557_v58 = vld [vmem:[%s6092_s27 + $0xa0] sm:$0xff]   ;;  %v5559_v59 = vld [vmem:[%s6092_s27 + $0xa8] sm:$0xff]  }
 0x73a   : > { %v1962_v60 = vpop.xlane.xlu0 %1961 }
 0x73b   : > { %v1966_v61 = vsub.f32 %v1909_v49, %v1962_v60  ;;  %v5560_v60 = vld [vmem:[%s6092_s27 + $0xb0] sm:$0xff]  }
 0x73d   : > { %v1968_v62 = vmul.f32 1.442695, %v1966_v61  ;;  %v5561_v61 = vld [vmem:[%s6092_s27 + $0xb8] sm:$0xff]  }
 0x73f   : > { %5686 = vpow2.f32 %v1968_v62  ;;  %v4663_v62 = vld [vmem:[%s6127_s26 + $0x2] ss:$0 sm:$0xff] }
 0x742   : > { %v1965_v63 = vpop.xlane.xlu1 %1964 }
 0x743   : > { %v1967_v0 = vsub.f32 %v1955_v55, %v1965_v63 }
 0x745   : > { %v1970_v1 = vmul.f32 1.442695, %v1967_v0 }
 0x747   : > { %5688 = vpow2.f32 %v1970_v1 }
 0x749   : > { %v5687_v2 = vpop.eup %5686 }
 0x74a   : > { %v1972_v3 = vsel %vm1397_vm2, %v5687_v2, 0.0 }
 0x74b   : > { %1973 = vadd.xlane.f32.xlu0 %v1972_v3 }
 0x751   : > { %v5689_v4 = vpop.eup %5688 }
 0x752   : > { %v1975_v5 = vsel %vm1397_vm2, %v5689_v4, 0.0 }
 0x753   : > { %1976 = vadd.xlane.f32.xlu1 %v1975_v5 }
 0x7d8   : > { %v1974_v20 = vpop.xlane.xlu0 %1973 }
 0x7d9   : > { %5690 = vrcp.f32 %v1974_v20 }
 0x7e0   : > { %v1977_v21 = vpop.xlane.xlu1 %1976 }
 0x7e1   : > { %5692 = vrcp.f32 %v1977_v21 }
 0x7e3   : > { %v5691_v22 = vpop.eup %5690 }
 0x7e4   : > { %v1980_v23 = vmul.f32 %v5691_v22, %v5687_v2 }
 0x7e6   : > { %v1982_v25 = vpack.c.bf16 %v1980_v23, %v1980_v23 }
 0x7e8   : > { %5232 = vmatmul.mubr.msk.bf16.vlgmr.msra.gmra.mrb[32].mxu1 %vm1397_vm2, %v1982_v25 }
 0x7e9   : > { %5236 = vmatpush3.bf16.msra.mxu1 %v2034_v26  ;;  %5237 = vmatprep.mubr.msk.bf16.mxu1 %vm5843_vm0, %v5842_v27 }
 0x7ea   : > { %5249 = vmatprep.subr.bf16.mxu1 %v5842_v27 }
 0x7eb   : > { %v5693_v28 = vpop.eup %5692 }
 0x7ec   : > { %v1981_v29 = vmul.f32 %v5693_v28, %v5689_v4 }
 0x7ee   : > { %v1983_v31 = vpack.c.bf16 %v1981_v29, %v1981_v29 }
 0x7f0   : > { %5238 = vmatmul.mubr.msk.bf16.vlgmr.msra.gmra.mrb[36].mxu1 %vm1397_vm2, %v1983_v31  ;;  %v5563_v31 = vld [vmem:[%s6879_s8 + $0x88] sm:$0xff]  }
 0x7f1   : > { %5250 = vmatpush3.bf16.msra.mxu1 %v5542_v30  ;;  %5253 = vmatprep.mubr.msk.bf16.mxu1 %vm5843_vm0, %v5842_v27  ;;  %v5562_v30 = vld [vmem:[%s6879_s8 + $0x80] sm:$0xff]  }
 0x7f2   : > { %5251 = vmatprep.subr.bf16.mxu1 %v5842_v27 }
 0x7f5   : > { %5252 = vmatpush3.bf16.msra.mxu1 %v5543_v32  ;;  %v5564_v32 = vld [vmem:[%s6879_s8 + $0x90] sm:$0xff]  }
 0x7f6   : > { %5277 = vmatprep.subr.bf16.mxu1 %v5842_v27 }
 0x7f8   : > { %5254 = vmatmul.mubr.msk.bf16.vlgmr.msra.gmra.mrb[40].mxu1 %vm1304_vm1, %v1515_v18  ;;  %v5552_v18 = vld [vmem:[%s6098_s4 + $0xa0] sm:$0xff]  }
 0x7f9   : > { %5293 = vmatprep.mubr.msk.bf16.mxu1 %vm5843_vm0, %v5842_v27  ;;  %5278 = vmatpush3.bf16.msra.mxu1 %v5544_v33  ;;  %v5565_v33 = vld [vmem:[%s6879_s8 + $0x98] sm:$0xff]  }
 0x7fa   : > { %5279 = vmatprep.subr.bf16.mxu1 %v5842_v27 }
 0x7fd   : > { %5280 = vmatpush3.bf16.msra.mxu1 %v5546_v35  ;;  %v5567_v35 = vld [vmem:[%s6879_s8 + $0xa8] sm:$0xff]  }
 0x7fe   : > { %5281 = vmatprep.subr.bf16.mxu1 %v5842_v27 }
 0x801   : > { %5282 = vmatpush3.bf16.msra.mxu1 %v5548_v12  ;;  %v5569_v12 = vld [vmem:[%s6879_s8 + $0xb8] sm:$0xff]  }
 0x802   : > { %5283 = vmatprep.subr.bf16.mxu1 %v5842_v27 }
 0x805   : > { %5284 = vmatpush3.bf16.msra.mxu1 %v5550_v16 }
 0x806   : > { %5285 = vmatprep.subr.bf16.mxu1 %v5842_v27 }
 0x809   : > { %5286 = vmatpush3.bf16.msra.mxu1 %v5552_v18 }
 0x80a   : > { %5287 = vmatprep.subr.bf16.mxu1 %v5842_v27 }
 0x80d   : > { %5288 = vmatpush3.bf16.msra.mxu1 %v5554_v37 }
 0x80e   : > { %5289 = vmatprep.subr.bf16.mxu1 %v5842_v27 }
 0x811   : > { %5290 = vmatpush3.bf16.msra.mxu1 %v5556_v38 }
 0x812   : > { %5291 = vmatprep.subr.bf16.mxu1 %v5842_v27 }
 0x815   : > { %5292 = vmatpush3.bf16.msra.mxu1 %v5558_v39 }
 0x816   : > { %5317 = vmatprep.subr.bf16.mxu1 %v5842_v27 }
 0x818   : > { %5294 = vmatmul.mubr.bf16.vlgmr.msra.gmra.mrb[44].mxu1 %v6227_v45 }
 0x819   : > { %5319 = vmatprep.mubr.msk.bf16.mxu1 %vm5843_vm0, %v5842_v27 }
 0x8bb   : > { %v2024_v40 = vpop.f32.mrb[32].mxu1 }
 0x8bc   : > { %v5233_v41 = vpop.f32.mrb[33].mxu1 }
 0x8bd   : > { %v2027_v42 = vpop.f32.mrb[34].mxu1 }
 0x8be   : > { %v5234_v43 = vpop.f32.mrb[35].mxu1 }
 0x8c3   : > { %v2070_v44 = vpop.f32.mrb[36].mxu1 }
 0x8c4   : > { %v2076_v47 = vpack.c.bf16 %v2070_v44, %v2024_v40  ;;  %v5239_v48 = vpop.f32.mrb[37].mxu1 }
 0x8c5   : > { %v2073_v49 = vpop.f32.mrb[38].mxu1 }
 0x8c6   : > { %v5240_v50 = vpop.f32.mrb[39].mxu1  ;;  %5246 = vmatmul.mubr.msk.bf16.vlgmr.msra.gmra.mrb[16].mxu0 %vm1304_vm1, %v2076_v47 }
 0x8c7   : > { %5258 = vmatpush3.bf16.msra.mxu0 %v5549_v46  ;;  %5273 = vmatprep.mubr.msk.bf16.mxu0 %vm5843_vm0, %v5842_v27 }
 0x8c8   : > { %5259 = vmatprep.subr.bf16.mxu0 %v5842_v27 }
 0x8cb   : > { %5260 = vmatpush3.bf16.msra.mxu0 %v5551_v51  ;;  %v2187_v52 = vpop.f32.mrb[40].mxu1 }
 0x8cc   : > { %v5255_v54 = vpop.f32.mrb[41].mxu1  ;;  %5261 = vmatprep.subr.bf16.mxu0 %v5842_v27 }
 0x8cd   : > { %v2190_v55 = vpop.f32.mrb[42].mxu1 }
 0x8ce   : > { %v5256_v56 = vpop.f32.mrb[43].mxu1 }
 0x8cf   : > { %5262 = vmatpush3.bf16.msra.mxu0 %v5553_v53 }
 0x8d0   : > { %5263 = vmatprep.subr.bf16.mxu0 %v5842_v27 }
 0x8d3   : > { %5264 = vmatpush3.bf16.msra.mxu0 %v5555_v57 }
 0x8d4   : > { %5265 = vmatprep.subr.bf16.mxu0 %v5842_v27 }
 0x8d7   : > { %5266 = vmatpush3.bf16.msra.mxu0 %v5557_v58  ;;  %v4689_v58 = vld [vmem:[%s6881_s22 + $0x2] ss:$0 sm:$0xff] }
 0x8d8   : > { %5267 = vmatprep.subr.bf16.mxu0 %v5842_v27 }
 0x8db   : > { %5268 = vmatpush3.bf16.msra.mxu0 %v5559_v59 }
 0x8dc   : > { %5269 = vmatprep.subr.bf16.mxu0 %v5842_v27 }
 0x8df   : > { %5270 = vmatpush3.bf16.msra.mxu0 %v5560_v60 }
 0x8e0   : > { %5271 = vmatprep.subr.bf16.mxu0 %v5842_v27 }
 0x8e3   : > { %5272 = vmatpush3.bf16.msra.mxu0 %v5561_v61 }
 0x8e4   : > { %5297 = vmatprep.subr.bf16.mxu0 %v5842_v27 }
 0x8e6   : > { %5274 = vmatmul.mubr.bf16.vlgmr.msra.gmra.mrb[20].mxu0 %v6227_v45 }
 0x8e7   : > { %5313 = vmatprep.mubr.msk.bf16.mxu0 %vm5843_vm0, %v5842_v27  ;;  %5298 = vmatpush3.bf16.msra.mxu0 %v5562_v30 }
 0x8e8   : > { %5299 = vmatprep.subr.bf16.mxu0 %v5842_v27 }
 0x8eb   : > { %v2415_v63 = vpop.f32.mrb[44].mxu1  ;;  %5300 = vmatpush3.bf16.msra.mxu0 %v5563_v31 }
 0x8ec   : > { %v2416_v0 = vadd.f32 %v4663_v62, %v2415_v63  ;;  %v5295_v1 = vpop.f32.mrb[45].mxu1  ;;  %5301 = vmatprep.subr.bf16.mxu0 %v5842_v27 }
 0x8ed   : > { %v2418_v2 = vpop.f32.mrb[46].mxu1 }
 0x8ee   : > { %v2538_v3 = vpack.c.bf16 %v2416_v0, %v2416_v0  ;;  %v2419_v4 = vadd.f32 %v4663_v62, %v2418_v2  ;;  %v5296_v5 = vpop.f32.mrb[47].mxu1 }
 0x8ef   : > { %5302 = vmatpush3.bf16.msra.mxu0 %v5564_v32 }
 0x8f0   : > { %v2546_v6 = vsel %vm1304_vm1, %v2538_v3, 0  ;;  %v2539_v20 = vpack.c.bf16 %v2419_v4, %v2419_v4  ;;  %5303 = vmatprep.subr.bf16.mxu0 %v5842_v27 }
 0x8f1   : > { %5318 = vmatpush3.bf16.xpose.msra.mxu1 %v2546_v6 }
 0x8f2   : > { %5323 = vmatprep.subr.bf16.mxu1 %v5842_v27  ;;  %v2592_v26 = vsel %vm1304_vm1, %v2539_v20, 0  ;;  %v5574_v20 = vld [vmem:[%s6092_s27 + $0xc0] sm:$0xff]  }
 0x8f3   : > { %5304 = vmatpush3.bf16.msra.mxu0 %v5565_v33 }
 0x8f4   : > { %5305 = vmatprep.subr.bf16.mxu0 %v5842_v27 }
 0x8f7   : > { %5306 = vmatpush3.bf16.msra.mxu0 %v5566_v34  ;;  %v5572_v34 = vld [vmem:[%s6098_s4 + $0xc0] sm:$0xff]  }
 0x8f8   : > { %5307 = vmatprep.subr.bf16.mxu0 %v5842_v27 }
 0x8fb   : > { %5308 = vmatpush3.bf16.msra.mxu0 %v5567_v35 }
 0x8fc   : > { %5309 = vmatprep.subr.bf16.mxu0 %v5842_v27 }
 0x8ff   : > { %5310 = vmatpush3.bf16.msra.mxu0 %v5568_v36 }
 0x900   : > { %5311 = vmatprep.subr.bf16.mxu0 %v5842_v27 }
 0x903   : > { %5312 = vmatpush3.bf16.msra.mxu0 %v5569_v12 }
 0x904   : > { %5341 = vmatprep.subr.bf16.mxu0 %v5842_v27 }
 0x906   : > { %5314 = vmatmul.mubr.bf16.vlgmr.msra.gmra.mrb[24].mxu0 %v6227_v45 }
 0x907   : > { %5345 = vmatprep.mubr.msk.bf16.mxu0 %vm5843_vm0, %v5842_v27 }
 0x999   : > { %v2131_v7 = vpop.f32.mrb[16].mxu0 }
 0x99a   : > { %v6446_v8 = vadd.f32 %v2187_v52, %v2131_v7  ;;  %v5247_v9 = vpop.f32.mrb[17].mxu0 }
 0x99b   : > { %v2134_v11 = vpop.f32.mrb[18].mxu0 }
 0x99c   : > { %v6448_v13 = vadd.f32 %v2190_v55, %v2134_v11  ;;  %v5248_v14 = vpop.f32.mrb[19].mxu0 }
 0x9b9   : > { %v2301_v19 = vpop.f32.mrb[20].mxu0 }
 0x9ba   : > { %v2302_v21 = vadd.f32 %v4637_v15, %v2301_v19  ;;  %v5275_v22 = vpop.f32.mrb[21].mxu0  ;;  %v5571_v19 = vld [vmem:[%s6143_s25 + $0x28] sm:$0xff]  }
 0x9bb   : > { %v2304_v23 = vpop.f32.mrb[22].mxu0  ;;  %v5578_v22 = vld [vmem:[%s6092_s27 + $0xd0] sm:$0xff]  }
 0x9bc   : > { %v2536_v24 = vpack.c.bf16 %v2302_v21, %v2302_v21  ;;  %v5276_v25 = vpop.f32.mrb[23].mxu0  ;;  %v2305_v28 = vadd.f32 %v4637_v15, %v2304_v23  ;;  %v5570_v15 = vld [vmem:[%s6143_s25 + $0x20] sm:$0xff]   ;;  %v5576_v21 = vld [vmem:[%s6092_s27 + $0xc8] sm:$0xff]   ;;  %v5580_v23 = vld [vmem:[%s6092_s27 + $0xd8] sm:$0xff]  }
 0x9bd   : > { %5342 = vmatpush3.bf16.msra.mxu0 %v5570_v15  ;;  %v5584_v25 = vld [vmem:[%s6092_s27 + $0xe8] sm:$0xff]   ;;  %v5734_v15 = vld [vmem:[%s6880_s21] sm:$0xff] }
 0x9be   : > { %5320 = vmatmul.mubr.msk.bf16.vlgmr.msra.gmra.mrb[48].mxu1 %vm1304_vm1, %v2536_v24  ;;  %v2537_v29 = vpack.c.bf16 %v2305_v28, %v2305_v28  ;;  %5343 = vmatprep.subr.bf16.mxu0 %v5842_v27  ;;  %v5582_v24 = vld [vmem:[%s6092_s27 + $0xe0] sm:$0xff]   ;;  %v5587_v28 = vld [vmem:[%s6092_s27 + $0xf8] sm:$0xff]  }
 0x9bf   : > { %5324 = vmatpush3.bf16.xpose.msra.mxu1 %v2592_v26  ;;  %5325 = vmatprep.mubr.msk.bf16.mxu1 %vm5843_vm0, %v5842_v27  ;;  %v5586_v26 = vld [vmem:[%s6092_s27 + $0xf0] sm:$0xff]  }
 0x9c0   : > { %5329 = vmatprep.subr.bf16.mxu1 %v5842_v27 }
 0x9c1   : > { %5344 = vmatpush3.bf16.msra.mxu0 %v5571_v19 }
 0x9c2   : > { %5369 = vmatprep.subr.bf16.mxu0 %v5842_v27 }
 0x9c6   : > { %5326 = vmatmul.mubr.msk.bf16.vlgmr.msra.gmra.mrb[52].mxu1 %vm1304_vm1, %v2537_v29 }
 0x9c7   : > { %5331 = vmatprep.mubr.msk.bf16.mxu1 %vm5843_vm0, %v5842_v27 }
 0x9d9   : > { %v2529_v56 = vpop.f32.mrb[24].mxu0 }
 0x9da   : > { %v5315_v57 = vpop.f32.mrb[25].mxu0  ;;  %v2530_v60 = vadd.f32 %v4689_v58, %v2529_v56 }
 0x9db   : > { %v2532_v59 = vpop.f32.mrb[26].mxu0  ;;  %v4726_v57 = vld [vmem:[%s6121_s19 + $0x3] ss:$0 sm:$0xff] }
 0x9dc   : > { %v5316_v61 = vpop.f32.mrb[27].mxu0  ;;  %v2533_v62 = vadd.f32 %v4689_v58, %v2532_v59  ;;  %v2540_v63 = vpack.c.bf16 %v2530_v60, %v2530_v60 }
 0x9de   : > { %v2662_v0 = vsel %vm1425_vm3, %v2540_v63, 0  ;;  %v2541_v5 = vpack.c.bf16 %v2533_v62, %v2533_v62 }
 0x9df   : > { %5330 = vmatpush3.bf16.msra.mxu1 %v2662_v0 }
 0x9e0   : > { %5335 = vmatprep.subr.bf16.mxu1 %v5842_v27  ;;  %v2708_v7 = vsel %vm1425_vm3, %v2541_v5, 0  ;;  %v5591_v5 = vld [vmem:[%s6879_s8 + $0xd8] sm:$0xff]  }
 0xa91   : > { %v2582_v16 = vpop.f32.mrb[48].mxu1 }
 0xa92   : > { %v2583_v18 = vadd.f32 %v2582_v16, %v6272_v10  ;;  %v5321_v37 = vpop.f32.mrb[49].mxu1 }
 0xa93   : > { %v2585_v38 = vpop.f32.mrb[50].mxu1  ;;  %v5575_v37 = vld [vmem:[%s6098_s4 + $0xd0] sm:$0xff]  }
 0xa94   : > { %v5322_v39 = vpop.f32.mrb[51].mxu1  ;;  %v2634_v40 = vsel %vm1397_vm2, %v2583_v18, -inf  ;;  %v5577_v38 = vld [vmem:[%s6098_s4 + $0xd8] sm:$0xff]  }
 0xa95   : > { %2635 = vmax.xlane.f32.xlu0 %v2634_v40  ;;  %v5579_v39 = vld [vmem:[%s6098_s4 + $0xe0] sm:$0xff]   ;;  %v5581_v40 = vld [vmem:[%s6098_s4 + $0xe8] sm:$0xff]  }
 0xa99   : > { %v2628_v41 = vpop.f32.mrb[52].mxu1 }
 0xa9a   : > { %v2629_v42 = vadd.f32 %v2628_v41, %v6279_v17  ;;  %v5327_v43 = vpop.f32.mrb[53].mxu1  ;;  %v5583_v41 = vld [vmem:[%s6098_s4 + $0xf0] sm:$0xff]  }
 0xa9b   : > { %v2631_v44 = vpop.f32.mrb[54].mxu1 }
 0xa9c   : > { %v5328_v46 = vpop.f32.mrb[55].mxu1  ;;  %v2637_v47 = vsel %vm1397_vm2, %v2629_v42, -inf }
 0xa9d   : > { %2638 = vmax.xlane.f32.xlu1 %v2637_v47 }
 0xb22   : > { %v2636_v48 = vpop.xlane.xlu0 %2635 }
 0xb23   : > { %v2640_v49 = vsub.f32 %v2583_v18, %v2636_v48  ;;  %v5573_v18 = vld [vmem:[%s6098_s4 + $0xc8] sm:$0xff]  }
 0xb25   : > { %v2642_v50 = vmul.f32 1.442695, %v2640_v49 }
 0xb27   : > { %5694 = vpow2.f32 %v2642_v50 }
 0xb2a   : > { %v2639_v10 = vpop.xlane.xlu1 %2638 }
 0xb2b   : > { %v2641_v51 = vsub.f32 %v2629_v42, %v2639_v10  ;;  %v5585_v42 = vld [vmem:[%s6098_s4 + $0xf8] sm:$0xff]  }
 0xb2d   : > { %v2644_v52 = vmul.f32 1.442695, %v2641_v51 }
 0xb2f   : > { %5696 = vpow2.f32 %v2644_v52 }
 0xb31   : > { %v5695_v53 = vpop.eup %5694 }
 0xb32   : > { %v2646_v54 = vsel %vm1397_vm2, %v5695_v53, 0.0 }
 0xb33   : > { %2647 = vadd.xlane.f32.xlu0 %v2646_v54 }
 0xb39   : > { %v5697_v17 = vpop.eup %5696 }
 0xb3a   : > { %v2649_v55 = vsel %vm1397_vm2, %v5697_v17, 0.0 }
 0xb3b   : > { %2650 = vadd.xlane.f32.xlu1 %v2649_v55 }
 0xbc0   : > { %v2648_v1 = vpop.xlane.xlu0 %2647 }
 0xbc1   : > { %5698 = vrcp.f32 %v2648_v1 }
 0xbc8   : > { %v2651_v2 = vpop.xlane.xlu1 %2650 }
 0xbc9   : > { %5700 = vrcp.f32 %v2651_v2  ;;  %v5588_v2 = vld [vmem:[%s6879_s8 + $0xc0] sm:$0xff]  }
 0xbcb   : > { %v5699_v3 = vpop.eup %5698 }
 0xbcc   : > { %v2654_v4 = vmul.f32 %v5699_v3, %v5695_v53  ;;  %v4752_v53 = vld [vmem:[%s6127_s26 + $0x3] ss:$0 sm:$0xff]  ;;  %v5589_v3 = vld [vmem:[%s6879_s8 + $0xc8] sm:$0xff]  }
 0xbce   : > { %v2656_v6 = vpack.c.bf16 %v2654_v4, %v2654_v4  ;;  %v5590_v4 = vld [vmem:[%s6879_s8 + $0xd0] sm:$0xff]  }
 0xbd0   : > { %5332 = vmatmul.mubr.msk.bf16.vlgmr.msra.gmra.mrb[56].mxu1 %vm1397_vm2, %v2656_v6  ;;  %v5592_v6 = vld [vmem:[%s6879_s8 + $0xe0] sm:$0xff]  }
 0xbd1   : > { %5336 = vmatpush3.bf16.msra.mxu1 %v2708_v7  ;;  %5337 = vmatprep.mubr.msk.bf16.mxu1 %vm5843_vm0, %v5842_v27  ;;  %v5593_v7 = vld [vmem:[%s6879_s8 + $0xe8] sm:$0xff]  }
 0xbd2   : > { %5349 = vmatprep.subr.bf16.mxu1 %v5842_v27 }
 0xbd3   : > { %v5701_v9 = vpop.eup %5700 }
 0xbd4   : > { %v2655_v11 = vmul.f32 %v5701_v9, %v5697_v17  ;;  %v5594_v9 = vld [vmem:[%s6879_s8 + $0xf0] sm:$0xff]  }
 0xbd6   : > { %v2657_v14 = vpack.c.bf16 %v2655_v11, %v2655_v11  ;;  %v5595_v11 = vld [vmem:[%s6879_s8 + $0xf8] sm:$0xff]   ;;  %s6885_s8 = sld [smem:[#allocation27_spill]] }
 0xbd8   : > { %5338 = vmatmul.mubr.msk.bf16.vlgmr.msra.gmra.mrb[60].mxu1 %vm1397_vm2, %v2657_v14 }
 0xbd9   : > { %5365 = vmatprep.mubr.msk.bf16.mxu1 %vm5843_vm0, %v5842_v27  ;;  %5350 = vmatpush3.bf16.msra.mxu1 %v5574_v20 }
 0xbda   : > { %5351 = vmatprep.subr.bf16.mxu1 %v5842_v27 }
 0xbdc   : > { %s6886_s20 = scalar_lea.vmem %s6885_s8, %s6106_s17 }
 0xbdd   : > { %5352 = vmatpush3.bf16.msra.mxu1 %v5576_v21 }
 0xbde   : > { %5353 = vmatprep.subr.bf16.mxu1 %v5842_v27 }
 0xbe1   : > { %5354 = vmatpush3.bf16.msra.mxu1 %v5578_v22 }
 0xbe2   : > { %5355 = vmatprep.subr.bf16.mxu1 %v5842_v27 }
 0xbe5   : > { %5356 = vmatpush3.bf16.msra.mxu1 %v5580_v23 }
 0xbe6   : > { %5357 = vmatprep.subr.bf16.mxu1 %v5842_v27 }
 0xbe9   : > { %5358 = vmatpush3.bf16.msra.mxu1 %v5582_v24 }
 0xbea   : > { %5359 = vmatprep.subr.bf16.mxu1 %v5842_v27 }
 0xbed   : > { %5360 = vmatpush3.bf16.msra.mxu1 %v5584_v25 }
 0xbee   : > { %5361 = vmatprep.subr.bf16.mxu1 %v5842_v27 }
 0xbf1   : > { %5362 = vmatpush3.bf16.msra.mxu1 %v5586_v26 }
 0xbf2   : > { %5363 = vmatprep.subr.bf16.mxu1 %v5842_v27 }
 0xbf5   : > { %5364 = vmatpush3.bf16.msra.mxu1 %v5587_v28 }
 0xbf6   : > { %5389 = vmatprep.subr.bf16.mxu1 %v5842_v27 }
 0xbf8   : > { %5366 = vmatmul.mubr.bf16.vlgmr.msra.gmra.mrb[64].mxu1 %v6227_v45 }
 0xbf9   : > { %5405 = vmatprep.mubr.msk.bf16.mxu1 %vm5843_vm0, %v5842_v27  ;;  %5390 = vmatpush3.bf16.msra.mxu1 %v5588_v2 }
 0xbfa   : > { %5391 = vmatprep.subr.bf16.mxu1 %v5842_v27 }
 0xbfd   : > { %5392 = vmatpush3.bf16.msra.mxu1 %v5589_v3 }
 0xbfe   : > { %5393 = vmatprep.subr.bf16.mxu1 %v5842_v27 }
 0xc01   : > { %5394 = vmatpush3.bf16.msra.mxu1 %v5590_v4 }
 0xc02   : > { %5395 = vmatprep.subr.bf16.mxu1 %v5842_v27 }
 0xc05   : > { %5396 = vmatpush3.bf16.msra.mxu1 %v5591_v5 }
 0xc06   : > { %5397 = vmatprep.subr.bf16.mxu1 %v5842_v27 }
 0xc09   : > { %5398 = vmatpush3.bf16.msra.mxu1 %v5592_v6 }
 0xc0a   : > { %5399 = vmatprep.subr.bf16.mxu1 %v5842_v27 }
 0xc0d   : > { %5400 = vmatpush3.bf16.msra.mxu1 %v5593_v7 }
 0xc0e   : > { %5401 = vmatprep.subr.bf16.mxu1 %v5842_v27 }
 0xc11   : > { %5402 = vmatpush3.bf16.msra.mxu1 %v5594_v9 }
 0xc12   : > { %5403 = vmatprep.subr.bf16.mxu1 %v5842_v27 }
 0xc15   : > { %5404 = vmatpush3.bf16.msra.mxu1 %v5595_v11 }
 0xc16   : > { %5433 = vmatprep.subr.bf16.mxu1 %v5842_v27 }
 0xc18   : > { %5406 = vmatmul.mubr.bf16.vlgmr.msra.gmra.mrb[68].mxu1 %v6227_v45 }
 0xc19   : > { %5437 = vmatprep.mubr.msk.bf16.mxu1 %vm5843_vm0, %v5842_v27 }
 0xca3   : > { %v2698_v29 = vpop.f32.mrb[56].mxu1 }
 0xca4   : > { %v5333_v30 = vpop.f32.mrb[57].mxu1 }
 0xca5   : > { %v2701_v31 = vpop.f32.mrb[58].mxu1 }
 0xca6   : > { %v5334_v32 = vpop.f32.mrb[59].mxu1  ;;  %v4778_v31 = vld [vmem:[%s6881_s22 + $0x3] ss:$0 sm:$0xff] }
 0xcab   : > { %v2744_v33 = vpop.f32.mrb[60].mxu1 }
 0xcac   : > { %v2750_v35 = vpack.c.bf16 %v2744_v33, %v2698_v29  ;;  %v5339_v36 = vpop.f32.mrb[61].mxu1 }
 0xcad   : > { %v2747_v12 = vpop.f32.mrb[62].mxu1 }
 0xcae   : > { %v5340_v16 = vpop.f32.mrb[63].mxu1  ;;  %5346 = vmatmul.mubr.msk.bf16.vlgmr.msra.gmra.mrb[28].mxu0 %vm1304_vm1, %v2750_v35 }
 0xcaf   : > { %5370 = vmatpush3.bf16.msra.mxu0 %v5572_v34  ;;  %5385 = vmatprep.mubr.msk.bf16.mxu0 %vm5843_vm0, %v5842_v27 }
 0xcb0   : > { %5371 = vmatprep.subr.bf16.mxu0 %v5842_v27 }
 0xcb3   : > { %5372 = vmatpush3.bf16.msra.mxu0 %v5573_v18 }
 0xcb4   : > { %5373 = vmatprep.subr.bf16.mxu0 %v5842_v27 }
 0xcb7   : > { %5374 = vmatpush3.bf16.msra.mxu0 %v5575_v37 }
 0xcb8   : > { %5375 = vmatprep.subr.bf16.mxu0 %v5842_v27 }
 0xcbb   : > { %5376 = vmatpush3.bf16.msra.mxu0 %v5577_v38 }
 0xcbc   : > { %5377 = vmatprep.subr.bf16.mxu0 %v5842_v27 }
 0xcbf   : > { %5378 = vmatpush3.bf16.msra.mxu0 %v5579_v39 }
 0xcc0   : > { %5379 = vmatprep.subr.bf16.mxu0 %v5842_v27 }
 0xcc3   : > { %5380 = vmatpush3.bf16.msra.mxu0 %v5581_v40 }
 0xcc4   : > { %5381 = vmatprep.subr.bf16.mxu0 %v5842_v27 }
 0xcc7   : > { %5382 = vmatpush3.bf16.msra.mxu0 %v5583_v41 }
 0xcc8   : > { %5383 = vmatprep.subr.bf16.mxu0 %v5842_v27 }
 0xccb   : > { %5384 = vmatpush3.bf16.msra.mxu0 %v5585_v42  ;;  %v2921_v43 = vpop.f32.mrb[64].mxu1 }
 0xccc   : > { %5409 = vmatprep.subr.bf16.mxu0 %v5842_v27  ;;  %v5367_v44 = vpop.f32.mrb[65].mxu1 }
 0xccd   : > { %v2924_v46 = vpop.f32.mrb[66].mxu1 }
 0xcce   : > { %5386 = vmatmul.mubr.bf16.vlgmr.msra.gmra.mrb[32].mxu0 %v6227_v45  ;;  %v5368_v47 = vpop.f32.mrb[67].mxu1  ;;  %v2925_v0 = vadd.f32 %v4726_v57, %v2924_v46  ;;  %v5735_v45 = vld [vmem:[%s6880_s21 + $0x8] sm:$0xff] }
 0xccf   : > { %5411 = vmatprep.mubr.msk.bf16.mxu0 %vm5843_vm0, %v5842_v27 }
 0xcd0   : > { %v3157_v1 = vpack.c.bf16 %v2925_v0, %v2925_v0 }
 0xceb   : > { %v3149_v32 = vpop.f32.mrb[68].mxu1 }
 0xcec   : > { %v3150_v33 = vadd.f32 %v4778_v31, %v3149_v32  ;;  %v5407_v34 = vpop.f32.mrb[69].mxu1 }
 0xced   : > { %v3152_v44 = vpop.f32.mrb[70].mxu1 }
 0xcee   : > { %v3160_v35 = vpack.c.bf16 %v3150_v33, %v3150_v33  ;;  %v5408_v46 = vpop.f32.mrb[71].mxu1  ;;  %v3153_v47 = vadd.f32 %v4778_v31, %v3152_v44  ;;  %v5625_v44 = vld [vmem:[%s6156_s23 + $0x88] ss:$16 sps:$4 sm:$0xff]  }
 0xcef   : > { %v5630_v46 = vld [vmem:[%s6156_s23 + $0xa4] ss:$16 sps:$4 sm:$0xff]  }
 0xcf0   : > { %v3282_v36 = vsel %vm1425_vm3, %v3160_v35, 0 }
 0xd81   : > { %v2805_v48 = vpop.f32.mrb[28].mxu0 }
 0xd82   : > { %v6541_v49 = vadd.f32 %v2805_v48, %v6446_v8  ;;  %v5347_v50 = vpop.f32.mrb[29].mxu0  ;;  %v2922_v8 = vadd.f32 %v4726_v57, %v2921_v43 }
 0xd83   : > { %v2808_v10 = vpop.f32.mrb[30].mxu0 }
 0xd84   : > { %v6544_v51 = vadd.f32 %v2808_v10, %v6448_v13  ;;  %v5348_v52 = vpop.f32.mrb[31].mxu0  ;;  %v3156_v62 = vpack.c.bf16 %v2922_v8, %v2922_v8 }
 0xda1   : > { %v3035_v54 = vpop.f32.mrb[32].mxu0 }
 0xda2   : > { %v3036_v17 = vadd.f32 %v4752_v53, %v3035_v54  ;;  %v5387_v55 = vpop.f32.mrb[33].mxu0 }
 0xda3   : > { %v3038_v56 = vpop.f32.mrb[34].mxu0 }
 0xda4   : > { %v3158_v58 = vpack.c.bf16 %v3036_v17, %v3036_v17  ;;  %v5388_v59 = vpop.f32.mrb[35].mxu0  ;;  %v3039_v61 = vadd.f32 %v4752_v53, %v3038_v56  ;;  %v3161_v53 = vpack.c.bf16 %v3153_v47, %v3153_v47  ;;  %v5633_v47 = vld [vmem:[%s6156_s23 + $0xac] ss:$16 sps:$4 sm:$0xff]  }
 0xda5   : > { %v5597_v59 = vld [vmem:[%s6143_s25 + $0x38] sm:$0xff]  }
 0xda6   : > { %v3166_v60 = vsel %vm1304_vm1, %v3158_v58, 0  ;;  %v3159_v13 = vpack.c.bf16 %v3039_v61, %v3039_v61  ;;  %v3328_v17 = vsel %vm1425_vm3, %v3161_v53, 0  ;;  %v5596_v58 = vld [vmem:[%s6143_s25 + $0x30] sm:$0xff]  }
 0xda7   : > { %5410 = vmatpush3.bf16.xpose.msra.mxu0 %v3166_v60  ;;  %5434 = vmatpush3.bf16.msra.mxu1 %v5596_v58  ;;  %v5634_v53 = vld [vmem:[%s6156_s23 + $0xc0] ss:$16 sps:$4 sm:$0xff]   ;;  %v5844_v58 = vmov 0  }
 0xda8   : > { %5415 = vmatprep.subr.bf16.mxu0 %v5842_v27  ;;  %v3212_v63 = vsel %vm1304_vm1, %v3159_v13, 0  ;;  %5435 = vmatprep.subr.bf16.mxu1 %v5842_v27 }
 0xdab   : > { %5436 = vmatpush3.bf16.msra.mxu1 %v5597_v59 }
 0xdae   : > { %5412 = vmatmul.mubr.msk.bf16.vlgmr.msra.gmra.mrb[36].mxu0 %vm1304_vm1, %v3156_v62 }
 0xdaf   : > { %5416 = vmatpush3.bf16.xpose.msra.mxu0 %v3212_v63  ;;  %5417 = vmatprep.mubr.msk.bf16.mxu0 %vm5843_vm0, %v5842_v27 }
 0xdb0   : > { %5421 = vmatprep.subr.bf16.mxu0 %v5842_v27 }
 0xdb6   : > { %5418 = vmatmul.mubr.msk.bf16.vlgmr.msra.gmra.mrb[40].mxu0 %vm1304_vm1, %v3157_v1 }
 0xdb7   : > { %5423 = vmatprep.mubr.msk.bf16.mxu0 %vm5843_vm0, %v5842_v27  ;;  %5422 = vmatpush3.bf16.msra.mxu0 %v3282_v36  ;;  %v5612_v36 = vld [vmem:[%s6156_s23 + $0x44] ss:$16 sps:$4 sm:$0xff]  }
 0xdb8   : > { %5427 = vmatprep.subr.bf16.mxu0 %v5842_v27 }
 0xe81   : > { %v3202_v14 = vpop.f32.mrb[36].mxu0 }
 0xe82   : > { %v3203_v19 = vadd.f32 %v5734_v15, %v3202_v14  ;;  %v5413_v20 = vpop.f32.mrb[37].mxu0  ;;  %v5736_v15 = vld [vmem:[#allocation2] sm:$0xff] }
 0xe83   : > { %v3205_v21 = vpop.f32.mrb[38].mxu0  ;;  %v5737_v20 = vld [vmem:[#allocation2 + $0x8] sm:$0xff] }
 0xe84   : > { %v5414_v22 = vpop.f32.mrb[39].mxu0  ;;  %v3254_v23 = vsel %vm1397_vm2, %v3203_v19, -inf }
 0xe85   : > { %3255 = vmax.xlane.f32.xlu0 %v3254_v23  ;;  %v5598_v22 = vld [vmem:[%s6156_s23] ss:$16 sps:$4 sm:$0xff]   ;;  %v5601_v23 = vld [vmem:[%s6156_s23 + $0x8] ss:$16 sps:$4 sm:$0xff]  }
 0xe89   : > { %v3248_v24 = vpop.f32.mrb[40].mxu0 }
 0xe8a   : > { %v3249_v25 = vadd.f32 %v5735_v45, %v3248_v24  ;;  %v5419_v26 = vpop.f32.mrb[41].mxu0  ;;  %v5603_v24 = vld [vmem:[%s6156_s23 + $0xc] ss:$16 sps:$4 sm:$0xff]   ;;  %v5606_v45 = vld [vmem:[%s6156_s23 + $0x24] ss:$16 sps:$4 sm:$0xff]  }
 0xe8b   : > { %v3251_v28 = vpop.f32.mrb[42].mxu0  ;;  %3744 = vmatprep.subr.bf16.mxu1 %v5603_v24  ;;  %v5607_v26 = vld [vmem:[%s6156_s23 + $0x28] ss:$16 sps:$4 sm:$0xff]   ;;  %v5655_v24 = vld [vmem:[%s6165_s0 + $0xd0] sm:$0xff]  }
 0xe8c   : > { %v5420_v29 = vpop.f32.mrb[43].mxu0  ;;  %v3257_v30 = vsel %vm1397_vm2, %v3249_v25, -inf }
 0xe8d   : > { %3258 = vmax.xlane.f32.xlu1 %v3257_v30 }
 0xf12   : > { %v3256_v12 = vpop.xlane.xlu0 %3255 }
 0xf13   : > { %v3260_v16 = vsub.f32 %v3203_v19, %v3256_v12  ;;  %v5615_v12 = vld [vmem:[%s6156_s23 + $0x4c] ss:$16 sps:$4 sm:$0xff]  }
 0xf15   : > { %v3262_v18 = vmul.f32 1.442695, %v3260_v16  ;;  %v5610_v16 = vld [vmem:[%s6156_s23 + $0x40] ss:$16 sps:$4 sm:$0xff]  }
 0xf17   : > { %5702 = vpow2.f32 %v3262_v18  ;;  %v5613_v18 = vld [vmem:[%s6156_s23 + $0x48] ss:$16 sps:$4 sm:$0xff]  }
 0xf1a   : > { %v3259_v37 = vpop.xlane.xlu1 %3258 }
 0xf1b   : > { %v3261_v38 = vsub.f32 %v3249_v25, %v3259_v37  ;;  %v5609_v25 = vld [vmem:[%s6156_s23 + $0x2c] ss:$16 sps:$4 sm:$0xff]   ;;  %v5618_v37 = vld [vmem:[%s6156_s23 + $0x64] ss:$16 sps:$4 sm:$0xff]  }
 0xf1d   : > { %v3264_v39 = vmul.f32 1.442695, %v3261_v38  ;;  %v5621_v38 = vld [vmem:[%s6156_s23 + $0x6c] ss:$16 sps:$4 sm:$0xff]  }
 0xf1f   : > { %5704 = vpow2.f32 %v3264_v39  ;;  %v5616_v39 = vld [vmem:[%s6156_s23 + $0x60] ss:$16 sps:$4 sm:$0xff]  }
 0xf21   : > { %v5703_v40 = vpop.eup %5702 }
 0xf22   : > { %v3266_v41 = vsel %vm1397_vm2, %v5703_v40, 0.0 }
 0xf23   : > { %3267 = vadd.xlane.f32.xlu0 %v3266_v41  ;;  %v5624_v41 = vld [vmem:[%s6156_s23 + $0x84] ss:$16 sps:$4 sm:$0xff]  }
 0xf29   : > { %v5705_v42 = vpop.eup %5704 }
 0xf2a   : > { %v3269_v43 = vsel %vm1397_vm2, %v5705_v42, 0.0 }
 0xf2b   : > { %3270 = vadd.xlane.f32.xlu1 %v3269_v43  ;;  %v5622_v43 = vld [vmem:[%s6156_s23 + $0x80] ss:$16 sps:$4 sm:$0xff]  }
 0xfb0   : > { %v3268_v48 = vpop.xlane.xlu0 %3267 }
 0xfb1   : > { %5706 = vrcp.f32 %v3268_v48  ;;  %v5628_v48 = vld [vmem:[%s6156_s23 + $0xa0] ss:$16 sps:$4 sm:$0xff]  }
 0xfb8   : > { %v3271_v50 = vpop.xlane.xlu1 %3270 }
 0xfb9   : > { %5708 = vrcp.f32 %v3271_v50  ;;  %v5631_v50 = vld [vmem:[%s6156_s23 + $0xa8] ss:$16 sps:$4 sm:$0xff]  }
 0xfbb   : > { %v5707_v10 = vpop.eup %5706 }
 0xfbc   : > { %v3274_v52 = vmul.f32 %v5707_v10, %v5703_v40  ;;  %v5619_v40 = vld [vmem:[%s6156_s23 + $0x68] ss:$16 sps:$4 sm:$0xff]   ;;  %v5636_v10 = vld [vmem:[%s6156_s23 + $0xc4] ss:$16 sps:$4 sm:$0xff]  }
 0xfbe   : > { %v3276_v54 = vpack.c.bf16 %v3274_v52, %v3274_v52  ;;  %v5639_v52 = vld [vmem:[%s6156_s23 + $0xcc] ss:$16 sps:$4 sm:$0xff]  }
 0xfc0   : > { %5424 = vmatmul.mubr.msk.bf16.vlgmr.msra.gmra.mrb[44].mxu0 %vm1397_vm2, %v3276_v54  ;;  %v5637_v54 = vld [vmem:[%s6156_s23 + $0xc8] ss:$16 sps:$4 sm:$0xff]  }
 0xfc1   : > { %5428 = vmatpush3.bf16.msra.mxu0 %v3328_v17  ;;  %5429 = vmatprep.mubr.msk.bf16.mxu0 %vm5843_vm0, %v5842_v27  ;;  %v4798_v27 = vld [vmem:[%s6882_s14] ss:$0 sm:$0xff]  ;;  %v5642_v17 = vld [vmem:[%s6156_s23 + $0xe4] ss:$16 sps:$4 sm:$0xff]  }
 0xfc3   : > { %v5709_v55 = vpop.eup %5708 }
 0xfc4   : > { %v3275_v56 = vmul.f32 %v5709_v55, %v5705_v42  ;;  %v5627_v42 = vld [vmem:[%s6156_s23 + $0x8c] ss:$16 sps:$4 sm:$0xff]  }
 0xfc5   : > { %v5645_v55 = vld [vmem:[%s6156_s23 + $0xec] ss:$16 sps:$4 sm:$0xff]  }
 0xfc6   : > { %v3277_v57 = vpack.c.bf16 %v3275_v56, %v3275_v56  ;;  %v5640_v56 = vld [vmem:[%s6156_s23 + $0xe0] ss:$16 sps:$4 sm:$0xff]  }
 0xfc8   : > { %5430 = vmatmul.mubr.msk.bf16.vlgmr.msra.gmra.mrb[48].mxu0 %vm1397_vm2, %v3277_v57  ;;  %v5643_v57 = vld [vmem:[%s6156_s23 + $0xe8] ss:$16 sps:$4 sm:$0xff]  }
 0xfc9   : > { %3733 = vmatprep.mubr.bf16.mxu0 %v5844_v58 }
0x1093   : > { %v3318_v60 = vpop.f32.mrb[44].mxu0 }
0x1094   : > { %v5425_v61 = vpop.f32.mrb[45].mxu0 }
0x1095   : > { %v3321_v8 = vpop.f32.mrb[46].mxu0 }
0x1096   : > { %v5426_v13 = vpop.f32.mrb[47].mxu0 }
0x109b   : > { %v3364_v62 = vpop.f32.mrb[48].mxu0 }
0x109c   : > { %v3370_v63 = vpack.c.bf16 %v3364_v62, %v3318_v60  ;;  %v5431_v0 = vpop.f32.mrb[49].mxu0 }
0x109d   : > { %v3367_v1 = vpop.f32.mrb[50].mxu0  ;;  %v4799_v0 = vld [vmem:[%s6884_s1] ss:$0 sm:$0xff] }
0x109e   : > { %v5432_v2 = vpop.f32.mrb[51].mxu0  ;;  %5438 = vmatmul.mubr.msk.bf16.vlgmr.msra.gmra.mrb[72].mxu1 %vm1304_vm1, %v3370_v63 }
0x109f   : > { %3745 = vmatpush1.bf16.msra.mxu1 %v5601_v23  ;;  %3776 = vmatprep.mubr.bf16.mxu1 %v5844_v58  ;;  %v5654_v23 = vld [vmem:[%s6165_s0 + $0x50] sm:$0xff]  }
0x10a0   : > { %3746 = vmatprep.subr.bf16.mxu1 %v5609_v25  ;;  %v5657_v25 = vld [vmem:[%s6165_s0 + $0x90] sm:$0xff]  }
0x10a3   : > { %3747 = vmatpush1.bf16.msra.mxu1 %v5607_v26  ;;  %v5659_v26 = vld [vmem:[%s6165_s0 + $0xd8] sm:$0xff]  }
0x10a4   : > { %3748 = vmatprep.subr.bf16.mxu1 %v5615_v12  ;;  %v5669_v12 = vld [vmem:[%s6165_s0 + $0xa8] sm:$0xff]  }
0x10a7   : > { %3749 = vmatpush1.bf16.msra.mxu1 %v5613_v18  ;;  %v5671_v18 = vld [vmem:[%s6165_s0 + $0xf0] sm:$0xff]  }
0x10a8   : > { %3750 = vmatprep.subr.bf16.mxu1 %v5621_v38  ;;  %v5673_v38 = vld [vmem:[%s6165_s0 + $0xb0] sm:$0xff]  }
0x10ab   : > { %3751 = vmatpush1.bf16.msra.mxu1 %v5619_v40  ;;  %v5675_v40 = vld [vmem:[%s6165_s0 + $0xf8] sm:$0xff]  }
0x10ac   : > { %3752 = vmatprep.subr.bf16.mxu1 %v5627_v42  ;;  %v5677_v42 = vld [vmem:[%s6165_s0 + $0xb8] sm:$0xff]  }
0x10af   : > { %3753 = vmatpush1.bf16.msra.mxu1 %v5625_v44 }
0x10b0   : > { %3754 = vmatprep.subr.bf16.mxu1 %v5633_v47 }
0x10b3   : > { %3755 = vmatpush1.bf16.msra.mxu1 %v5631_v50 }
0x10b4   : > { %3756 = vmatprep.subr.bf16.mxu1 %v5639_v52 }
0x10b7   : > { %3757 = vmatpush1.bf16.msra.mxu1 %v5637_v54 }
0x10b8   : > { %3758 = vmatprep.subr.bf16.mxu1 %v5645_v55 }
0x10bb   : > { %3759 = vmatpush1.bf16.msra.mxu1 %v5643_v57 }
0x1171   : > { %v3425_v3 = vpop.f32.mrb[72].mxu1 }
0x1172   : > { %v3432_v4 = vadd.f32 %v3425_v3, %v6541_v49  ;;  %v5439_v5 = vpop.f32.mrb[73].mxu1  ;;  %v5600_v49 = vld [vmem:[%s6156_s23 + $0x4] ss:$16 sps:$4 sm:$0xff]  }
0x1173   : > { %v3428_v6 = vpop.f32.mrb[74].mxu1  ;;  %3701 = vmatprep.subr.bf16.mxu0 %v5600_v49  ;;  %v5653_v49 = vld [vmem:[%s6165_s0 + $0x88] sm:$0xff]  }
0x1174   : > { %v3441_v7 = vadd.f32 %v4798_v27, %v3432_v4  ;;  %v3433_v9 = vadd.f32 %v3428_v6, %v6544_v51  ;;  %v5440_v11 = vpop.f32.mrb[75].mxu1  ;;  %3702 = vmatpush1.bf16.msra.mxu0 %v5598_v22  ;;  %v5604_v51 = vld [vmem:[%s6156_s23 + $0x20] ss:$16 sps:$4 sm:$0xff]   ;;  %v5652_v22 = vld [vmem:[%s6165_s0 + $0x8] sm:$0xff]  }
0x1175   : > { %3703 = vmatprep.subr.bf16.mxu0 %v5606_v45  ;;  %v4800_v4 = vld [vmem:[%s6886_s20] ss:$0 sm:$0xff]  ;;  %v5656_v45 = vld [vmem:[%s6165_s0 + $0x10] sm:$0xff]  }
0x1176   : > { %v3442_v14 = vadd.f32 %v4798_v27, %v3433_v9  ;;  %v3443_v19 = vadd.f32 %v5736_v15, %v3441_v7  ;;  %v5646_v11 = vld [vmem:[%s6165_s0 + $0x40] sm:$0xff]  }
0x1177   : > { %v5648_v15 = vld [vmem:[%s6165_s0] sm:$0xff]  }
0x1178   : > { %3447 = vadd.xlane.f32.xlu0 %v3443_v19  ;;  %v3444_v21 = vadd.f32 %v5737_v20, %v3442_v14  ;;  %3704 = vmatpush1.bf16.msra.mxu0 %v5604_v51  ;;  %v5647_v14 = vld [vmem:[%s6165_s0 + $0xc0] sm:$0xff]   ;;  %v5650_v20 = vld [vmem:[%s6165_s0 + $0x48] sm:$0xff]   ;;  %v5658_v51 = vld [vmem:[%s6165_s0 + $0x58] sm:$0xff]  }
0x1179   : > { %3705 = vmatprep.subr.bf16.mxu0 %v5612_v36  ;;  %5051 = vmatprep.subr.bf16.mxu1 %v5647_v14  ;;  %v5668_v36 = vld [vmem:[%s6165_s0 + $0x28] sm:$0xff]  }
0x117a   : > { %3449 = vadd.xlane.f32.xlu1 %v3444_v21 }
0x117c   : > { %3706 = vmatpush1.bf16.msra.mxu0 %v5610_v16  ;;  %v5670_v16 = vld [vmem:[%s6165_s0 + $0x70] sm:$0xff]  }
0x117d   : > { %3707 = vmatprep.subr.bf16.mxu0 %v5618_v37  ;;  %v5672_v37 = vld [vmem:[%s6165_s0 + $0x30] sm:$0xff]  }
0x1180   : > { %3708 = vmatpush1.bf16.msra.mxu0 %v5616_v39  ;;  %v5674_v39 = vld [vmem:[%s6165_s0 + $0x78] sm:$0xff]  }
0x1181   : > { %3709 = vmatprep.subr.bf16.mxu0 %v5624_v41  ;;  %v5676_v41 = vld [vmem:[%s6165_s0 + $0x38] sm:$0xff]  }
0x1184   : > { %3710 = vmatpush1.bf16.msra.mxu0 %v5622_v43  ;;  %v3521_v43 = vlaneseq }
0x1185   : > { %3711 = vmatprep.subr.bf16.mxu0 %v5630_v46 }
0x1186   : > { %v3522_v44 = vshrl.u32 %v3521_v43, 7 }
0x1188   : > { %3712 = vmatpush1.bf16.msra.mxu0 %v5628_v48  ;;  %v3523_v46 = vsub.s32 0, %v3522_v44  ;;  %v3531_v47 = vsub.s32 2, %v3522_v44  ;;  %v3519_v48 = vld [vmem:[%s6887_s28] sm:$0xf]  ;;  %v3527_v50 = vsub.s32 1, %v3522_v44 }
0x1189   : > { %3713 = vmatprep.subr.bf16.mxu0 %v5636_v10  ;;  %v3535_v10 = vsub.s32 3, %v3522_v44 }
0x118a   : > { %v3524_v52 = vrot.slane %v3519_v48, %v3523_v46  ;;  %v3528_v54 = vrot.slane %v3519_v48, %v3527_v50 }
0x118c   : > { %3714 = vmatpush1.bf16.msra.mxu0 %v5634_v53  ;;  %v3532_v53 = vrot.slane %v3519_v48, %v3531_v47 }
0x118d   : > { %3715 = vmatprep.subr.bf16.mxu0 %v5642_v17  ;;  %v3536_v17 = vrot.slane %v3519_v48, %v3535_v10 }
0x1190   : > { %3716 = vmatpush1.bf16.msra.mxu0 %v5640_v56 }
0x1191   : > { %5029 = vmatprep.subr.bf16.mxu0 %v5646_v11 }
0x1205   : > { %v3448_v28 = vpop.xlane.xlu0 %3447 }
0x1206   : > { %v3452_v29 = vmul.f32 0.0078125, %v3448_v28  ;;  %v5660_v28 = vld [vmem:[%s6165_s0 + $0x18] sm:$0xff]  }
0x1207   : > { %v3450_v30 = vpop.xlane.xlu1 %3449 }
0x1208   : > { %v6614_v31 = vsub.f32 %v3443_v19, %v3452_v29  ;;  %v3453_v32 = vmul.f32 0.0078125, %v3450_v30  ;;  %v5649_v19 = vld [vmem:[%s6165_s0 + $0x80] sm:$0xff]   ;;  %v5661_v29 = vld [vmem:[%s6165_s0 + $0x98] sm:$0xff]  }
0x1209   : > { %v5662_v30 = vld [vmem:[%s6165_s0 + $0x60] sm:$0xff]  }
0x120a   : > { %v6616_v33 = vsub.f32 %v3444_v21, %v3453_v32  ;;  %v3456_v34 = vmul.f32 %v6614_v31, %v6614_v31  ;;  %v5651_v21 = vld [vmem:[%s6165_s0 + $0xc8] sm:$0xff]   ;;  %v5664_v32 = vld [vmem:[%s6165_s0 + $0x20] sm:$0xff]  }
0x120c   : > { %3458 = vadd.xlane.f32.xlu0 %v3456_v34  ;;  %v3457_v35 = vmul.f32 %v6616_v33, %v6616_v33  ;;  %v5666_v34 = vld [vmem:[%s6165_s0 + $0x68] sm:$0xff]  }
0x120e   : > { %3460 = vadd.xlane.f32.xlu1 %v3457_v35  ;;  %v5667_v35 = vld [vmem:[%s6165_s0 + $0xe8] sm:$0xff]  }
0x1299   : > { %v3459_v59 = vpop.xlane.xlu0 %3458 }
0x129a   : > { %v3462_v60 = vmul.f32 0.0078125, %v3459_v59 }
0x129b   : > { %v3461_v61 = vpop.xlane.xlu1 %3460 }
0x129c   : > { %v3464_v8 = vadd.f32 1e-05, %v3462_v60  ;;  %v3463_v13 = vmul.f32 0.0078125, %v3461_v61 }
0x129e   : > { %5710 = vrsqrt.f32 %v3464_v8  ;;  %v3465_v62 = vadd.f32 1e-05, %v3463_v13 }
0x12a0   : > { %5712 = vrsqrt.f32 %v3465_v62 }
0x12a8   : > { %v5711_v63 = vpop.eup %5710 }
0x12a9   : > { %v3468_v1 = vmul.f32 %v5711_v63, %v6614_v31  ;;  %v5663_v31 = vld [vmem:[%s6165_s0 + $0xe0] sm:$0xff]  }
0x12aa   : > { %v5713_v2 = vpop.eup %5712 }
0x12ab   : > { %v3469_v3 = vmul.f32 %v5713_v2, %v6616_v33  ;;  %v3476_v27 = vmul.f32 %v4799_v0, %v3468_v1  ;;  %v5665_v33 = vld [vmem:[%s6165_s0 + $0xa0] sm:$0xff]  }
0x12ad   : > { %v3477_v5 = vmul.f32 %v4799_v0, %v3469_v3  ;;  %v6658_v6 = vadd.f32 %v4800_v4, %v3476_v27 }
0x12af   : > { %v6660_v7 = vadd.f32 %v4800_v4, %v3477_v5 }
0x12b1   : > { %v3486_v9 = vpack.c.bf16 %v6660_v7, %v6658_v6 }
0x12b3   : > { %3734 = vmatmul.mubr.bf16.vlgmr.msra.gmra.mrb[52].mxu0 %v3486_v9  ;;  %3777 = vmatmul.mubr.bf16.vlgmr.msra.gmra.mrb[76].mxu1 %v3486_v9 }
0x12b4   : > { %5030 = vmatpush3.bf16.msra.mxu0 %v5648_v15  ;;  %5052 = vmatpush3.bf16.msra.mxu1 %v5649_v19 }
0x12b5   : > { %5031 = vmatprep.subr.bf16.mxu0 %v5650_v20  ;;  %5053 = vmatprep.subr.bf16.mxu1 %v5651_v21 }
0x12b8   : > { %5032 = vmatpush3.bf16.msra.mxu0 %v5652_v22  ;;  %5054 = vmatpush3.bf16.msra.mxu1 %v5653_v49 }
0x12b9   : > { %5033 = vmatprep.subr.bf16.mxu0 %v5654_v23  ;;  %5055 = vmatprep.subr.bf16.mxu1 %v5655_v24 }
0x12bc   : > { %5034 = vmatpush3.bf16.msra.mxu0 %v5656_v45  ;;  %5056 = vmatpush3.bf16.msra.mxu1 %v5657_v25 }
0x12bd   : > { %5035 = vmatprep.subr.bf16.mxu0 %v5658_v51  ;;  %5057 = vmatprep.subr.bf16.mxu1 %v5659_v26 }
0x12c0   : > { %5036 = vmatpush3.bf16.msra.mxu0 %v5660_v28  ;;  %5058 = vmatpush3.bf16.msra.mxu1 %v5661_v29 }
0x12c1   : > { %5037 = vmatprep.subr.bf16.mxu0 %v5662_v30  ;;  %5059 = vmatprep.subr.bf16.mxu1 %v5663_v31 }
0x12c4   : > { %5038 = vmatpush3.bf16.msra.mxu0 %v5664_v32  ;;  %5060 = vmatpush3.bf16.msra.mxu1 %v5665_v33 }
0x12c5   : > { %5039 = vmatprep.subr.bf16.mxu0 %v5666_v34  ;;  %5061 = vmatprep.subr.bf16.mxu1 %v5667_v35 }
0x12c8   : > { %5040 = vmatpush3.bf16.msra.mxu0 %v5668_v36  ;;  %5062 = vmatpush3.bf16.msra.mxu1 %v5669_v12 }
0x12c9   : > { %5041 = vmatprep.subr.bf16.mxu0 %v5670_v16  ;;  %5063 = vmatprep.subr.bf16.mxu1 %v5671_v18 }
0x12cc   : > { %5042 = vmatpush3.bf16.msra.mxu0 %v5672_v37  ;;  %5064 = vmatpush3.bf16.msra.mxu1 %v5673_v38 }
0x12cd   : > { %5043 = vmatprep.subr.bf16.mxu0 %v5674_v39  ;;  %5065 = vmatprep.subr.bf16.mxu1 %v5675_v40 }
0x12d0   : > { %5044 = vmatpush3.bf16.msra.mxu0 %v5676_v41  ;;  %5066 = vmatpush3.bf16.msra.mxu1 %v5677_v42 }
0x1386   : > { %v3735_v55 = vpop.f32.mrb[52].mxu0  ;;  %v3778_v56 = vpop.f32.mrb[76].mxu1 }
0x1387   : > { %v6701_v57 = vadd.f32 %v3735_v55, %v3524_v52  ;;  %v6703_v58 = vadd.f32 %v3778_v56, %v3532_v53  ;;  %v3737_v59 = vpop.f32.mrb[53].mxu0  ;;  %v3780_v60 = vpop.f32.mrb[77].mxu1 }
0x1388   : > { %v6705_v61 = vadd.f32 %v3737_v59, %v3528_v54  ;;  %v6707_v8 = vadd.f32 %v3780_v60, %v3536_v17  ;;  %v3739_v13 = vpop.f32.mrb[54].mxu0  ;;  %v3782_v62 = vpop.f32.mrb[78].mxu1 }
0x1389   : > { %v3787_v63 = vmul.f32 %v6701_v57, %v6701_v57  ;;  %v3789_v0 = vmul.f32 %v6703_v58, %v6703_v58  ;;  %v6713_v1 = vadd.f32 %v3739_v13, %v3524_v52  ;;  %v6715_v2 = vadd.f32 %v3782_v62, %v3532_v53  ;;  %v3741_v3 = vpop.f32.mrb[55].mxu0  ;;  %v3784_v27 = vpop.f32.mrb[79].mxu1 }
0x138a   : > { %v3788_v4 = vmul.f32 %v6705_v61, %v6705_v61  ;;  %v3790_v5 = vmul.f32 %v6707_v8, %v6707_v8  ;;  %v6721_v9 = vadd.f32 %v3741_v3, %v3528_v54  ;;  %v6723_v11 = vadd.f32 %v3784_v27, %v3536_v17 }
0x138b   : > { %v3795_v14 = vmul.f32 %v3787_v63, %v6701_v57  ;;  %v3797_v15 = vmul.f32 %v3789_v0, %v6703_v58  ;;  %v3791_v19 = vmul.f32 %v6713_v1, %v6713_v1  ;;  %v3793_v20 = vmul.f32 %v6715_v2, %v6715_v2 }
0x138c   : > { %v3796_v21 = vmul.f32 %v3788_v4, %v6705_v61  ;;  %v3798_v22 = vmul.f32 %v3790_v5, %v6707_v8  ;;  %v3792_v49 = vmul.f32 %v6721_v9, %v6721_v9  ;;  %v3794_v23 = vmul.f32 %v6723_v11, %v6723_v11 }
0x138d   : > { %v3803_v24 = vmul.f32 0.044715, %v3795_v14  ;;  %v3805_v45 = vmul.f32 0.044715, %v3797_v15  ;;  %v3799_v25 = vmul.f32 %v3791_v19, %v6713_v1  ;;  %v3801_v51 = vmul.f32 %v3793_v20, %v6715_v2 }
0x138e   : > { %v3804_v26 = vmul.f32 0.044715, %v3796_v21  ;;  %v3806_v28 = vmul.f32 0.044715, %v3798_v22  ;;  %v3800_v29 = vmul.f32 %v3792_v49, %v6721_v9  ;;  %v3802_v30 = vmul.f32 %v3794_v23, %v6723_v11 }
0x138f   : > { %v3811_v31 = vadd.f32 %v3803_v24, %v6701_v57  ;;  %v3813_v32 = vadd.f32 %v3805_v45, %v6703_v58  ;;  %v3807_v33 = vmul.f32 0.044715, %v3799_v25  ;;  %v3809_v34 = vmul.f32 0.044715, %v3801_v51 }
0x1390   : > { %v3812_v35 = vadd.f32 %v3804_v26, %v6705_v61  ;;  %v3814_v36 = vadd.f32 %v3806_v28, %v6707_v8  ;;  %v3808_v12 = vmul.f32 0.044715, %v3800_v29  ;;  %v3810_v16 = vmul.f32 0.044715, %v3802_v30 }
0x1391   : > { %v3819_v18 = vmul.f32 0.7978846, %v3811_v31  ;;  %v3821_v37 = vmul.f32 0.7978846, %v3813_v32  ;;  %v3815_v38 = vadd.f32 %v3807_v33, %v6713_v1  ;;  %v3817_v39 = vadd.f32 %v3809_v34, %v6715_v2 }
0x1392   : > { %v3820_v40 = vmul.f32 0.7978846, %v3812_v35  ;;  %v3822_v41 = vmul.f32 0.7978846, %v3814_v36  ;;  %v3816_v42 = vadd.f32 %v3808_v12, %v6721_v9  ;;  %v3818_v43 = vadd.f32 %v3810_v16, %v6723_v11 }
0x1393   : > { %5714 = vtanh.f32 %v3819_v18  ;;  %v3823_v44 = vmul.f32 0.7978846, %v3815_v38  ;;  %v3825_v46 = vmul.f32 0.7978846, %v3817_v39 }
0x1394   : > { %5716 = vtanh.f32 %v3821_v37  ;;  %v3824_v47 = vmul.f32 0.7978846, %v3816_v42  ;;  %v3826_v48 = vmul.f32 0.7978846, %v3818_v43 }
0x1395   : > { %5718 = vtanh.f32 %v3820_v40 }
0x1396   : > { %5720 = vtanh.f32 %v3822_v41 }
0x1397   : > { %5722 = vtanh.f32 %v3823_v44 }
0x1398   : > { %5724 = vtanh.f32 %v3825_v46 }
0x1399   : > { %5726 = vtanh.f32 %v3824_v47 }
0x139a   : > { %5728 = vtanh.f32 %v3826_v48 }
0x139d   : > { %v5715_v50 = vpop.eup %5714 }
0x139e   : > { %v5717_v10 = vpop.eup %5716  ;;  %v3835_v52 = vadd.f32 1.0, %v5715_v50 }
0x139f   : > { %v5719_v53 = vpop.eup %5718  ;;  %v3837_v54 = vadd.f32 1.0, %v5717_v10 }
0x13a0   : > { %v5721_v17 = vpop.eup %5720  ;;  %v3836_v55 = vadd.f32 1.0, %v5719_v53  ;;  %v3843_v13 = vmul.f32 0.5, %v3835_v52 }
0x13a1   : > { %v5723_v56 = vpop.eup %5722  ;;  %v3838_v59 = vadd.f32 1.0, %v5721_v17  ;;  %v3845_v0 = vmul.f32 0.5, %v3837_v54 }
0x13a2   : > { %v5725_v60 = vpop.eup %5724  ;;  %v3839_v62 = vadd.f32 1.0, %v5723_v56  ;;  %v3844_v14 = vmul.f32 0.5, %v3836_v55  ;;  %v3851_v21 = vmul.f32 %v3843_v13, %v6701_v57  ;;  %v4866_v55 = vld [vmem:[%s903_s13] ss:$0 sm:$0xff]  ;;  %s6891_s13 = sld [smem:[#allocation32_spill]] (!%p4868_p3) }
0x13a3   : > { %v5727_v63 = vpop.eup %5726  ;;  %v3841_v3 = vadd.f32 1.0, %v5725_v60  ;;  %v3846_v20 = vmul.f32 0.5, %v3838_v59  ;;  %v3853_v23 = vmul.f32 %v3845_v0, %v6703_v58  ;;  %v4867_v60 = vld [vmem:[%s906_s12] ss:$0 sm:$0xff] }
0x13a4   : > { %v5729_v27 = vpop.eup %5728  ;;  %v3847_v4 = vmul.f32 0.5, %v3839_v62  ;;  %v3840_v5 = vadd.f32 1.0, %v5727_v63  ;;  %v3852_v25 = vmul.f32 %v3844_v14, %v6705_v61  ;;  %v4833_v61 = vld [vmem:[%s900_s10] ss:$0 sm:$0xff] }
0x13a5   : > { %v3849_v15 = vmul.f32 0.5, %v3841_v3  ;;  %v3842_v19 = vadd.f32 1.0, %v5729_v27  ;;  %v3854_v28 = vmul.f32 %v3846_v20, %v6707_v8 }
0x13a6   : > { %v3855_v22 = vmul.f32 %v3847_v4, %v6713_v1  ;;  %v3848_v49 = vmul.f32 0.5, %v3840_v5 }
0x13a7   : > { %v3857_v24 = vmul.f32 %v3849_v15, %v6715_v2  ;;  %v3850_v45 = vmul.f32 0.5, %v3842_v19 }
0x13a8   : > { %v3856_v51 = vmul.f32 %v3848_v49, %v6721_v9  ;;  %v3859_v26 = vpack.c.bf16 %v3855_v22, %v3851_v21 }
0x13a9   : > { %v3858_v29 = vmul.f32 %v3850_v45, %v6723_v11  ;;  %v3861_v30 = vpack.c.bf16 %v3857_v24, %v3853_v23 }
0x13aa   : > { %v3860_v57 = vpack.c.bf16 %v3856_v51, %v3852_v25 }
0x13ab   : > { %v3862_v31 = vpack.c.bf16 %v3858_v29, %v3854_v28 }
0x13ac   : > { %4158 = vmatprep.mubr.bf16.mxu0 %v3860_v57 }
0x13ad   : > { %4199 = vmatprep.mubr.bf16.mxu1 %v3862_v31  ;;  %4159 = vmatmul.mubr.bf16.vlgmr.msra.gmra.mrb[56].mxu0 %v3859_v26 }
0x13ae   : > { %4200 = vmatmul.mubr.bf16.vlgmr.msra.gmra.mrb[80].mxu1 %v3861_v30 }
0x1480   : > { %v5045_v58 = vpop.f32.mrb[56].mxu0 }
0x1481   : > { %v5067_v1 = vpop.f32.mrb[80].mxu1  ;;  %v5046_v2 = vpop.f32.mrb[57].mxu0 }
0x1482   : > { %v5047_v9 = vadd.f32 %v5046_v2, %v5045_v58  ;;  %v5068_v32 = vpop.f32.mrb[81].mxu1  ;;  %v5048_v8 = vpop.f32.mrb[58].mxu0 }
0x1483   : > { %v5069_v33 = vadd.f32 %v5068_v32, %v5067_v1  ;;  %v5070_v11 = vpop.f32.mrb[82].mxu1  ;;  %v5049_v34 = vpop.f32.mrb[59].mxu0 }
0x1484   : > { %v4161_v35 = vadd.f32 %v5047_v9, %v4833_v61  ;;  %v5050_v36 = vadd.f32 %v5049_v34, %v5048_v8  ;;  %v5071_v12 = vpop.f32.mrb[83].mxu1 }
0x1485   : > { %v5072_v16 = vadd.f32 %v5071_v12, %v5070_v11 }
0x1486   : > { %v4202_v18 = vadd.f32 %v5069_v33, %v4161_v35  ;;  %v4164_v37 = vadd.f32 %v5050_v36, %v4833_v61 }
0x1488   : > { %v4205_v38 = vadd.f32 %v5072_v16, %v4164_v37  ;;  %v4208_v39 = vadd.f32 %v4202_v18, %v6658_v6 }
0x148a   : > { %4212 = vadd.xlane.f32.xlu0 %v4208_v39  ;;  %v4209_v40 = vadd.f32 %v4205_v38, %v6660_v7 }
0x148c   : > { %4214 = vadd.xlane.f32.xlu1 %v4209_v40 }
0x1517   : > { %v4213_v41 = vpop.xlane.xlu0 %4212 }
0x1518   : > { %v4216_v42 = vmul.f32 0.0078125, %v4213_v41 }
0x1519   : > { %v4215_v43 = vpop.xlane.xlu1 %4214 }
0x151a   : > { %v4218_v44 = vsub.f32 %v4208_v39, %v4216_v42  ;;  %v4217_v46 = vmul.f32 0.0078125, %v4215_v43 }
0x151c   : > { %v4219_v47 = vsub.f32 %v4209_v40, %v4217_v46  ;;  %v4220_v48 = vmul.f32 %v4218_v44, %v4218_v44 }
0x151e   : > { %4222 = vadd.xlane.f32.xlu0 %v4220_v48  ;;  %v4221_v50 = vmul.f32 %v4219_v47, %v4219_v47 }
0x1520   : > { %4224 = vadd.xlane.f32.xlu1 %v4221_v50 }
0x15ab   : > { %v4223_v10 = vpop.xlane.xlu0 %4222 }
0x15ac   : > { %v4226_v52 = vmul.f32 0.0078125, %v4223_v10 }
0x15ad   : > { %v4225_v53 = vpop.xlane.xlu1 %4224 }
0x15ae   : > { %v4228_v6 = vadd.f32 1e-05, %v4226_v52  ;;  %v4227_v54 = vmul.f32 0.0078125, %v4225_v53 }
0x15b0   : > { %5730 = vrsqrt.f32 %v4228_v6  ;;  %v4229_v7 = vadd.f32 1e-05, %v4227_v54 }
0x15b2   : > { %5732 = vrsqrt.f32 %v4229_v7 }
0x15ba   : > { %v5731_v17 = vpop.eup %5730 }
0x15bb   : > { %v4232_v56 = vmul.f32 %v5731_v17, %v4218_v44 }
0x15bc   : > { %v5733_v59 = vpop.eup %5732 }
0x15bd   : > { %v4240_v13 = vmul.f32 %v4866_v55, %v4232_v56  ;;  %v4233_v62 = vmul.f32 %v5733_v59, %v4219_v47  ;;  %4255 = sbr.rel (%p4868_p3) target bundleno = 5572 (0x15c4), region = 116 }
0x15bf   : > { %v4248_v63 = vadd.f32 %v4867_v60, %v4240_v13  ;;  %v4241_v0 = vmul.f32 %v4866_v55, %v4233_v62 }
0x15c1   : > { %4250 = vst [vmem:[#allocation2] sm:$0xff] %v4248_v63  ;;  %v4249_v3 = vadd.f32 %v4867_v60, %v4241_v0  ;;  %4256 = vst [vmem:[%s6891_s13] sm:$0xff] (!%p4868_p3), %v4248_v63 }
0x15c3   : > { %4251 = vst [vmem:[#allocation2 + $0x8] sm:$0xff] %v4249_v3  ;;  %4257 = vst [vmem:[%s6891_s13 + $0x8] sm:$0xff] (!%p4868_p3), %v4249_v3 }
0x15c4 PF: > { %s6892_s24 = sld [smem:[#allocation11_spill]]  ;;  %s6893_s1 = sld [smem:[#allocation9_spill]] }
0x15c5   : > { %s6894_s22 = sld [smem:[#allocation10_spill]]  ;;  %s6895_s23 = sld [smem:[#allocation12_spill]] }
0x15ca   : > { %p33_p6 = scmp.ge.s32.totalorder %s6892_s24, 4  }
0x15cc   :  { %35 = sbr.rel (!%p33_p6) target bundleno = 24 (0x18), region = 220 }
0x15d3   :  { %4269 = vsyncpa [#allocation4], 1 }
0x15d4   :  { %4271 = vsyncpa [#allocation4 + $0x1], 1 }
0x15d5   :  { %4272 = vsyncpa [#allocation6], 1 }
0x15d6   :  { %4274 = vsyncpa [#allocation6 + $0x1], 1 }

</bundles_post_ra>
